<compile_context>
chip_gen: v7x
topology: tpu7x:2x2x1
jax: 0.10.0
libtpu: 0.0.40
codegen_flags: <defaults>
</compile_context>

<pallas_src>
import functools

import jax
import jax.numpy as jnp
import numpy as np
from jax import lax
from jax.experimental import pallas as pl
from jax.experimental.pallas import tpu as pltpu


_UNROLL_SEQ = 32      # statically unroll the recurrence up to this many steps
_FORI_UNROLL = 8      # partial unroll factor for longer sequences


# ----------------------------------------------------------------------------
# LSTM gate math.  Gate layout is gate-major: [ i | f | g | o ], each block
# `hw` lanes wide (hw = c_in*H for the packed stages, H for the redecoder).
# ----------------------------------------------------------------------------
def _gates_to_hc(gates, c_prev, hw):
    if hw % 128 == 0:
        # Gate blocks are lane-aligned and dense -> slice, then activate.
        i = jax.nn.sigmoid(gates[:, 0 * hw:1 * hw])
        f = jax.nn.sigmoid(gates[:, 1 * hw:2 * hw])
        g = jnp.tanh(gates[:, 2 * hw:3 * hw])
        o = jax.nn.sigmoid(gates[:, 3 * hw:4 * hw])
    else:
        # Sub-lane-width blocks: activate the full (batch, 4*hw) vector once
        # (2 dense EUP ops) instead of 4 masked partial-lane ops, then slice.
        sig = jax.nn.sigmoid(gates)
        th = jnp.tanh(gates)
        i, f, o = sig[:, 0:hw], sig[:, hw:2 * hw], sig[:, 3 * hw:4 * hw]
        g = th[:, 2 * hw:3 * hw]
    c_new = f * c_prev + i * g
    h_new = o * jnp.tanh(c_new)
    return h_new, c_new


def _run_recurrence(seq, step_fn, h0, c0, unroll):
    """step_fn(t, h, c) -> (h, c); may write scratch refs as a side effect."""
    if unroll:
        h, c = h0, c0
        for t in range(seq):                     # static unroll (short windows)
            h, c = step_fn(t, h, c)
        return h, c

    def body(t, carry):
        return step_fn(t, *carry)

    return lax.fori_loop(0, seq, body, (h0, c0), unroll=_FORI_UNROLL)


# ----------------------------------------------------------------------------
# Fused kernel: packed encoders -> packed decoders -> LayerNorm+noise ->
# redecoder.  No grid; everything resident in VMEM for the whole call.
# ----------------------------------------------------------------------------
def lstm_mvr_kernel(x_ref, noise_ref,
                    wx_e_ref, whh_e_ref, b_e_ref, wz_e_ref, bz_e_ref,
                    wih_d_ref, whh_d_ref, b_d_ref, wout_d_ref, bout_d_ref,
                    gamma_ref, beta_ref,
                    wih_r_ref, whh_r_ref, b_r_ref, wout_r_ref, bout_r_ref,
                    y1_ref, y2_ref, hall_d, hall_r, *, lambda_, unroll):
    seq, batch, _ = x_ref.shape
    hp = whh_e_ref.shape[0]     # packed hidden width = c_in * H
    hr = whh_r_ref.shape[0]     # redecoder hidden    = H
    f32 = jnp.float32

    def zeros(width):
        return jnp.zeros((batch, width), f32), jnp.zeros((batch, width), f32)

    # -------- Stage 1: c_in encoders as one block-diagonal recurrence --------
    def enc_step(t, h, c):
        gates = (jnp.dot(x_ref[t], wx_e_ref[...], preferred_element_type=f32)
                 + jnp.dot(h, whh_e_ref[...], preferred_element_type=f32)
                 + b_e_ref[...])
        return _gates_to_hc(gates, c, hp)

    h0, c0 = zeros(hp)
    h_enc, _ = _run_recurrence(seq, enc_step, h0, c0, unroll)

    # Channel-major concat of the c_in embeddings; stays in VMEM/vregs.
    z_cat = (jnp.dot(h_enc, wz_e_ref[...], preferred_element_type=f32)
             + bz_e_ref[...])                                   # (batch, c_in*Z)

    # -------- Stage 2: c_in decoders as one block-diagonal recurrence --------
    zw_d = (jnp.dot(z_cat, wih_d_ref[...], preferred_element_type=f32)
            + b_d_ref[...])                                     # loop-invariant

    def dec_step(t, h, c):
        gates = zw_d + jnp.dot(h, whh_d_ref[...], preferred_element_type=f32)
        h, c = _gates_to_hc(gates, c, hp)
        hall_d[pl.ds(t * batch, batch), :] = h                  # (batch, HP)
        return h, c

    h0, c0 = zeros(hp)
    _run_recurrence(seq, dec_step, h0, c0, unroll)

    # Single hoisted output projection + single store (was per-step in v2).
    y1_ref[...] = (jnp.dot(hall_d[...], wout_d_ref[...],
                           preferred_element_type=f32) + bout_d_ref[...])

    # -------- Stage 3: LayerNorm + lambda*noise + redecoder (fused) ----------
    mean = jnp.mean(z_cat, axis=-1, keepdims=True)
    var = jnp.mean(jnp.square(z_cat - mean), axis=-1, keepdims=True)
    zn = ((z_cat - mean) * lax.rsqrt(var + 1e-5) * gamma_ref[...]
          + beta_ref[...] + lambda_ * noise_ref[...])

    zw_r = (jnp.dot(zn, wih_r_ref[...], preferred_element_type=f32)
            + b_r_ref[...])                                     # loop-invariant

    def red_step(t, h, c):
        gates = zw_r + jnp.dot(h, whh_r_ref[...], preferred_element_type=f32)
        h, c = _gates_to_hc(gates, c, hr)
        hall_r[pl.ds(t * batch, batch), :] = h                  # (batch, H)
        return h, c

    h0, c0 = zeros(hr)
    _run_recurrence(seq, red_step, h0, c0, unroll)

    y2_ref[...] = (jnp.dot(hall_r[...], wout_r_ref[...],
                           preferred_element_type=f32) + bout_r_ref[...])


# ----------------------------------------------------------------------------
# pallas_call wrapper (single launch)
# ----------------------------------------------------------------------------
def lstm_mvr_forward(x, packed, lambda_, noise_key):
    """x: (batch, seq, c_in) float -> (x_hat1, x_hat2), each (batch, seq, c_in)."""
    batch, seq_len, c_in = x.shape
    hp = packed["whh_e"].shape[0]        # c_in * H
    hr = packed["whh_r"].shape[0]        # H
    zc = packed["wz_e"].shape[1]         # c_in * Z

    # Time-major input (one tiny transpose; no per-channel splits, no [...,None]).
    x_tm = jnp.transpose(x.astype(jnp.float32), (1, 0, 2))      # (seq,batch,c_in)
    noise = jax.random.normal(noise_key, (batch, zc), jnp.float32)

    args = (x_tm, noise,
            packed["wx_e"], packed["whh_e"], packed["b_e"], packed["wz_e"],
            packed["bz_e"],
            packed["wih_d"], packed["whh_d"], packed["b_d"], packed["wout_d"],
            packed["bout_d"],
            packed["gamma"], packed["beta"],
            packed["wih_r"], packed["whh_r"], packed["b_r"], packed["wout_r"],
            packed["bout_r"])

    # Advisory cost estimate for XLA's scheduler around the custom call.
    flops = (
        seq_len * 2 * batch * (c_in + hp) * 4 * hp          # encoder steps
        + 2 * batch * hp * zc                               # z projection
        + 2 * batch * zc * 4 * hp                           # decoder z @ W_ih
        + seq_len * 2 * batch * hp * 4 * hp                 # decoder steps
        + 2 * seq_len * batch * hp * c_in                   # decoder out proj
        + 2 * batch * zc * 4 * hr                           # redecoder z @ W_ih
        + seq_len * 2 * batch * hr * 4 * hr                 # redecoder steps
        + 2 * seq_len * batch * hr * c_in)                  # redecoder out proj
    transcendentals = seq_len * batch * 5 * (2 * hp + hr)
    bytes_accessed = int(sum(a.size for a in args) * 4
                         + 2 * seq_len * batch * c_in * 4)

    vmem = pl.BlockSpec(memory_space=pltpu.MemorySpace.VMEM)
    kernel = functools.partial(lstm_mvr_kernel, lambda_=float(lambda_),
                               unroll=seq_len <= _UNROLL_SEQ)

    y1, y2 = pl.pallas_call(
        kernel,
        out_shape=(jax.ShapeDtypeStruct((seq_len * batch, c_in), jnp.float32),
                   jax.ShapeDtypeStruct((seq_len * batch, c_in), jnp.float32)),
        in_specs=[vmem] * len(args),
        out_specs=(vmem, vmem),
        scratch_shapes=[pltpu.VMEM((seq_len * batch, hp), jnp.float32),
                        pltpu.VMEM((seq_len * batch, hr), jnp.float32)],
        compiler_params=pltpu.CompilerParams(
            vmem_limit_bytes=32 * 1024 * 1024),
        cost_estimate=pl.CostEstimate(flops=int(flops),
                                      transcendentals=int(transcendentals),
                                      bytes_accessed=bytes_accessed),
    )(*args)

    # (seq*batch, c_in) time-major -> (batch, seq, c_in): ~256-byte copies.
    x_hat1 = jnp.transpose(y1.reshape(seq_len, batch, c_in), (1, 0, 2))
    x_hat2 = jnp.transpose(y2.reshape(seq_len, batch, c_in), (1, 0, 2))
    return x_hat1, x_hat2


# ----------------------------------------------------------------------------
# Parameter init (deterministic, synthetic, per-module) + one-time packing
# ----------------------------------------------------------------------------
def init_params(key, c_in, h_size, z_size, scale=0.1):
    """Per-module params in math orientation (y = x @ W); b = b_ih + b_hh."""
    H, Z = h_size, z_size

    def normal(k, shape):
        return scale * jax.random.normal(k, shape, jnp.float32)

    ks = jax.random.split(key, 15)
    return {
        "enc": {
            "w_ih": normal(ks[0], (c_in, 1, 4 * H)),
            "w_hh": normal(ks[1], (c_in, H, 4 * H)),
            "b":    normal(ks[2], (c_in, 1, 4 * H)),
            "w_z":  normal(ks[3], (c_in, H, Z)),
            "b_z":  normal(ks[4], (c_in, 1, Z)),
        },
        "dec": {
            "w_ih":  normal(ks[5], (c_in, Z, 4 * H)),
            "w_hh":  normal(ks[6], (c_in, H, 4 * H)),
            "b":     normal(ks[7], (c_in, 1, 4 * H)),
            "w_out": normal(ks[8], (c_in, H, 1)),
            "b_out": normal(ks[9], (c_in, 1, 1)),
        },
        "red": {
            "w_ih":  normal(ks[10], (Z * c_in, 4 * H)),
            "w_hh":  normal(ks[11], (H, 4 * H)),
            "b":     normal(ks[12], (1, 4 * H)),
            "w_out": normal(ks[13], (H, c_in)),
            "b_out": normal(ks[14], (1, c_in)),
        },
        "ln_gamma": jnp.ones((1, Z * c_in), jnp.float32),
        "ln_beta":  jnp.zeros((1, Z * c_in), jnp.float32),
    }


def pack_params(params):
    """One-time packing of the c_in per-channel LSTMs into block-diagonal
    weights with gate-major columns, so the kernel runs ONE recurrence of
    width c_in*H instead of c_in sequential ones."""
    enc, dec, red = params["enc"], params["dec"], params["red"]
    c_in, H = enc["w_hh"].shape[0], enc["w_hh"].shape[1]
    Z = enc["w_z"].shape[2]
    eye = jnp.eye(c_in, dtype=jnp.float32)

    def bd_gates(w):          # (c_in, R, 4H) -> (c_in*R, 4*c_in*H), gate-major
        r = w.shape[1]
        w4 = w.reshape(c_in, r, 4, H)
        return jnp.einsum("crgj,cd->crgdj", w4, eye).reshape(
            c_in * r, 4 * c_in * H)

    def bd(w):                # (c_in, R, S) -> (c_in*R, c_in*S), block-diag
        r, s = w.shape[1], w.shape[2]
        return jnp.einsum("crk,cd->crdk", w, eye).reshape(c_in * r, c_in * s)

    def gate_major_bias(b):   # (c_in, 1, 4H) -> (1, 4*c_in*H)
        return b.reshape(c_in, 4, H).transpose(1, 0, 2).reshape(1, 4 * c_in * H)

    return {
        # packed encoders
        "wx_e":  bd_gates(enc["w_ih"]),          # (c_in, 4*HP)
        "whh_e": bd_gates(enc["w_hh"]),          # (HP, 4*HP)
        "b_e":   gate_major_bias(enc["b"]),      # (1, 4*HP)
        "wz_e":  bd(enc["w_z"]),                 # (HP, c_in*Z)
        "bz_e":  enc["b_z"].reshape(1, c_in * Z),
        # packed decoders
        "wih_d":  bd_gates(dec["w_ih"]),         # (c_in*Z, 4*HP)
        "whh_d":  bd_gates(dec["w_hh"]),         # (HP, 4*HP)
        "b_d":    gate_major_bias(dec["b"]),     # (1, 4*HP)
        "wout_d": bd(dec["w_out"]),              # (HP, c_in)
        "bout_d": dec["b_out"].reshape(1, c_in),
        # LayerNorm + redecoder (single module; passed through unpacked)
        "gamma": params["ln_gamma"],
        "beta":  params["ln_beta"],
        "wih_r":  red["w_ih"],
        "whh_r":  red["w_hh"],
        "b_r":    red["b"],
        "wout_r": red["w_out"],
        "bout_r": red["b_out"],
    }


# ----------------------------------------------------------------------------
# Pure-JAX reference (per-channel lax.scan) for a numerical sanity check
# ----------------------------------------------------------------------------
def _lstm_ref(x_seq, w_ih, w_hh, b, H):
    def step(carry, x_t):
        h, c = carry
        gates = x_t @ w_ih + h @ w_hh + b
        h, c = _gates_to_hc(gates, c, H)
        return (h, c), h

    batch = x_seq.shape[1]
    h0 = jnp.zeros((batch, H), jnp.float32)
    c0 = jnp.zeros((batch, H), jnp.float32)
    (h_T, _), hs = lax.scan(step, (h0, c0), x_seq)
    return h_T, hs


def lstm_mvr_reference(x, params, lambda_, noise_key):
    batch, seq_len, c_in = x.shape
    H = params["enc"]["w_hh"].shape[1]
    Z = params["enc"]["w_z"].shape[2]
    zs, y1 = [], []
    for i in range(c_in):
        x_i = jnp.transpose(x[:, :, i:i + 1], (1, 0, 2))        # (seq, batch, 1)
        h_T, _ = _lstm_ref(x_i, params["enc"]["w_ih"][i],
                           params["enc"]["w_hh"][i], params["enc"]["b"][i], H)
        z_i = h_T @ params["enc"]["w_z"][i] + params["enc"]["b_z"][i]
        zs.append(z_i)
        z_seq = jnp.broadcast_to(z_i, (seq_len, batch, Z))
        _, hs = _lstm_ref(z_seq, params["dec"]["w_ih"][i],
                          params["dec"]["w_hh"][i], params["dec"]["b"][i], H)
        y1.append(hs @ params["dec"]["w_out"][i] + params["dec"]["b_out"][i])
    z_cat = jnp.concatenate(zs, axis=-1)
    x_hat1 = jnp.transpose(jnp.concatenate(y1, axis=-1), (1, 0, 2))

    mean = jnp.mean(z_cat, axis=-1, keepdims=True)
    var = jnp.mean(jnp.square(z_cat - mean), axis=-1, keepdims=True)
    zn = ((z_cat - mean) * lax.rsqrt(var + 1e-5) * params["ln_gamma"]
          + params["ln_beta"])
    zn = zn + lambda_ * jax.random.normal(noise_key, zn.shape, jnp.float32)

    z_seq = jnp.broadcast_to(zn, (seq_len,) + zn.shape)
    _, hs = _lstm_ref(z_seq, params["red"]["w_ih"], params["red"]["w_hh"],
                      params["red"]["b"], H)
    x_hat2 = jnp.transpose(hs @ params["red"]["w_out"] + params["red"]["b_out"],
                           (1, 0, 2))
    return x_hat1, x_hat2


# ----------------------------------------------------------------------------
if __name__ == "__main__":
    batch, seq_len, c_in = 2, 8, 4
    h_size, z_size = 32, 8
    lambda_ = 0.2

    root = jax.random.PRNGKey(0)
    k_x, k_params, k_noise = jax.random.split(root, 3)

    x = jax.random.normal(k_x, (batch, seq_len, c_in), jnp.float32)
    params = init_params(k_params, c_in, h_size, z_size)
    packed = pack_params(params)       # one-time packing, outside the forward

    fwd = jax.jit(lambda xx, pp, kk: lstm_mvr_forward(xx, pp, lambda_, kk))
    ref = jax.jit(lambda xx, pp, kk: lstm_mvr_reference(xx, pp, lambda_, kk))

    x_hat1, x_hat2 = fwd(x, packed, k_noise)
    jax.block_until_ready((x_hat1, x_hat2))

    assert x_hat1.shape == (batch, seq_len, c_in)
    assert x_hat2.shape == (batch, seq_len, c_in)

    r1, r2 = ref(x, params, k_noise)
    np.testing.assert_allclose(np.asarray(x_hat1), np.asarray(r1),
                               rtol=2e-3, atol=2e-3)
    np.testing.assert_allclose(np.asarray(x_hat2), np.asarray(r2),
                               rtol=2e-3, atol=2e-3)

    print("KERNEL_OK")
</pallas_src>

<mosaic_0001>
module attributes {stable_mosaic.version = 11 : i64} {
  func.func @lstm_mvr_kernel(%arg0: memref<8x2x4xf32, #tpu.memory_space<vmem>>, %arg1: memref<2x32xf32, #tpu.memory_space<vmem>>, %arg2: memref<4x512xf32, #tpu.memory_space<vmem>>, %arg3: memref<128x512xf32, #tpu.memory_space<vmem>>, %arg4: memref<1x512xf32, #tpu.memory_space<vmem>>, %arg5: memref<128x32xf32, #tpu.memory_space<vmem>>, %arg6: memref<1x32xf32, #tpu.memory_space<vmem>>, %arg7: memref<32x512xf32, #tpu.memory_space<vmem>>, %arg8: memref<128x512xf32, #tpu.memory_space<vmem>>, %arg9: memref<1x512xf32, #tpu.memory_space<vmem>>, %arg10: memref<128x4xf32, #tpu.memory_space<vmem>>, %arg11: memref<1x4xf32, #tpu.memory_space<vmem>>, %arg12: memref<1x32xf32, #tpu.memory_space<vmem>>, %arg13: memref<1x32xf32, #tpu.memory_space<vmem>>, %arg14: memref<32x128xf32, #tpu.memory_space<vmem>>, %arg15: memref<32x128xf32, #tpu.memory_space<vmem>>, %arg16: memref<1x128xf32, #tpu.memory_space<vmem>>, %arg17: memref<32x4xf32, #tpu.memory_space<vmem>>, %arg18: memref<1x4xf32, #tpu.memory_space<vmem>>, %arg19: memref<16x4xf32, #tpu.memory_space<vmem>>, %arg20: memref<16x4xf32, #tpu.memory_space<vmem>>, %arg21: memref<16x128xf32, #tpu.memory_space<vmem>>, %arg22: memref<16x32xf32, #tpu.memory_space<vmem>>) attributes {dimension_semantics = [], scalar_prefetch = 0 : i64, scratch_operands = 2 : i64, tpu.core_type = #tpu.core_type<tc>} {
    %cst = arith.constant 0.000000e+00 : f32
    %0 = vector.broadcast %cst : f32 to vector<2x128xf32>
    %cst_0 = arith.constant 0.000000e+00 : f32
    %1 = vector.broadcast %cst_0 : f32 to vector<2x128xf32>
    %c0 = arith.constant 0 : index
    %c0_1 = arith.constant 0 : index
    %c0_2 = arith.constant 0 : index
    %2 = vector.load %arg0[%c0, %c0_1, %c0_2] : memref<8x2x4xf32, #tpu.memory_space<vmem>>, vector<1x2x4xf32>
    %3 = vector.shape_cast %2 : vector<1x2x4xf32> to vector<2x4xf32>
    %c0_3 = arith.constant 0 : index
    %c0_4 = arith.constant 0 : index
    %4 = vector.load %arg2[%c0_3, %c0_4] : memref<4x512xf32, #tpu.memory_space<vmem>>, vector<4x512xf32>
    %cst_5 = arith.constant dense<0.000000e+00> : vector<2x512xf32>
    %5 = tpu.matmul %3, %4, %cst_5 {dimension_numbers = #tpu.dot_dimension_numbers<[1], [0], [0], [1], [0, 0, 1, 1], [], []>} : vector<2x4xf32>, vector<4x512xf32>, vector<2x512xf32> -> vector<2x512xf32>
    %c0_6 = arith.constant 0 : index
    %c0_7 = arith.constant 0 : index
    %6 = vector.load %arg3[%c0_6, %c0_7] : memref<128x512xf32, #tpu.memory_space<vmem>>, vector<128x512xf32>
    %cst_8 = arith.constant dense<0.000000e+00> : vector<2x512xf32>
    %7 = tpu.matmul %0, %6, %cst_8 {dimension_numbers = #tpu.dot_dimension_numbers<[1], [0], [0], [1], [0, 0, 1, 1], [], []>} : vector<2x128xf32>, vector<128x512xf32>, vector<2x512xf32> -> vector<2x512xf32>
    %8 = arith.addf %5, %7 : vector<2x512xf32>
    %c0_9 = arith.constant 0 : index
    %c0_10 = arith.constant 0 : index
    %9 = vector.load %arg4[%c0_9, %c0_10] : memref<1x512xf32, #tpu.memory_space<vmem>>, vector<1x512xf32>
    %10 = vector.broadcast %9 : vector<1x512xf32> to vector<2x512xf32>
    %11 = arith.addf %8, %10 : vector<2x512xf32>
    %12 = vector.extract_strided_slice %11 {offsets = [0, 0], sizes = [2, 128], strides = [1, 1]} : vector<2x512xf32> to vector<2x128xf32>
    %13 = arith.negf %12 : vector<2x128xf32>
    %14 = math.exp %13 : vector<2x128xf32>
    %cst_11 = arith.constant 1.000000e+00 : f32
    %15 = vector.broadcast %cst_11 : f32 to vector<2x128xf32>
    %16 = arith.addf %15, %14 : vector<2x128xf32>
    %17 = arith.divf %15, %16 : vector<2x128xf32>
    %18 = vector.extract_strided_slice %11 {offsets = [0, 128], sizes = [2, 128], strides = [1, 1]} : vector<2x512xf32> to vector<2x128xf32>
    %19 = arith.negf %18 : vector<2x128xf32>
    %20 = math.exp %19 : vector<2x128xf32>
    %cst_12 = arith.constant 1.000000e+00 : f32
    %21 = vector.broadcast %cst_12 : f32 to vector<2x128xf32>
    %22 = arith.addf %21, %20 : vector<2x128xf32>
    %23 = arith.divf %21, %22 : vector<2x128xf32>
    %24 = vector.extract_strided_slice %11 {offsets = [0, 256], sizes = [2, 128], strides = [1, 1]} : vector<2x512xf32> to vector<2x128xf32>
    %25 = math.tanh %24 : vector<2x128xf32>
    %26 = vector.extract_strided_slice %11 {offsets = [0, 384], sizes = [2, 128], strides = [1, 1]} : vector<2x512xf32> to vector<2x128xf32>
    %27 = arith.negf %26 : vector<2x128xf32>
    %28 = math.exp %27 : vector<2x128xf32>
    %cst_13 = arith.constant 1.000000e+00 : f32
    %29 = vector.broadcast %cst_13 : f32 to vector<2x128xf32>
    %30 = arith.addf %29, %28 : vector<2x128xf32>
    %31 = arith.divf %29, %30 : vector<2x128xf32>
    %32 = arith.mulf %23, %1 : vector<2x128xf32>
    %33 = arith.mulf %17, %25 : vector<2x128xf32>
    %34 = arith.addf %32, %33 : vector<2x128xf32>
    %35 = math.tanh %34 : vector<2x128xf32>
    %36 = arith.mulf %31, %35 : vector<2x128xf32>
    %c1 = arith.constant 1 : index
    %c0_14 = arith.constant 0 : index
    %c0_15 = arith.constant 0 : index
    %37 = vector.load %arg0[%c1, %c0_14, %c0_15] : memref<8x2x4xf32, #tpu.memory_space<vmem>>, vector<1x2x4xf32>
    %38 = vector.shape_cast %37 : vector<1x2x4xf32> to vector<2x4xf32>
    %c0_16 = arith.constant 0 : index
    %c0_17 = arith.constant 0 : index
    %39 = vector.load %arg2[%c0_16, %c0_17] : memref<4x512xf32, #tpu.memory_space<vmem>>, vector<4x512xf32>
    %cst_18 = arith.constant dense<0.000000e+00> : vector<2x512xf32>
    %40 = tpu.matmul %38, %39, %cst_18 {dimension_numbers = #tpu.dot_dimension_numbers<[1], [0], [0], [1], [0, 0, 1, 1], [], []>} : vector<2x4xf32>, vector<4x512xf32>, vector<2x512xf32> -> vector<2x512xf32>
    %c0_19 = arith.constant 0 : index
    %c0_20 = arith.constant 0 : index
    %41 = vector.load %arg3[%c0_19, %c0_20] : memref<128x512xf32, #tpu.memory_space<vmem>>, vector<128x512xf32>
    %cst_21 = arith.constant dense<0.000000e+00> : vector<2x512xf32>
    %42 = tpu.matmul %36, %41, %cst_21 {dimension_numbers = #tpu.dot_dimension_numbers<[1], [0], [0], [1], [0, 0, 1, 1], [], []>} : vector<2x128xf32>, vector<128x512xf32>, vector<2x512xf32> -> vector<2x512xf32>
    %43 = arith.addf %40, %42 : vector<2x512xf32>
    %c0_22 = arith.constant 0 : index
    %c0_23 = arith.constant 0 : index
    %44 = vector.load %arg4[%c0_22, %c0_23] : memref<1x512xf32, #tpu.memory_space<vmem>>, vector<1x512xf32>
    %45 = vector.broadcast %44 : vector<1x512xf32> to vector<2x512xf32>
    %46 = arith.addf %43, %45 : vector<2x512xf32>
    %47 = vector.extract_strided_slice %46 {offsets = [0, 0], sizes = [2, 128], strides = [1, 1]} : vector<2x512xf32> to vector<2x128xf32>
    %48 = arith.negf %47 : vector<2x128xf32>
    %49 = math.exp %48 : vector<2x128xf32>
    %cst_24 = arith.constant 1.000000e+00 : f32
    %50 = vector.broadcast %cst_24 : f32 to vector<2x128xf32>
    %51 = arith.addf %50, %49 : vector<2x128xf32>
    %52 = arith.divf %50, %51 : vector<2x128xf32>
    %53 = vector.extract_strided_slice %46 {offsets = [0, 128], sizes = [2, 128], strides = [1, 1]} : vector<2x512xf32> to vector<2x128xf32>
    %54 = arith.negf %53 : vector<2x128xf32>
    %55 = math.exp %54 : vector<2x128xf32>
    %cst_25 = arith.constant 1.000000e+00 : f32
    %56 = vector.broadcast %cst_25 : f32 to vector<2x128xf32>
    %57 = arith.addf %56, %55 : vector<2x128xf32>
    %58 = arith.divf %56, %57 : vector<2x128xf32>
    %59 = vector.extract_strided_slice %46 {offsets = [0, 256], sizes = [2, 128], strides = [1, 1]} : vector<2x512xf32> to vector<2x128xf32>
    %60 = math.tanh %59 : vector<2x128xf32>
    %61 = vector.extract_strided_slice %46 {offsets = [0, 384], sizes = [2, 128], strides = [1, 1]} : vector<2x512xf32> to vector<2x128xf32>
    %62 = arith.negf %61 : vector<2x128xf32>
    %63 = math.exp %62 : vector<2x128xf32>
    %cst_26 = arith.constant 1.000000e+00 : f32
    %64 = vector.broadcast %cst_26 : f32 to vector<2x128xf32>
    %65 = arith.addf %64, %63 : vector<2x128xf32>
    %66 = arith.divf %64, %65 : vector<2x128xf32>
    %67 = arith.mulf %58, %34 : vector<2x128xf32>
    %68 = arith.mulf %52, %60 : vector<2x128xf32>
    %69 = arith.addf %67, %68 : vector<2x128xf32>
    %70 = math.tanh %69 : vector<2x128xf32>
    %71 = arith.mulf %66, %70 : vector<2x128xf32>
    %c2 = arith.constant 2 : index
    %c0_27 = arith.constant 0 : index
    %c0_28 = arith.constant 0 : index
    %72 = vector.load %arg0[%c2, %c0_27, %c0_28] : memref<8x2x4xf32, #tpu.memory_space<vmem>>, vector<1x2x4xf32>
    %73 = vector.shape_cast %72 : vector<1x2x4xf32> to vector<2x4xf32>
    %c0_29 = arith.constant 0 : index
    %c0_30 = arith.constant 0 : index
    %74 = vector.load %arg2[%c0_29, %c0_30] : memref<4x512xf32, #tpu.memory_space<vmem>>, vector<4x512xf32>
    %cst_31 = arith.constant dense<0.000000e+00> : vector<2x512xf32>
    %75 = tpu.matmul %73, %74, %cst_31 {dimension_numbers = #tpu.dot_dimension_numbers<[1], [0], [0], [1], [0, 0, 1, 1], [], []>} : vector<2x4xf32>, vector<4x512xf32>, vector<2x512xf32> -> vector<2x512xf32>
    %c0_32 = arith.constant 0 : index
    %c0_33 = arith.constant 0 : index
    %76 = vector.load %arg3[%c0_32, %c0_33] : memref<128x512xf32, #tpu.memory_space<vmem>>, vector<128x512xf32>
    %cst_34 = arith.constant dense<0.000000e+00> : vector<2x512xf32>
    %77 = tpu.matmul %71, %76, %cst_34 {dimension_numbers = #tpu.dot_dimension_numbers<[1], [0], [0], [1], [0, 0, 1, 1], [], []>} : vector<2x128xf32>, vector<128x512xf32>, vector<2x512xf32> -> vector<2x512xf32>
    %78 = arith.addf %75, %77 : vector<2x512xf32>
    %c0_35 = arith.constant 0 : index
    %c0_36 = arith.constant 0 : index
    %79 = vector.load %arg4[%c0_35, %c0_36] : memref<1x512xf32, #tpu.memory_space<vmem>>, vector<1x512xf32>
    %80 = vector.broadcast %79 : vector<1x512xf32> to vector<2x512xf32>
    %81 = arith.addf %78, %80 : vector<2x512xf32>
    %82 = vector.extract_strided_slice %81 {offsets = [0, 0], sizes = [2, 128], strides = [1, 1]} : vector<2x512xf32> to vector<2x128xf32>
    %83 = arith.negf %82 : vector<2x128xf32>
    %84 = math.exp %83 : vector<2x128xf32>
    %cst_37 = arith.constant 1.000000e+00 : f32
    %85 = vector.broadcast %cst_37 : f32 to vector<2x128xf32>
    %86 = arith.addf %85, %84 : vector<2x128xf32>
    %87 = arith.divf %85, %86 : vector<2x128xf32>
    %88 = vector.extract_strided_slice %81 {offsets = [0, 128], sizes = [2, 128], strides = [1, 1]} : vector<2x512xf32> to vector<2x128xf32>
    %89 = arith.negf %88 : vector<2x128xf32>
    %90 = math.exp %89 : vector<2x128xf32>
    %cst_38 = arith.constant 1.000000e+00 : f32
    %91 = vector.broadcast %cst_38 : f32 to vector<2x128xf32>
    %92 = arith.addf %91, %90 : vector<2x128xf32>
    %93 = arith.divf %91, %92 : vector<2x128xf32>
    %94 = vector.extract_strided_slice %81 {offsets = [0, 256], sizes = [2, 128], strides = [1, 1]} : vector<2x512xf32> to vector<2x128xf32>
    %95 = math.tanh %94 : vector<2x128xf32>
    %96 = vector.extract_strided_slice %81 {offsets = [0, 384], sizes = [2, 128], strides = [1, 1]} : vector<2x512xf32> to vector<2x128xf32>
    %97 = arith.negf %96 : vector<2x128xf32>
    %98 = math.exp %97 : vector<2x128xf32>
    %cst_39 = arith.constant 1.000000e+00 : f32
    %99 = vector.broadcast %cst_39 : f32 to vector<2x128xf32>
    %100 = arith.addf %99, %98 : vector<2x128xf32>
    %101 = arith.divf %99, %100 : vector<2x128xf32>
    %102 = arith.mulf %93, %69 : vector<2x128xf32>
    %103 = arith.mulf %87, %95 : vector<2x128xf32>
    %104 = arith.addf %102, %103 : vector<2x128xf32>
    %105 = math.tanh %104 : vector<2x128xf32>
    %106 = arith.mulf %101, %105 : vector<2x128xf32>
    %c3 = arith.constant 3 : index
    %c0_40 = arith.constant 0 : index
    %c0_41 = arith.constant 0 : index
    %107 = vector.load %arg0[%c3, %c0_40, %c0_41] : memref<8x2x4xf32, #tpu.memory_space<vmem>>, vector<1x2x4xf32>
    %108 = vector.shape_cast %107 : vector<1x2x4xf32> to vector<2x4xf32>
    %c0_42 = arith.constant 0 : index
    %c0_43 = arith.constant 0 : index
    %109 = vector.load %arg2[%c0_42, %c0_43] : memref<4x512xf32, #tpu.memory_space<vmem>>, vector<4x512xf32>
    %cst_44 = arith.constant dense<0.000000e+00> : vector<2x512xf32>
    %110 = tpu.matmul %108, %109, %cst_44 {dimension_numbers = #tpu.dot_dimension_numbers<[1], [0], [0], [1], [0, 0, 1, 1], [], []>} : vector<2x4xf32>, vector<4x512xf32>, vector<2x512xf32> -> vector<2x512xf32>
    %c0_45 = arith.constant 0 : index
    %c0_46 = arith.constant 0 : index
    %111 = vector.load %arg3[%c0_45, %c0_46] : memref<128x512xf32, #tpu.memory_space<vmem>>, vector<128x512xf32>
    %cst_47 = arith.constant dense<0.000000e+00> : vector<2x512xf32>
    %112 = tpu.matmul %106, %111, %cst_47 {dimension_numbers = #tpu.dot_dimension_numbers<[1], [0], [0], [1], [0, 0, 1, 1], [], []>} : vector<2x128xf32>, vector<128x512xf32>, vector<2x512xf32> -> vector<2x512xf32>
    %113 = arith.addf %110, %112 : vector<2x512xf32>
    %c0_48 = arith.constant 0 : index
    %c0_49 = arith.constant 0 : index
    %114 = vector.load %arg4[%c0_48, %c0_49] : memref<1x512xf32, #tpu.memory_space<vmem>>, vector<1x512xf32>
    %115 = vector.broadcast %114 : vector<1x512xf32> to vector<2x512xf32>
    %116 = arith.addf %113, %115 : vector<2x512xf32>
    %117 = vector.extract_strided_slice %116 {offsets = [0, 0], sizes = [2, 128], strides = [1, 1]} : vector<2x512xf32> to vector<2x128xf32>
    %118 = arith.negf %117 : vector<2x128xf32>
    %119 = math.exp %118 : vector<2x128xf32>
    %cst_50 = arith.constant 1.000000e+00 : f32
    %120 = vector.broadcast %cst_50 : f32 to vector<2x128xf32>
    %121 = arith.addf %120, %119 : vector<2x128xf32>
    %122 = arith.divf %120, %121 : vector<2x128xf32>
    %123 = vector.extract_strided_slice %116 {offsets = [0, 128], sizes = [2, 128], strides = [1, 1]} : vector<2x512xf32> to vector<2x128xf32>
    %124 = arith.negf %123 : vector<2x128xf32>
    %125 = math.exp %124 : vector<2x128xf32>
    %cst_51 = arith.constant 1.000000e+00 : f32
    %126 = vector.broadcast %cst_51 : f32 to vector<2x128xf32>
    %127 = arith.addf %126, %125 : vector<2x128xf32>
    %128 = arith.divf %126, %127 : vector<2x128xf32>
    %129 = vector.extract_strided_slice %116 {offsets = [0, 256], sizes = [2, 128], strides = [1, 1]} : vector<2x512xf32> to vector<2x128xf32>
    %130 = math.tanh %129 : vector<2x128xf32>
    %131 = vector.extract_strided_slice %116 {offsets = [0, 384], sizes = [2, 128], strides = [1, 1]} : vector<2x512xf32> to vector<2x128xf32>
    %132 = arith.negf %131 : vector<2x128xf32>
    %133 = math.exp %132 : vector<2x128xf32>
    %cst_52 = arith.constant 1.000000e+00 : f32
    %134 = vector.broadcast %cst_52 : f32 to vector<2x128xf32>
    %135 = arith.addf %134, %133 : vector<2x128xf32>
    %136 = arith.divf %134, %135 : vector<2x128xf32>
    %137 = arith.mulf %128, %104 : vector<2x128xf32>
    %138 = arith.mulf %122, %130 : vector<2x128xf32>
    %139 = arith.addf %137, %138 : vector<2x128xf32>
    %140 = math.tanh %139 : vector<2x128xf32>
    %141 = arith.mulf %136, %140 : vector<2x128xf32>
    %c4 = arith.constant 4 : index
    %c0_53 = arith.constant 0 : index
    %c0_54 = arith.constant 0 : index
    %142 = vector.load %arg0[%c4, %c0_53, %c0_54] : memref<8x2x4xf32, #tpu.memory_space<vmem>>, vector<1x2x4xf32>
    %143 = vector.shape_cast %142 : vector<1x2x4xf32> to vector<2x4xf32>
    %c0_55 = arith.constant 0 : index
    %c0_56 = arith.constant 0 : index
    %144 = vector.load %arg2[%c0_55, %c0_56] : memref<4x512xf32, #tpu.memory_space<vmem>>, vector<4x512xf32>
    %cst_57 = arith.constant dense<0.000000e+00> : vector<2x512xf32>
    %145 = tpu.matmul %143, %144, %cst_57 {dimension_numbers = #tpu.dot_dimension_numbers<[1], [0], [0], [1], [0, 0, 1, 1], [], []>} : vector<2x4xf32>, vector<4x512xf32>, vector<2x512xf32> -> vector<2x512xf32>
    %c0_58 = arith.constant 0 : index
    %c0_59 = arith.constant 0 : index
    %146 = vector.load %arg3[%c0_58, %c0_59] : memref<128x512xf32, #tpu.memory_space<vmem>>, vector<128x512xf32>
    %cst_60 = arith.constant dense<0.000000e+00> : vector<2x512xf32>
    %147 = tpu.matmul %141, %146, %cst_60 {dimension_numbers = #tpu.dot_dimension_numbers<[1], [0], [0], [1], [0, 0, 1, 1], [], []>} : vector<2x128xf32>, vector<128x512xf32>, vector<2x512xf32> -> vector<2x512xf32>
    %148 = arith.addf %145, %147 : vector<2x512xf32>
    %c0_61 = arith.constant 0 : index
    %c0_62 = arith.constant 0 : index
    %149 = vector.load %arg4[%c0_61, %c0_62] : memref<1x512xf32, #tpu.memory_space<vmem>>, vector<1x512xf32>
    %150 = vector.broadcast %149 : vector<1x512xf32> to vector<2x512xf32>
    %151 = arith.addf %148, %150 : vector<2x512xf32>
    %152 = vector.extract_strided_slice %151 {offsets = [0, 0], sizes = [2, 128], strides = [1, 1]} : vector<2x512xf32> to vector<2x128xf32>
    %153 = arith.negf %152 : vector<2x128xf32>
    %154 = math.exp %153 : vector<2x128xf32>
    %cst_63 = arith.constant 1.000000e+00 : f32
    %155 = vector.broadcast %cst_63 : f32 to vector<2x128xf32>
    %156 = arith.addf %155, %154 : vector<2x128xf32>
    %157 = arith.divf %155, %156 : vector<2x128xf32>
    %158 = vector.extract_strided_slice %151 {offsets = [0, 128], sizes = [2, 128], strides = [1, 1]} : vector<2x512xf32> to vector<2x128xf32>
    %159 = arith.negf %158 : vector<2x128xf32>
    %160 = math.exp %159 : vector<2x128xf32>
    %cst_64 = arith.constant 1.000000e+00 : f32
    %161 = vector.broadcast %cst_64 : f32 to vector<2x128xf32>
    %162 = arith.addf %161, %160 : vector<2x128xf32>
    %163 = arith.divf %161, %162 : vector<2x128xf32>
    %164 = vector.extract_strided_slice %151 {offsets = [0, 256], sizes = [2, 128], strides = [1, 1]} : vector<2x512xf32> to vector<2x128xf32>
    %165 = math.tanh %164 : vector<2x128xf32>
    %166 = vector.extract_strided_slice %151 {offsets = [0, 384], sizes = [2, 128], strides = [1, 1]} : vector<2x512xf32> to vector<2x128xf32>
    %167 = arith.negf %166 : vector<2x128xf32>
    %168 = math.exp %167 : vector<2x128xf32>
    %cst_65 = arith.constant 1.000000e+00 : f32
    %169 = vector.broadcast %cst_65 : f32 to vector<2x128xf32>
    %170 = arith.addf %169, %168 : vector<2x128xf32>
    %171 = arith.divf %169, %170 : vector<2x128xf32>
    %172 = arith.mulf %163, %139 : vector<2x128xf32>
    %173 = arith.mulf %157, %165 : vector<2x128xf32>
    %174 = arith.addf %172, %173 : vector<2x128xf32>
    %175 = math.tanh %174 : vector<2x128xf32>
    %176 = arith.mulf %171, %175 : vector<2x128xf32>
    %c5 = arith.constant 5 : index
    %c0_66 = arith.constant 0 : index
    %c0_67 = arith.constant 0 : index
    %177 = vector.load %arg0[%c5, %c0_66, %c0_67] : memref<8x2x4xf32, #tpu.memory_space<vmem>>, vector<1x2x4xf32>
    %178 = vector.shape_cast %177 : vector<1x2x4xf32> to vector<2x4xf32>
    %c0_68 = arith.constant 0 : index
    %c0_69 = arith.constant 0 : index
    %179 = vector.load %arg2[%c0_68, %c0_69] : memref<4x512xf32, #tpu.memory_space<vmem>>, vector<4x512xf32>
    %cst_70 = arith.constant dense<0.000000e+00> : vector<2x512xf32>
    %180 = tpu.matmul %178, %179, %cst_70 {dimension_numbers = #tpu.dot_dimension_numbers<[1], [0], [0], [1], [0, 0, 1, 1], [], []>} : vector<2x4xf32>, vector<4x512xf32>, vector<2x512xf32> -> vector<2x512xf32>
    %c0_71 = arith.constant 0 : index
    %c0_72 = arith.constant 0 : index
    %181 = vector.load %arg3[%c0_71, %c0_72] : memref<128x512xf32, #tpu.memory_space<vmem>>, vector<128x512xf32>
    %cst_73 = arith.constant dense<0.000000e+00> : vector<2x512xf32>
    %182 = tpu.matmul %176, %181, %cst_73 {dimension_numbers = #tpu.dot_dimension_numbers<[1], [0], [0], [1], [0, 0, 1, 1], [], []>} : vector<2x128xf32>, vector<128x512xf32>, vector<2x512xf32> -> vector<2x512xf32>
    %183 = arith.addf %180, %182 : vector<2x512xf32>
    %c0_74 = arith.constant 0 : index
    %c0_75 = arith.constant 0 : index
    %184 = vector.load %arg4[%c0_74, %c0_75] : memref<1x512xf32, #tpu.memory_space<vmem>>, vector<1x512xf32>
    %185 = vector.broadcast %184 : vector<1x512xf32> to vector<2x512xf32>
    %186 = arith.addf %183, %185 : vector<2x512xf32>
    %187 = vector.extract_strided_slice %186 {offsets = [0, 0], sizes = [2, 128], strides = [1, 1]} : vector<2x512xf32> to vector<2x128xf32>
    %188 = arith.negf %187 : vector<2x128xf32>
    %189 = math.exp %188 : vector<2x128xf32>
    %cst_76 = arith.constant 1.000000e+00 : f32
    %190 = vector.broadcast %cst_76 : f32 to vector<2x128xf32>
    %191 = arith.addf %190, %189 : vector<2x128xf32>
    %192 = arith.divf %190, %191 : vector<2x128xf32>
    %193 = vector.extract_strided_slice %186 {offsets = [0, 128], sizes = [2, 128], strides = [1, 1]} : vector<2x512xf32> to vector<2x128xf32>
    %194 = arith.negf %193 : vector<2x128xf32>
    %195 = math.exp %194 : vector<2x128xf32>
    %cst_77 = arith.constant 1.000000e+00 : f32
    %196 = vector.broadcast %cst_77 : f32 to vector<2x128xf32>
    %197 = arith.addf %196, %195 : vector<2x128xf32>
    %198 = arith.divf %196, %197 : vector<2x128xf32>
    %199 = vector.extract_strided_slice %186 {offsets = [0, 256], sizes = [2, 128], strides = [1, 1]} : vector<2x512xf32> to vector<2x128xf32>
    %200 = math.tanh %199 : vector<2x128xf32>
    %201 = vector.extract_strided_slice %186 {offsets = [0, 384], sizes = [2, 128], strides = [1, 1]} : vector<2x512xf32> to vector<2x128xf32>
    %202 = arith.negf %201 : vector<2x128xf32>
    %203 = math.exp %202 : vector<2x128xf32>
    %cst_78 = arith.constant 1.000000e+00 : f32
    %204 = vector.broadcast %cst_78 : f32 to vector<2x128xf32>
    %205 = arith.addf %204, %203 : vector<2x128xf32>
    %206 = arith.divf %204, %205 : vector<2x128xf32>
    %207 = arith.mulf %198, %174 : vector<2x128xf32>
    %208 = arith.mulf %192, %200 : vector<2x128xf32>
    %209 = arith.addf %207, %208 : vector<2x128xf32>
    %210 = math.tanh %209 : vector<2x128xf32>
    %211 = arith.mulf %206, %210 : vector<2x128xf32>
    %c6 = arith.constant 6 : index
    %c0_79 = arith.constant 0 : index
    %c0_80 = arith.constant 0 : index
    %212 = vector.load %arg0[%c6, %c0_79, %c0_80] : memref<8x2x4xf32, #tpu.memory_space<vmem>>, vector<1x2x4xf32>
    %213 = vector.shape_cast %212 : vector<1x2x4xf32> to vector<2x4xf32>
    %c0_81 = arith.constant 0 : index
    %c0_82 = arith.constant 0 : index
    %214 = vector.load %arg2[%c0_81, %c0_82] : memref<4x512xf32, #tpu.memory_space<vmem>>, vector<4x512xf32>
    %cst_83 = arith.constant dense<0.000000e+00> : vector<2x512xf32>
    %215 = tpu.matmul %213, %214, %cst_83 {dimension_numbers = #tpu.dot_dimension_numbers<[1], [0], [0], [1], [0, 0, 1, 1], [], []>} : vector<2x4xf32>, vector<4x512xf32>, vector<2x512xf32> -> vector<2x512xf32>
    %c0_84 = arith.constant 0 : index
    %c0_85 = arith.constant 0 : index
    %216 = vector.load %arg3[%c0_84, %c0_85] : memref<128x512xf32, #tpu.memory_space<vmem>>, vector<128x512xf32>
    %cst_86 = arith.constant dense<0.000000e+00> : vector<2x512xf32>
    %217 = tpu.matmul %211, %216, %cst_86 {dimension_numbers = #tpu.dot_dimension_numbers<[1], [0], [0], [1], [0, 0, 1, 1], [], []>} : vector<2x128xf32>, vector<128x512xf32>, vector<2x512xf32> -> vector<2x512xf32>
    %218 = arith.addf %215, %217 : vector<2x512xf32>
    %c0_87 = arith.constant 0 : index
    %c0_88 = arith.constant 0 : index
    %219 = vector.load %arg4[%c0_87, %c0_88] : memref<1x512xf32, #tpu.memory_space<vmem>>, vector<1x512xf32>
    %220 = vector.broadcast %219 : vector<1x512xf32> to vector<2x512xf32>
    %221 = arith.addf %218, %220 : vector<2x512xf32>
    %222 = vector.extract_strided_slice %221 {offsets = [0, 0], sizes = [2, 128], strides = [1, 1]} : vector<2x512xf32> to vector<2x128xf32>
    %223 = arith.negf %222 : vector<2x128xf32>
    %224 = math.exp %223 : vector<2x128xf32>
    %cst_89 = arith.constant 1.000000e+00 : f32
    %225 = vector.broadcast %cst_89 : f32 to vector<2x128xf32>
    %226 = arith.addf %225, %224 : vector<2x128xf32>
    %227 = arith.divf %225, %226 : vector<2x128xf32>
    %228 = vector.extract_strided_slice %221 {offsets = [0, 128], sizes = [2, 128], strides = [1, 1]} : vector<2x512xf32> to vector<2x128xf32>
    %229 = arith.negf %228 : vector<2x128xf32>
    %230 = math.exp %229 : vector<2x128xf32>
    %cst_90 = arith.constant 1.000000e+00 : f32
    %231 = vector.broadcast %cst_90 : f32 to vector<2x128xf32>
    %232 = arith.addf %231, %230 : vector<2x128xf32>
    %233 = arith.divf %231, %232 : vector<2x128xf32>
    %234 = vector.extract_strided_slice %221 {offsets = [0, 256], sizes = [2, 128], strides = [1, 1]} : vector<2x512xf32> to vector<2x128xf32>
    %235 = math.tanh %234 : vector<2x128xf32>
    %236 = vector.extract_strided_slice %221 {offsets = [0, 384], sizes = [2, 128], strides = [1, 1]} : vector<2x512xf32> to vector<2x128xf32>
    %237 = arith.negf %236 : vector<2x128xf32>
    %238 = math.exp %237 : vector<2x128xf32>
    %cst_91 = arith.constant 1.000000e+00 : f32
    %239 = vector.broadcast %cst_91 : f32 to vector<2x128xf32>
    %240 = arith.addf %239, %238 : vector<2x128xf32>
    %241 = arith.divf %239, %240 : vector<2x128xf32>
    %242 = arith.mulf %233, %209 : vector<2x128xf32>
    %243 = arith.mulf %227, %235 : vector<2x128xf32>
    %244 = arith.addf %242, %243 : vector<2x128xf32>
    %245 = math.tanh %244 : vector<2x128xf32>
    %246 = arith.mulf %241, %245 : vector<2x128xf32>
    %c7 = arith.constant 7 : index
    %c0_92 = arith.constant 0 : index
    %c0_93 = arith.constant 0 : index
    %247 = vector.load %arg0[%c7, %c0_92, %c0_93] : memref<8x2x4xf32, #tpu.memory_space<vmem>>, vector<1x2x4xf32>
    %248 = vector.shape_cast %247 : vector<1x2x4xf32> to vector<2x4xf32>
    %c0_94 = arith.constant 0 : index
    %c0_95 = arith.constant 0 : index
    %249 = vector.load %arg2[%c0_94, %c0_95] : memref<4x512xf32, #tpu.memory_space<vmem>>, vector<4x512xf32>
    %cst_96 = arith.constant dense<0.000000e+00> : vector<2x512xf32>
    %250 = tpu.matmul %248, %249, %cst_96 {dimension_numbers = #tpu.dot_dimension_numbers<[1], [0], [0], [1], [0, 0, 1, 1], [], []>} : vector<2x4xf32>, vector<4x512xf32>, vector<2x512xf32> -> vector<2x512xf32>
    %c0_97 = arith.constant 0 : index
    %c0_98 = arith.constant 0 : index
    %251 = vector.load %arg3[%c0_97, %c0_98] : memref<128x512xf32, #tpu.memory_space<vmem>>, vector<128x512xf32>
    %cst_99 = arith.constant dense<0.000000e+00> : vector<2x512xf32>
    %252 = tpu.matmul %246, %251, %cst_99 {dimension_numbers = #tpu.dot_dimension_numbers<[1], [0], [0], [1], [0, 0, 1, 1], [], []>} : vector<2x128xf32>, vector<128x512xf32>, vector<2x512xf32> -> vector<2x512xf32>
    %253 = arith.addf %250, %252 : vector<2x512xf32>
    %c0_100 = arith.constant 0 : index
    %c0_101 = arith.constant 0 : index
    %254 = vector.load %arg4[%c0_100, %c0_101] : memref<1x512xf32, #tpu.memory_space<vmem>>, vector<1x512xf32>
    %255 = vector.broadcast %254 : vector<1x512xf32> to vector<2x512xf32>
    %256 = arith.addf %253, %255 : vector<2x512xf32>
    %257 = vector.extract_strided_slice %256 {offsets = [0, 0], sizes = [2, 128], strides = [1, 1]} : vector<2x512xf32> to vector<2x128xf32>
    %258 = arith.negf %257 : vector<2x128xf32>
    %259 = math.exp %258 : vector<2x128xf32>
    %cst_102 = arith.constant 1.000000e+00 : f32
    %260 = vector.broadcast %cst_102 : f32 to vector<2x128xf32>
    %261 = arith.addf %260, %259 : vector<2x128xf32>
    %262 = arith.divf %260, %261 : vector<2x128xf32>
    %263 = vector.extract_strided_slice %256 {offsets = [0, 128], sizes = [2, 128], strides = [1, 1]} : vector<2x512xf32> to vector<2x128xf32>
    %264 = arith.negf %263 : vector<2x128xf32>
    %265 = math.exp %264 : vector<2x128xf32>
    %cst_103 = arith.constant 1.000000e+00 : f32
    %266 = vector.broadcast %cst_103 : f32 to vector<2x128xf32>
    %267 = arith.addf %266, %265 : vector<2x128xf32>
    %268 = arith.divf %266, %267 : vector<2x128xf32>
    %269 = vector.extract_strided_slice %256 {offsets = [0, 256], sizes = [2, 128], strides = [1, 1]} : vector<2x512xf32> to vector<2x128xf32>
    %270 = math.tanh %269 : vector<2x128xf32>
    %271 = vector.extract_strided_slice %256 {offsets = [0, 384], sizes = [2, 128], strides = [1, 1]} : vector<2x512xf32> to vector<2x128xf32>
    %272 = arith.negf %271 : vector<2x128xf32>
    %273 = math.exp %272 : vector<2x128xf32>
    %cst_104 = arith.constant 1.000000e+00 : f32
    %274 = vector.broadcast %cst_104 : f32 to vector<2x128xf32>
    %275 = arith.addf %274, %273 : vector<2x128xf32>
    %276 = arith.divf %274, %275 : vector<2x128xf32>
    %277 = arith.mulf %268, %244 : vector<2x128xf32>
    %278 = arith.mulf %262, %270 : vector<2x128xf32>
    %279 = arith.addf %277, %278 : vector<2x128xf32>
    %280 = math.tanh %279 : vector<2x128xf32>
    %281 = arith.mulf %276, %280 : vector<2x128xf32>
    %c0_105 = arith.constant 0 : index
    %c0_106 = arith.constant 0 : index
    %282 = vector.load %arg5[%c0_105, %c0_106] : memref<128x32xf32, #tpu.memory_space<vmem>>, vector<128x32xf32>
    %cst_107 = arith.constant dense<0.000000e+00> : vector<2x32xf32>
    %283 = tpu.matmul %281, %282, %cst_107 {dimension_numbers = #tpu.dot_dimension_numbers<[1], [0], [0], [1], [0, 0, 1, 1], [], []>} : vector<2x128xf32>, vector<128x32xf32>, vector<2x32xf32> -> vector<2x32xf32>
    %c0_108 = arith.constant 0 : index
    %c0_109 = arith.constant 0 : index
    %284 = vector.load %arg6[%c0_108, %c0_109] : memref<1x32xf32, #tpu.memory_space<vmem>>, vector<1x32xf32>
    %285 = vector.broadcast %284 : vector<1x32xf32> to vector<2x32xf32>
    %286 = arith.addf %283, %285 : vector<2x32xf32>
    %c0_110 = arith.constant 0 : index
    %c0_111 = arith.constant 0 : index
    %287 = vector.load %arg7[%c0_110, %c0_111] : memref<32x512xf32, #tpu.memory_space<vmem>>, vector<32x512xf32>
    %cst_112 = arith.constant dense<0.000000e+00> : vector<2x512xf32>
    %288 = tpu.matmul %286, %287, %cst_112 {dimension_numbers = #tpu.dot_dimension_numbers<[1], [0], [0], [1], [0, 0, 1, 1], [], []>} : vector<2x32xf32>, vector<32x512xf32>, vector<2x512xf32> -> vector<2x512xf32>
    %c0_113 = arith.constant 0 : index
    %c0_114 = arith.constant 0 : index
    %289 = vector.load %arg9[%c0_113, %c0_114] : memref<1x512xf32, #tpu.memory_space<vmem>>, vector<1x512xf32>
    %290 = vector.broadcast %289 : vector<1x512xf32> to vector<2x512xf32>
    %291 = arith.addf %288, %290 : vector<2x512xf32>
    %cst_115 = arith.constant 0.000000e+00 : f32
    %292 = vector.broadcast %cst_115 : f32 to vector<2x128xf32>
    %cst_116 = arith.constant 0.000000e+00 : f32
    %293 = vector.broadcast %cst_116 : f32 to vector<2x128xf32>
    %c0_117 = arith.constant 0 : index
    %c0_118 = arith.constant 0 : index
    %294 = vector.load %arg8[%c0_117, %c0_118] : memref<128x512xf32, #tpu.memory_space<vmem>>, vector<128x512xf32>
    %cst_119 = arith.constant dense<0.000000e+00> : vector<2x512xf32>
    %295 = tpu.matmul %292, %294, %cst_119 {dimension_numbers = #tpu.dot_dimension_numbers<[1], [0], [0], [1], [0, 0, 1, 1], [], []>} : vector<2x128xf32>, vector<128x512xf32>, vector<2x512xf32> -> vector<2x512xf32>
    %296 = arith.addf %291, %295 : vector<2x512xf32>
    %297 = vector.extract_strided_slice %296 {offsets = [0, 0], sizes = [2, 128], strides = [1, 1]} : vector<2x512xf32> to vector<2x128xf32>
    %298 = arith.negf %297 : vector<2x128xf32>
    %299 = math.exp %298 : vector<2x128xf32>
    %cst_120 = arith.constant 1.000000e+00 : f32
    %300 = vector.broadcast %cst_120 : f32 to vector<2x128xf32>
    %301 = arith.addf %300, %299 : vector<2x128xf32>
    %302 = arith.divf %300, %301 : vector<2x128xf32>
    %303 = vector.extract_strided_slice %296 {offsets = [0, 128], sizes = [2, 128], strides = [1, 1]} : vector<2x512xf32> to vector<2x128xf32>
    %304 = arith.negf %303 : vector<2x128xf32>
    %305 = math.exp %304 : vector<2x128xf32>
    %cst_121 = arith.constant 1.000000e+00 : f32
    %306 = vector.broadcast %cst_121 : f32 to vector<2x128xf32>
    %307 = arith.addf %306, %305 : vector<2x128xf32>
    %308 = arith.divf %306, %307 : vector<2x128xf32>
    %309 = vector.extract_strided_slice %296 {offsets = [0, 256], sizes = [2, 128], strides = [1, 1]} : vector<2x512xf32> to vector<2x128xf32>
    %310 = math.tanh %309 : vector<2x128xf32>
    %311 = vector.extract_strided_slice %296 {offsets = [0, 384], sizes = [2, 128], strides = [1, 1]} : vector<2x512xf32> to vector<2x128xf32>
    %312 = arith.negf %311 : vector<2x128xf32>
    %313 = math.exp %312 : vector<2x128xf32>
    %cst_122 = arith.constant 1.000000e+00 : f32
    %314 = vector.broadcast %cst_122 : f32 to vector<2x128xf32>
    %315 = arith.addf %314, %313 : vector<2x128xf32>
    %316 = arith.divf %314, %315 : vector<2x128xf32>
    %317 = arith.mulf %308, %293 : vector<2x128xf32>
    %318 = arith.mulf %302, %310 : vector<2x128xf32>
    %319 = arith.addf %317, %318 : vector<2x128xf32>
    %320 = math.tanh %319 : vector<2x128xf32>
    %321 = arith.mulf %316, %320 : vector<2x128xf32>
    %c0_123 = arith.constant 0 : index
    %c0_124 = arith.constant 0 : index
    %322 = vector.load %arg21[%c0_123, %c0_124] : memref<16x128xf32, #tpu.memory_space<vmem>>, vector<2x128xf32>
    tpu.vector_store %arg21[%c0_123, %c0_124], %321 {strides = array<i32>} : memref<16x128xf32, #tpu.memory_space<vmem>>, vector<2x128xf32>,
    %c0_125 = arith.constant 0 : index
    %c0_126 = arith.constant 0 : index
    %323 = vector.load %arg8[%c0_125, %c0_126] : memref<128x512xf32, #tpu.memory_space<vmem>>, vector<128x512xf32>
    %cst_127 = arith.constant dense<0.000000e+00> : vector<2x512xf32>
    %324 = tpu.matmul %321, %323, %cst_127 {dimension_numbers = #tpu.dot_dimension_numbers<[1], [0], [0], [1], [0, 0, 1, 1], [], []>} : vector<2x128xf32>, vector<128x512xf32>, vector<2x512xf32> -> vector<2x512xf32>
    %325 = arith.addf %291, %324 : vector<2x512xf32>
    %326 = vector.extract_strided_slice %325 {offsets = [0, 0], sizes = [2, 128], strides = [1, 1]} : vector<2x512xf32> to vector<2x128xf32>
    %327 = arith.negf %326 : vector<2x128xf32>
    %328 = math.exp %327 : vector<2x128xf32>
    %cst_128 = arith.constant 1.000000e+00 : f32
    %329 = vector.broadcast %cst_128 : f32 to vector<2x128xf32>
    %330 = arith.addf %329, %328 : vector<2x128xf32>
    %331 = arith.divf %329, %330 : vector<2x128xf32>
    %332 = vector.extract_strided_slice %325 {offsets = [0, 128], sizes = [2, 128], strides = [1, 1]} : vector<2x512xf32> to vector<2x128xf32>
    %333 = arith.negf %332 : vector<2x128xf32>
    %334 = math.exp %333 : vector<2x128xf32>
    %cst_129 = arith.constant 1.000000e+00 : f32
    %335 = vector.broadcast %cst_129 : f32 to vector<2x128xf32>
    %336 = arith.addf %335, %334 : vector<2x128xf32>
    %337 = arith.divf %335, %336 : vector<2x128xf32>
    %338 = vector.extract_strided_slice %325 {offsets = [0, 256], sizes = [2, 128], strides = [1, 1]} : vector<2x512xf32> to vector<2x128xf32>
    %339 = math.tanh %338 : vector<2x128xf32>
    %340 = vector.extract_strided_slice %325 {offsets = [0, 384], sizes = [2, 128], strides = [1, 1]} : vector<2x512xf32> to vector<2x128xf32>
    %341 = arith.negf %340 : vector<2x128xf32>
    %342 = math.exp %341 : vector<2x128xf32>
    %cst_130 = arith.constant 1.000000e+00 : f32
    %343 = vector.broadcast %cst_130 : f32 to vector<2x128xf32>
    %344 = arith.addf %343, %342 : vector<2x128xf32>
    %345 = arith.divf %343, %344 : vector<2x128xf32>
    %346 = arith.mulf %337, %319 : vector<2x128xf32>
    %347 = arith.mulf %331, %339 : vector<2x128xf32>
    %348 = arith.addf %346, %347 : vector<2x128xf32>
    %349 = math.tanh %348 : vector<2x128xf32>
    %350 = arith.mulf %345, %349 : vector<2x128xf32>
    %c2_131 = arith.constant 2 : index
    %c0_132 = arith.constant 0 : index
    %351 = vector.load %arg21[%c2_131, %c0_132] : memref<16x128xf32, #tpu.memory_space<vmem>>, vector<2x128xf32>
    tpu.vector_store %arg21[%c2_131, %c0_132], %350 {strides = array<i32>} : memref<16x128xf32, #tpu.memory_space<vmem>>, vector<2x128xf32>,
    %c0_133 = arith.constant 0 : index
    %c0_134 = arith.constant 0 : index
    %352 = vector.load %arg8[%c0_133, %c0_134] : memref<128x512xf32, #tpu.memory_space<vmem>>, vector<128x512xf32>
    %cst_135 = arith.constant dense<0.000000e+00> : vector<2x512xf32>
    %353 = tpu.matmul %350, %352, %cst_135 {dimension_numbers = #tpu.dot_dimension_numbers<[1], [0], [0], [1], [0, 0, 1, 1], [], []>} : vector<2x128xf32>, vector<128x512xf32>, vector<2x512xf32> -> vector<2x512xf32>
    %354 = arith.addf %291, %353 : vector<2x512xf32>
    %355 = vector.extract_strided_slice %354 {offsets = [0, 0], sizes = [2, 128], strides = [1, 1]} : vector<2x512xf32> to vector<2x128xf32>
    %356 = arith.negf %355 : vector<2x128xf32>
    %357 = math.exp %356 : vector<2x128xf32>
    %cst_136 = arith.constant 1.000000e+00 : f32
    %358 = vector.broadcast %cst_136 : f32 to vector<2x128xf32>
    %359 = arith.addf %358, %357 : vector<2x128xf32>
    %360 = arith.divf %358, %359 : vector<2x128xf32>
    %361 = vector.extract_strided_slice %354 {offsets = [0, 128], sizes = [2, 128], strides = [1, 1]} : vector<2x512xf32> to vector<2x128xf32>
    %362 = arith.negf %361 : vector<2x128xf32>
    %363 = math.exp %362 : vector<2x128xf32>
    %cst_137 = arith.constant 1.000000e+00 : f32
    %364 = vector.broadcast %cst_137 : f32 to vector<2x128xf32>
    %365 = arith.addf %364, %363 : vector<2x128xf32>
    %366 = arith.divf %364, %365 : vector<2x128xf32>
    %367 = vector.extract_strided_slice %354 {offsets = [0, 256], sizes = [2, 128], strides = [1, 1]} : vector<2x512xf32> to vector<2x128xf32>
    %368 = math.tanh %367 : vector<2x128xf32>
    %369 = vector.extract_strided_slice %354 {offsets = [0, 384], sizes = [2, 128], strides = [1, 1]} : vector<2x512xf32> to vector<2x128xf32>
    %370 = arith.negf %369 : vector<2x128xf32>
    %371 = math.exp %370 : vector<2x128xf32>
    %cst_138 = arith.constant 1.000000e+00 : f32
    %372 = vector.broadcast %cst_138 : f32 to vector<2x128xf32>
    %373 = arith.addf %372, %371 : vector<2x128xf32>
    %374 = arith.divf %372, %373 : vector<2x128xf32>
    %375 = arith.mulf %366, %348 : vector<2x128xf32>
    %376 = arith.mulf %360, %368 : vector<2x128xf32>
    %377 = arith.addf %375, %376 : vector<2x128xf32>
    %378 = math.tanh %377 : vector<2x128xf32>
    %379 = arith.mulf %374, %378 : vector<2x128xf32>
    %c4_139 = arith.constant 4 : index
    %c0_140 = arith.constant 0 : index
    %380 = vector.load %arg21[%c4_139, %c0_140] : memref<16x128xf32, #tpu.memory_space<vmem>>, vector<2x128xf32>
    tpu.vector_store %arg21[%c4_139, %c0_140], %379 {strides = array<i32>} : memref<16x128xf32, #tpu.memory_space<vmem>>, vector<2x128xf32>,
    %c0_141 = arith.constant 0 : index
    %c0_142 = arith.constant 0 : index
    %381 = vector.load %arg8[%c0_141, %c0_142] : memref<128x512xf32, #tpu.memory_space<vmem>>, vector<128x512xf32>
    %cst_143 = arith.constant dense<0.000000e+00> : vector<2x512xf32>
    %382 = tpu.matmul %379, %381, %cst_143 {dimension_numbers = #tpu.dot_dimension_numbers<[1], [0], [0], [1], [0, 0, 1, 1], [], []>} : vector<2x128xf32>, vector<128x512xf32>, vector<2x512xf32> -> vector<2x512xf32>
    %383 = arith.addf %291, %382 : vector<2x512xf32>
    %384 = vector.extract_strided_slice %383 {offsets = [0, 0], sizes = [2, 128], strides = [1, 1]} : vector<2x512xf32> to vector<2x128xf32>
    %385 = arith.negf %384 : vector<2x128xf32>
    %386 = math.exp %385 : vector<2x128xf32>
    %cst_144 = arith.constant 1.000000e+00 : f32
    %387 = vector.broadcast %cst_144 : f32 to vector<2x128xf32>
    %388 = arith.addf %387, %386 : vector<2x128xf32>
    %389 = arith.divf %387, %388 : vector<2x128xf32>
    %390 = vector.extract_strided_slice %383 {offsets = [0, 128], sizes = [2, 128], strides = [1, 1]} : vector<2x512xf32> to vector<2x128xf32>
    %391 = arith.negf %390 : vector<2x128xf32>
    %392 = math.exp %391 : vector<2x128xf32>
    %cst_145 = arith.constant 1.000000e+00 : f32
    %393 = vector.broadcast %cst_145 : f32 to vector<2x128xf32>
    %394 = arith.addf %393, %392 : vector<2x128xf32>
    %395 = arith.divf %393, %394 : vector<2x128xf32>
    %396 = vector.extract_strided_slice %383 {offsets = [0, 256], sizes = [2, 128], strides = [1, 1]} : vector<2x512xf32> to vector<2x128xf32>
    %397 = math.tanh %396 : vector<2x128xf32>
    %398 = vector.extract_strided_slice %383 {offsets = [0, 384], sizes = [2, 128], strides = [1, 1]} : vector<2x512xf32> to vector<2x128xf32>
    %399 = arith.negf %398 : vector<2x128xf32>
    %400 = math.exp %399 : vector<2x128xf32>
    %cst_146 = arith.constant 1.000000e+00 : f32
    %401 = vector.broadcast %cst_146 : f32 to vector<2x128xf32>
    %402 = arith.addf %401, %400 : vector<2x128xf32>
    %403 = arith.divf %401, %402 : vector<2x128xf32>
    %404 = arith.mulf %395, %377 : vector<2x128xf32>
    %405 = arith.mulf %389, %397 : vector<2x128xf32>
    %406 = arith.addf %404, %405 : vector<2x128xf32>
    %407 = math.tanh %406 : vector<2x128xf32>
    %408 = arith.mulf %403, %407 : vector<2x128xf32>
    %c6_147 = arith.constant 6 : index
    %c0_148 = arith.constant 0 : index
    %409 = vector.load %arg21[%c6_147, %c0_148] : memref<16x128xf32, #tpu.memory_space<vmem>>, vector<2x128xf32>
    tpu.vector_store %arg21[%c6_147, %c0_148], %408 {strides = array<i32>} : memref<16x128xf32, #tpu.memory_space<vmem>>, vector<2x128xf32>,
    %c0_149 = arith.constant 0 : index
    %c0_150 = arith.constant 0 : index
    %410 = vector.load %arg8[%c0_149, %c0_150] : memref<128x512xf32, #tpu.memory_space<vmem>>, vector<128x512xf32>
    %cst_151 = arith.constant dense<0.000000e+00> : vector<2x512xf32>
    %411 = tpu.matmul %408, %410, %cst_151 {dimension_numbers = #tpu.dot_dimension_numbers<[1], [0], [0], [1], [0, 0, 1, 1], [], []>} : vector<2x128xf32>, vector<128x512xf32>, vector<2x512xf32> -> vector<2x512xf32>
    %412 = arith.addf %291, %411 : vector<2x512xf32>
    %413 = vector.extract_strided_slice %412 {offsets = [0, 0], sizes = [2, 128], strides = [1, 1]} : vector<2x512xf32> to vector<2x128xf32>
    %414 = arith.negf %413 : vector<2x128xf32>
    %415 = math.exp %414 : vector<2x128xf32>
    %cst_152 = arith.constant 1.000000e+00 : f32
    %416 = vector.broadcast %cst_152 : f32 to vector<2x128xf32>
    %417 = arith.addf %416, %415 : vector<2x128xf32>
    %418 = arith.divf %416, %417 : vector<2x128xf32>
    %419 = vector.extract_strided_slice %412 {offsets = [0, 128], sizes = [2, 128], strides = [1, 1]} : vector<2x512xf32> to vector<2x128xf32>
    %420 = arith.negf %419 : vector<2x128xf32>
    %421 = math.exp %420 : vector<2x128xf32>
    %cst_153 = arith.constant 1.000000e+00 : f32
    %422 = vector.broadcast %cst_153 : f32 to vector<2x128xf32>
    %423 = arith.addf %422, %421 : vector<2x128xf32>
    %424 = arith.divf %422, %423 : vector<2x128xf32>
    %425 = vector.extract_strided_slice %412 {offsets = [0, 256], sizes = [2, 128], strides = [1, 1]} : vector<2x512xf32> to vector<2x128xf32>
    %426 = math.tanh %425 : vector<2x128xf32>
    %427 = vector.extract_strided_slice %412 {offsets = [0, 384], sizes = [2, 128], strides = [1, 1]} : vector<2x512xf32> to vector<2x128xf32>
    %428 = arith.negf %427 : vector<2x128xf32>
    %429 = math.exp %428 : vector<2x128xf32>
    %cst_154 = arith.constant 1.000000e+00 : f32
    %430 = vector.broadcast %cst_154 : f32 to vector<2x128xf32>
    %431 = arith.addf %430, %429 : vector<2x128xf32>
    %432 = arith.divf %430, %431 : vector<2x128xf32>
    %433 = arith.mulf %424, %406 : vector<2x128xf32>
    %434 = arith.mulf %418, %426 : vector<2x128xf32>
    %435 = arith.addf %433, %434 : vector<2x128xf32>
    %436 = math.tanh %435 : vector<2x128xf32>
    %437 = arith.mulf %432, %436 : vector<2x128xf32>
    %c8 = arith.constant 8 : index
    %c0_155 = arith.constant 0 : index
    %438 = vector.load %arg21[%c8, %c0_155] : memref<16x128xf32, #tpu.memory_space<vmem>>, vector<2x128xf32>
    tpu.vector_store %arg21[%c8, %c0_155], %437 {strides = array<i32>} : memref<16x128xf32, #tpu.memory_space<vmem>>, vector<2x128xf32>,
    %c0_156 = arith.constant 0 : index
    %c0_157 = arith.constant 0 : index
    %439 = vector.load %arg8[%c0_156, %c0_157] : memref<128x512xf32, #tpu.memory_space<vmem>>, vector<128x512xf32>
    %cst_158 = arith.constant dense<0.000000e+00> : vector<2x512xf32>
    %440 = tpu.matmul %437, %439, %cst_158 {dimension_numbers = #tpu.dot_dimension_numbers<[1], [0], [0], [1], [0, 0, 1, 1], [], []>} : vector<2x128xf32>, vector<128x512xf32>, vector<2x512xf32> -> vector<2x512xf32>
    %441 = arith.addf %291, %440 : vector<2x512xf32>
    %442 = vector.extract_strided_slice %441 {offsets = [0, 0], sizes = [2, 128], strides = [1, 1]} : vector<2x512xf32> to vector<2x128xf32>
    %443 = arith.negf %442 : vector<2x128xf32>
    %444 = math.exp %443 : vector<2x128xf32>
    %cst_159 = arith.constant 1.000000e+00 : f32
    %445 = vector.broadcast %cst_159 : f32 to vector<2x128xf32>
    %446 = arith.addf %445, %444 : vector<2x128xf32>
    %447 = arith.divf %445, %446 : vector<2x128xf32>
    %448 = vector.extract_strided_slice %441 {offsets = [0, 128], sizes = [2, 128], strides = [1, 1]} : vector<2x512xf32> to vector<2x128xf32>
    %449 = arith.negf %448 : vector<2x128xf32>
    %450 = math.exp %449 : vector<2x128xf32>
    %cst_160 = arith.constant 1.000000e+00 : f32
    %451 = vector.broadcast %cst_160 : f32 to vector<2x128xf32>
    %452 = arith.addf %451, %450 : vector<2x128xf32>
    %453 = arith.divf %451, %452 : vector<2x128xf32>
    %454 = vector.extract_strided_slice %441 {offsets = [0, 256], sizes = [2, 128], strides = [1, 1]} : vector<2x512xf32> to vector<2x128xf32>
    %455 = math.tanh %454 : vector<2x128xf32>
    %456 = vector.extract_strided_slice %441 {offsets = [0, 384], sizes = [2, 128], strides = [1, 1]} : vector<2x512xf32> to vector<2x128xf32>
    %457 = arith.negf %456 : vector<2x128xf32>
    %458 = math.exp %457 : vector<2x128xf32>
    %cst_161 = arith.constant 1.000000e+00 : f32
    %459 = vector.broadcast %cst_161 : f32 to vector<2x128xf32>
    %460 = arith.addf %459, %458 : vector<2x128xf32>
    %461 = arith.divf %459, %460 : vector<2x128xf32>
    %462 = arith.mulf %453, %435 : vector<2x128xf32>
    %463 = arith.mulf %447, %455 : vector<2x128xf32>
    %464 = arith.addf %462, %463 : vector<2x128xf32>
    %465 = math.tanh %464 : vector<2x128xf32>
    %466 = arith.mulf %461, %465 : vector<2x128xf32>
    %c10 = arith.constant 10 : index
    %c0_162 = arith.constant 0 : index
    %467 = vector.load %arg21[%c10, %c0_162] : memref<16x128xf32, #tpu.memory_space<vmem>>, vector<2x128xf32>
    tpu.vector_store %arg21[%c10, %c0_162], %466 {strides = array<i32>} : memref<16x128xf32, #tpu.memory_space<vmem>>, vector<2x128xf32>,
    %c0_163 = arith.constant 0 : index
    %c0_164 = arith.constant 0 : index
    %468 = vector.load %arg8[%c0_163, %c0_164] : memref<128x512xf32, #tpu.memory_space<vmem>>, vector<128x512xf32>
    %cst_165 = arith.constant dense<0.000000e+00> : vector<2x512xf32>
    %469 = tpu.matmul %466, %468, %cst_165 {dimension_numbers = #tpu.dot_dimension_numbers<[1], [0], [0], [1], [0, 0, 1, 1], [], []>} : vector<2x128xf32>, vector<128x512xf32>, vector<2x512xf32> -> vector<2x512xf32>
    %470 = arith.addf %291, %469 : vector<2x512xf32>
    %471 = vector.extract_strided_slice %470 {offsets = [0, 0], sizes = [2, 128], strides = [1, 1]} : vector<2x512xf32> to vector<2x128xf32>
    %472 = arith.negf %471 : vector<2x128xf32>
    %473 = math.exp %472 : vector<2x128xf32>
    %cst_166 = arith.constant 1.000000e+00 : f32
    %474 = vector.broadcast %cst_166 : f32 to vector<2x128xf32>
    %475 = arith.addf %474, %473 : vector<2x128xf32>
    %476 = arith.divf %474, %475 : vector<2x128xf32>
    %477 = vector.extract_strided_slice %470 {offsets = [0, 128], sizes = [2, 128], strides = [1, 1]} : vector<2x512xf32> to vector<2x128xf32>
    %478 = arith.negf %477 : vector<2x128xf32>
    %479 = math.exp %478 : vector<2x128xf32>
    %cst_167 = arith.constant 1.000000e+00 : f32
    %480 = vector.broadcast %cst_167 : f32 to vector<2x128xf32>
    %481 = arith.addf %480, %479 : vector<2x128xf32>
    %482 = arith.divf %480, %481 : vector<2x128xf32>
    %483 = vector.extract_strided_slice %470 {offsets = [0, 256], sizes = [2, 128], strides = [1, 1]} : vector<2x512xf32> to vector<2x128xf32>
    %484 = math.tanh %483 : vector<2x128xf32>
    %485 = vector.extract_strided_slice %470 {offsets = [0, 384], sizes = [2, 128], strides = [1, 1]} : vector<2x512xf32> to vector<2x128xf32>
    %486 = arith.negf %485 : vector<2x128xf32>
    %487 = math.exp %486 : vector<2x128xf32>
    %cst_168 = arith.constant 1.000000e+00 : f32
    %488 = vector.broadcast %cst_168 : f32 to vector<2x128xf32>
    %489 = arith.addf %488, %487 : vector<2x128xf32>
    %490 = arith.divf %488, %489 : vector<2x128xf32>
    %491 = arith.mulf %482, %464 : vector<2x128xf32>
    %492 = arith.mulf %476, %484 : vector<2x128xf32>
    %493 = arith.addf %491, %492 : vector<2x128xf32>
    %494 = math.tanh %493 : vector<2x128xf32>
    %495 = arith.mulf %490, %494 : vector<2x128xf32>
    %c12 = arith.constant 12 : index
    %c0_169 = arith.constant 0 : index
    %496 = vector.load %arg21[%c12, %c0_169] : memref<16x128xf32, #tpu.memory_space<vmem>>, vector<2x128xf32>
    tpu.vector_store %arg21[%c12, %c0_169], %495 {strides = array<i32>} : memref<16x128xf32, #tpu.memory_space<vmem>>, vector<2x128xf32>,
    %c0_170 = arith.constant 0 : index
    %c0_171 = arith.constant 0 : index
    %497 = vector.load %arg8[%c0_170, %c0_171] : memref<128x512xf32, #tpu.memory_space<vmem>>, vector<128x512xf32>
    %cst_172 = arith.constant dense<0.000000e+00> : vector<2x512xf32>
    %498 = tpu.matmul %495, %497, %cst_172 {dimension_numbers = #tpu.dot_dimension_numbers<[1], [0], [0], [1], [0, 0, 1, 1], [], []>} : vector<2x128xf32>, vector<128x512xf32>, vector<2x512xf32> -> vector<2x512xf32>
    %499 = arith.addf %291, %498 : vector<2x512xf32>
    %500 = vector.extract_strided_slice %499 {offsets = [0, 0], sizes = [2, 128], strides = [1, 1]} : vector<2x512xf32> to vector<2x128xf32>
    %501 = arith.negf %500 : vector<2x128xf32>
    %502 = math.exp %501 : vector<2x128xf32>
    %cst_173 = arith.constant 1.000000e+00 : f32
    %503 = vector.broadcast %cst_173 : f32 to vector<2x128xf32>
    %504 = arith.addf %503, %502 : vector<2x128xf32>
    %505 = arith.divf %503, %504 : vector<2x128xf32>
    %506 = vector.extract_strided_slice %499 {offsets = [0, 128], sizes = [2, 128], strides = [1, 1]} : vector<2x512xf32> to vector<2x128xf32>
    %507 = arith.negf %506 : vector<2x128xf32>
    %508 = math.exp %507 : vector<2x128xf32>
    %cst_174 = arith.constant 1.000000e+00 : f32
    %509 = vector.broadcast %cst_174 : f32 to vector<2x128xf32>
    %510 = arith.addf %509, %508 : vector<2x128xf32>
    %511 = arith.divf %509, %510 : vector<2x128xf32>
    %512 = vector.extract_strided_slice %499 {offsets = [0, 256], sizes = [2, 128], strides = [1, 1]} : vector<2x512xf32> to vector<2x128xf32>
    %513 = math.tanh %512 : vector<2x128xf32>
    %514 = vector.extract_strided_slice %499 {offsets = [0, 384], sizes = [2, 128], strides = [1, 1]} : vector<2x512xf32> to vector<2x128xf32>
    %515 = arith.negf %514 : vector<2x128xf32>
    %516 = math.exp %515 : vector<2x128xf32>
    %cst_175 = arith.constant 1.000000e+00 : f32
    %517 = vector.broadcast %cst_175 : f32 to vector<2x128xf32>
    %518 = arith.addf %517, %516 : vector<2x128xf32>
    %519 = arith.divf %517, %518 : vector<2x128xf32>
    %520 = arith.mulf %511, %493 : vector<2x128xf32>
    %521 = arith.mulf %505, %513 : vector<2x128xf32>
    %522 = arith.addf %520, %521 : vector<2x128xf32>
    %523 = math.tanh %522 : vector<2x128xf32>
    %524 = arith.mulf %519, %523 : vector<2x128xf32>
    %c14 = arith.constant 14 : index
    %c0_176 = arith.constant 0 : index
    %525 = vector.load %arg21[%c14, %c0_176] : memref<16x128xf32, #tpu.memory_space<vmem>>, vector<2x128xf32>
    tpu.vector_store %arg21[%c14, %c0_176], %524 {strides = array<i32>} : memref<16x128xf32, #tpu.memory_space<vmem>>, vector<2x128xf32>,
    %c0_177 = arith.constant 0 : index
    %c0_178 = arith.constant 0 : index
    %526 = vector.load %arg21[%c0_177, %c0_178] : memref<16x128xf32, #tpu.memory_space<vmem>>, vector<16x128xf32>
    %c0_179 = arith.constant 0 : index
    %c0_180 = arith.constant 0 : index
    %527 = vector.load %arg10[%c0_179, %c0_180] : memref<128x4xf32, #tpu.memory_space<vmem>>, vector<128x4xf32>
    %cst_181 = arith.constant dense<0.000000e+00> : vector<16x4xf32>
    %528 = tpu.matmul %526, %527, %cst_181 {dimension_numbers = #tpu.dot_dimension_numbers<[1], [0], [0], [1], [0, 0, 1, 1], [], []>} : vector<16x128xf32>, vector<128x4xf32>, vector<16x4xf32> -> vector<16x4xf32>
    %c0_182 = arith.constant 0 : index
    %c0_183 = arith.constant 0 : index
    %529 = vector.load %arg11[%c0_182, %c0_183] : memref<1x4xf32, #tpu.memory_space<vmem>>, vector<1x4xf32>
    %530 = vector.broadcast %529 : vector<1x4xf32> to vector<16x4xf32>
    %531 = arith.addf %528, %530 : vector<16x4xf32>
    %c0_184 = arith.constant 0 : index
    %c0_185 = arith.constant 0 : index
    %532 = vector.load %arg19[%c0_184, %c0_185] : memref<16x4xf32, #tpu.memory_space<vmem>>, vector<16x4xf32>
    tpu.vector_store %arg19[%c0_184, %c0_185], %531 {strides = array<i32>} : memref<16x4xf32, #tpu.memory_space<vmem>>, vector<16x4xf32>,
    %cst_186 = arith.constant dense<0.000000e+00> : vector<2xf32>
    %533 = vector.multi_reduction <add>, %286, %cst_186 [1] : vector<2x32xf32> to vector<2xf32>
    %534 = vector.shape_cast %533 : vector<2xf32> to vector<2x1xf32>
    %cst_187 = arith.constant 3.200000e+01 : f32
    %535 = vector.broadcast %cst_187 : f32 to vector<2x1xf32>
    %536 = arith.divf %534, %535 : vector<2x1xf32>
    %537 = vector.broadcast %536 : vector<2x1xf32> to vector<2x32xf32>
    %538 = arith.subf %286, %537 : vector<2x32xf32>
    %539 = arith.mulf %538, %538 : vector<2x32xf32>
    %cst_188 = arith.constant dense<0.000000e+00> : vector<2xf32>
    %540 = vector.multi_reduction <add>, %539, %cst_188 [1] : vector<2x32xf32> to vector<2xf32>
    %541 = vector.shape_cast %540 : vector<2xf32> to vector<2x1xf32>
    %cst_189 = arith.constant 3.200000e+01 : f32
    %542 = vector.broadcast %cst_189 : f32 to vector<2x1xf32>
    %543 = arith.divf %541, %542 : vector<2x1xf32>
    %544 = vector.broadcast %536 : vector<2x1xf32> to vector<2x32xf32>
    %545 = arith.subf %286, %544 : vector<2x32xf32>
    %cst_190 = arith.constant 9.99999974E-6 : f32
    %546 = vector.broadcast %cst_190 : f32 to vector<2x1xf32>
    %547 = arith.addf %543, %546 : vector<2x1xf32>
    %548 = math.rsqrt %547 : vector<2x1xf32>
    %549 = vector.broadcast %548 : vector<2x1xf32> to vector<2x32xf32>
    %550 = arith.mulf %545, %549 : vector<2x32xf32>
    %c0_191 = arith.constant 0 : index
    %c0_192 = arith.constant 0 : index
    %551 = vector.load %arg12[%c0_191, %c0_192] : memref<1x32xf32, #tpu.memory_space<vmem>>, vector<1x32xf32>
    %552 = vector.broadcast %551 : vector<1x32xf32> to vector<2x32xf32>
    %553 = arith.mulf %550, %552 : vector<2x32xf32>
    %c0_193 = arith.constant 0 : index
    %c0_194 = arith.constant 0 : index
    %554 = vector.load %arg13[%c0_193, %c0_194] : memref<1x32xf32, #tpu.memory_space<vmem>>, vector<1x32xf32>
    %555 = vector.broadcast %554 : vector<1x32xf32> to vector<2x32xf32>
    %556 = arith.addf %553, %555 : vector<2x32xf32>
    %c0_195 = arith.constant 0 : index
    %c0_196 = arith.constant 0 : index
    %557 = vector.load %arg1[%c0_195, %c0_196] : memref<2x32xf32, #tpu.memory_space<vmem>>, vector<2x32xf32>
    %cst_197 = arith.constant 2.000000e-01 : f32
    %558 = vector.broadcast %cst_197 : f32 to vector<2x32xf32>
    %559 = arith.mulf %558, %557 : vector<2x32xf32>
    %560 = arith.addf %556, %559 : vector<2x32xf32>
    %c0_198 = arith.constant 0 : index
    %c0_199 = arith.constant 0 : index
    %561 = vector.load %arg14[%c0_198, %c0_199] : memref<32x128xf32, #tpu.memory_space<vmem>>, vector<32x128xf32>
    %cst_200 = arith.constant dense<0.000000e+00> : vector<2x128xf32>
    %562 = tpu.matmul %560, %561, %cst_200 {dimension_numbers = #tpu.dot_dimension_numbers<[1], [0], [0], [1], [0, 0, 1, 1], [], []>} : vector<2x32xf32>, vector<32x128xf32>, vector<2x128xf32> -> vector<2x128xf32>
    %c0_201 = arith.constant 0 : index
    %c0_202 = arith.constant 0 : index
    %563 = vector.load %arg16[%c0_201, %c0_202] : memref<1x128xf32, #tpu.memory_space<vmem>>, vector<1x128xf32>
    %564 = vector.broadcast %563 : vector<1x128xf32> to vector<2x128xf32>
    %565 = arith.addf %562, %564 : vector<2x128xf32>
    %cst_203 = arith.constant 0.000000e+00 : f32
    %566 = vector.broadcast %cst_203 : f32 to vector<2x32xf32>
    %cst_204 = arith.constant 0.000000e+00 : f32
    %567 = vector.broadcast %cst_204 : f32 to vector<2x32xf32>
    %c0_205 = arith.constant 0 : index
    %c0_206 = arith.constant 0 : index
    %568 = vector.load %arg15[%c0_205, %c0_206] : memref<32x128xf32, #tpu.memory_space<vmem>>, vector<32x128xf32>
    %cst_207 = arith.constant dense<0.000000e+00> : vector<2x128xf32>
    %569 = tpu.matmul %566, %568, %cst_207 {dimension_numbers = #tpu.dot_dimension_numbers<[1], [0], [0], [1], [0, 0, 1, 1], [], []>} : vector<2x32xf32>, vector<32x128xf32>, vector<2x128xf32> -> vector<2x128xf32>
    %570 = arith.addf %565, %569 : vector<2x128xf32>
    %571 = arith.negf %570 : vector<2x128xf32>
    %572 = math.exp %571 : vector<2x128xf32>
    %cst_208 = arith.constant 1.000000e+00 : f32
    %573 = vector.broadcast %cst_208 : f32 to vector<2x128xf32>
    %574 = arith.addf %573, %572 : vector<2x128xf32>
    %575 = arith.divf %573, %574 : vector<2x128xf32>
    %576 = math.tanh %570 : vector<2x128xf32>
    %577 = vector.extract_strided_slice %575 {offsets = [0, 0], sizes = [2, 32], strides = [1, 1]} : vector<2x128xf32> to vector<2x32xf32>
    %578 = vector.extract_strided_slice %575 {offsets = [0, 32], sizes = [2, 32], strides = [1, 1]} : vector<2x128xf32> to vector<2x32xf32>
    %579 = vector.extract_strided_slice %575 {offsets = [0, 96], sizes = [2, 32], strides = [1, 1]} : vector<2x128xf32> to vector<2x32xf32>
    %580 = vector.extract_strided_slice %576 {offsets = [0, 64], sizes = [2, 32], strides = [1, 1]} : vector<2x128xf32> to vector<2x32xf32>
    %581 = arith.mulf %578, %567 : vector<2x32xf32>
    %582 = arith.mulf %577, %580 : vector<2x32xf32>
    %583 = arith.addf %581, %582 : vector<2x32xf32>
    %584 = math.tanh %583 : vector<2x32xf32>
    %585 = arith.mulf %579, %584 : vector<2x32xf32>
    %c0_209 = arith.constant 0 : index
    %c0_210 = arith.constant 0 : index
    %586 = vector.load %arg22[%c0_209, %c0_210] : memref<16x32xf32, #tpu.memory_space<vmem>>, vector<2x32xf32>
    tpu.vector_store %arg22[%c0_209, %c0_210], %585 {strides = array<i32>} : memref<16x32xf32, #tpu.memory_space<vmem>>, vector<2x32xf32>,
    %c0_211 = arith.constant 0 : index
    %c0_212 = arith.constant 0 : index
    %587 = vector.load %arg15[%c0_211, %c0_212] : memref<32x128xf32, #tpu.memory_space<vmem>>, vector<32x128xf32>
    %cst_213 = arith.constant dense<0.000000e+00> : vector<2x128xf32>
    %588 = tpu.matmul %585, %587, %cst_213 {dimension_numbers = #tpu.dot_dimension_numbers<[1], [0], [0], [1], [0, 0, 1, 1], [], []>} : vector<2x32xf32>, vector<32x128xf32>, vector<2x128xf32> -> vector<2x128xf32>
    %589 = arith.addf %565, %588 : vector<2x128xf32>
    %590 = arith.negf %589 : vector<2x128xf32>
    %591 = math.exp %590 : vector<2x128xf32>
    %cst_214 = arith.constant 1.000000e+00 : f32
    %592 = vector.broadcast %cst_214 : f32 to vector<2x128xf32>
    %593 = arith.addf %592, %591 : vector<2x128xf32>
    %594 = arith.divf %592, %593 : vector<2x128xf32>
    %595 = math.tanh %589 : vector<2x128xf32>
    %596 = vector.extract_strided_slice %594 {offsets = [0, 0], sizes = [2, 32], strides = [1, 1]} : vector<2x128xf32> to vector<2x32xf32>
    %597 = vector.extract_strided_slice %594 {offsets = [0, 32], sizes = [2, 32], strides = [1, 1]} : vector<2x128xf32> to vector<2x32xf32>
    %598 = vector.extract_strided_slice %594 {offsets = [0, 96], sizes = [2, 32], strides = [1, 1]} : vector<2x128xf32> to vector<2x32xf32>
    %599 = vector.extract_strided_slice %595 {offsets = [0, 64], sizes = [2, 32], strides = [1, 1]} : vector<2x128xf32> to vector<2x32xf32>
    %600 = arith.mulf %597, %583 : vector<2x32xf32>
    %601 = arith.mulf %596, %599 : vector<2x32xf32>
    %602 = arith.addf %600, %601 : vector<2x32xf32>
    %603 = math.tanh %602 : vector<2x32xf32>
    %604 = arith.mulf %598, %603 : vector<2x32xf32>
    %c2_215 = arith.constant 2 : index
    %c0_216 = arith.constant 0 : index
    %605 = vector.load %arg22[%c2_215, %c0_216] : memref<16x32xf32, #tpu.memory_space<vmem>>, vector<2x32xf32>
    tpu.vector_store %arg22[%c2_215, %c0_216], %604 {strides = array<i32>} : memref<16x32xf32, #tpu.memory_space<vmem>>, vector<2x32xf32>,
    %c0_217 = arith.constant 0 : index
    %c0_218 = arith.constant 0 : index
    %606 = vector.load %arg15[%c0_217, %c0_218] : memref<32x128xf32, #tpu.memory_space<vmem>>, vector<32x128xf32>
    %cst_219 = arith.constant dense<0.000000e+00> : vector<2x128xf32>
    %607 = tpu.matmul %604, %606, %cst_219 {dimension_numbers = #tpu.dot_dimension_numbers<[1], [0], [0], [1], [0, 0, 1, 1], [], []>} : vector<2x32xf32>, vector<32x128xf32>, vector<2x128xf32> -> vector<2x128xf32>
    %608 = arith.addf %565, %607 : vector<2x128xf32>
    %609 = arith.negf %608 : vector<2x128xf32>
    %610 = math.exp %609 : vector<2x128xf32>
    %cst_220 = arith.constant 1.000000e+00 : f32
    %611 = vector.broadcast %cst_220 : f32 to vector<2x128xf32>
    %612 = arith.addf %611, %610 : vector<2x128xf32>
    %613 = arith.divf %611, %612 : vector<2x128xf32>
    %614 = math.tanh %608 : vector<2x128xf32>
    %615 = vector.extract_strided_slice %613 {offsets = [0, 0], sizes = [2, 32], strides = [1, 1]} : vector<2x128xf32> to vector<2x32xf32>
    %616 = vector.extract_strided_slice %613 {offsets = [0, 32], sizes = [2, 32], strides = [1, 1]} : vector<2x128xf32> to vector<2x32xf32>
    %617 = vector.extract_strided_slice %613 {offsets = [0, 96], sizes = [2, 32], strides = [1, 1]} : vector<2x128xf32> to vector<2x32xf32>
    %618 = vector.extract_strided_slice %614 {offsets = [0, 64], sizes = [2, 32], strides = [1, 1]} : vector<2x128xf32> to vector<2x32xf32>
    %619 = arith.mulf %616, %602 : vector<2x32xf32>
    %620 = arith.mulf %615, %618 : vector<2x32xf32>
    %621 = arith.addf %619, %620 : vector<2x32xf32>
    %622 = math.tanh %621 : vector<2x32xf32>
    %623 = arith.mulf %617, %622 : vector<2x32xf32>
    %c4_221 = arith.constant 4 : index
    %c0_222 = arith.constant 0 : index
    %624 = vector.load %arg22[%c4_221, %c0_222] : memref<16x32xf32, #tpu.memory_space<vmem>>, vector<2x32xf32>
    tpu.vector_store %arg22[%c4_221, %c0_222], %623 {strides = array<i32>} : memref<16x32xf32, #tpu.memory_space<vmem>>, vector<2x32xf32>,
    %c0_223 = arith.constant 0 : index
    %c0_224 = arith.constant 0 : index
    %625 = vector.load %arg15[%c0_223, %c0_224] : memref<32x128xf32, #tpu.memory_space<vmem>>, vector<32x128xf32>
    %cst_225 = arith.constant dense<0.000000e+00> : vector<2x128xf32>
    %626 = tpu.matmul %623, %625, %cst_225 {dimension_numbers = #tpu.dot_dimension_numbers<[1], [0], [0], [1], [0, 0, 1, 1], [], []>} : vector<2x32xf32>, vector<32x128xf32>, vector<2x128xf32> -> vector<2x128xf32>
    %627 = arith.addf %565, %626 : vector<2x128xf32>
    %628 = arith.negf %627 : vector<2x128xf32>
    %629 = math.exp %628 : vector<2x128xf32>
    %cst_226 = arith.constant 1.000000e+00 : f32
    %630 = vector.broadcast %cst_226 : f32 to vector<2x128xf32>
    %631 = arith.addf %630, %629 : vector<2x128xf32>
    %632 = arith.divf %630, %631 : vector<2x128xf32>
    %633 = math.tanh %627 : vector<2x128xf32>
    %634 = vector.extract_strided_slice %632 {offsets = [0, 0], sizes = [2, 32], strides = [1, 1]} : vector<2x128xf32> to vector<2x32xf32>
    %635 = vector.extract_strided_slice %632 {offsets = [0, 32], sizes = [2, 32], strides = [1, 1]} : vector<2x128xf32> to vector<2x32xf32>
    %636 = vector.extract_strided_slice %632 {offsets = [0, 96], sizes = [2, 32], strides = [1, 1]} : vector<2x128xf32> to vector<2x32xf32>
    %637 = vector.extract_strided_slice %633 {offsets = [0, 64], sizes = [2, 32], strides = [1, 1]} : vector<2x128xf32> to vector<2x32xf32>
    %638 = arith.mulf %635, %621 : vector<2x32xf32>
    %639 = arith.mulf %634, %637 : vector<2x32xf32>
    %640 = arith.addf %638, %639 : vector<2x32xf32>
    %641 = math.tanh %640 : vector<2x32xf32>
    %642 = arith.mulf %636, %641 : vector<2x32xf32>
    %c6_227 = arith.constant 6 : index
    %c0_228 = arith.constant 0 : index
    %643 = vector.load %arg22[%c6_227, %c0_228] : memref<16x32xf32, #tpu.memory_space<vmem>>, vector<2x32xf32>
    tpu.vector_store %arg22[%c6_227, %c0_228], %642 {strides = array<i32>} : memref<16x32xf32, #tpu.memory_space<vmem>>, vector<2x32xf32>,
    %c0_229 = arith.constant 0 : index
    %c0_230 = arith.constant 0 : index
    %644 = vector.load %arg15[%c0_229, %c0_230] : memref<32x128xf32, #tpu.memory_space<vmem>>, vector<32x128xf32>
    %cst_231 = arith.constant dense<0.000000e+00> : vector<2x128xf32>
    %645 = tpu.matmul %642, %644, %cst_231 {dimension_numbers = #tpu.dot_dimension_numbers<[1], [0], [0], [1], [0, 0, 1, 1], [], []>} : vector<2x32xf32>, vector<32x128xf32>, vector<2x128xf32> -> vector<2x128xf32>
    %646 = arith.addf %565, %645 : vector<2x128xf32>
    %647 = arith.negf %646 : vector<2x128xf32>
    %648 = math.exp %647 : vector<2x128xf32>
    %cst_232 = arith.constant 1.000000e+00 : f32
    %649 = vector.broadcast %cst_232 : f32 to vector<2x128xf32>
    %650 = arith.addf %649, %648 : vector<2x128xf32>
    %651 = arith.divf %649, %650 : vector<2x128xf32>
    %652 = math.tanh %646 : vector<2x128xf32>
    %653 = vector.extract_strided_slice %651 {offsets = [0, 0], sizes = [2, 32], strides = [1, 1]} : vector<2x128xf32> to vector<2x32xf32>
    %654 = vector.extract_strided_slice %651 {offsets = [0, 32], sizes = [2, 32], strides = [1, 1]} : vector<2x128xf32> to vector<2x32xf32>
    %655 = vector.extract_strided_slice %651 {offsets = [0, 96], sizes = [2, 32], strides = [1, 1]} : vector<2x128xf32> to vector<2x32xf32>
    %656 = vector.extract_strided_slice %652 {offsets = [0, 64], sizes = [2, 32], strides = [1, 1]} : vector<2x128xf32> to vector<2x32xf32>
    %657 = arith.mulf %654, %640 : vector<2x32xf32>
    %658 = arith.mulf %653, %656 : vector<2x32xf32>
    %659 = arith.addf %657, %658 : vector<2x32xf32>
    %660 = math.tanh %659 : vector<2x32xf32>
    %661 = arith.mulf %655, %660 : vector<2x32xf32>
    %c8_233 = arith.constant 8 : index
    %c0_234 = arith.constant 0 : index
    %662 = vector.load %arg22[%c8_233, %c0_234] : memref<16x32xf32, #tpu.memory_space<vmem>>, vector<2x32xf32>
    tpu.vector_store %arg22[%c8_233, %c0_234], %661 {strides = array<i32>} : memref<16x32xf32, #tpu.memory_space<vmem>>, vector<2x32xf32>,
    %c0_235 = arith.constant 0 : index
    %c0_236 = arith.constant 0 : index
    %663 = vector.load %arg15[%c0_235, %c0_236] : memref<32x128xf32, #tpu.memory_space<vmem>>, vector<32x128xf32>
    %cst_237 = arith.constant dense<0.000000e+00> : vector<2x128xf32>
    %664 = tpu.matmul %661, %663, %cst_237 {dimension_numbers = #tpu.dot_dimension_numbers<[1], [0], [0], [1], [0, 0, 1, 1], [], []>} : vector<2x32xf32>, vector<32x128xf32>, vector<2x128xf32> -> vector<2x128xf32>
    %665 = arith.addf %565, %664 : vector<2x128xf32>
    %666 = arith.negf %665 : vector<2x128xf32>
    %667 = math.exp %666 : vector<2x128xf32>
    %cst_238 = arith.constant 1.000000e+00 : f32
    %668 = vector.broadcast %cst_238 : f32 to vector<2x128xf32>
    %669 = arith.addf %668, %667 : vector<2x128xf32>
    %670 = arith.divf %668, %669 : vector<2x128xf32>
    %671 = math.tanh %665 : vector<2x128xf32>
    %672 = vector.extract_strided_slice %670 {offsets = [0, 0], sizes = [2, 32], strides = [1, 1]} : vector<2x128xf32> to vector<2x32xf32>
    %673 = vector.extract_strided_slice %670 {offsets = [0, 32], sizes = [2, 32], strides = [1, 1]} : vector<2x128xf32> to vector<2x32xf32>
    %674 = vector.extract_strided_slice %670 {offsets = [0, 96], sizes = [2, 32], strides = [1, 1]} : vector<2x128xf32> to vector<2x32xf32>
    %675 = vector.extract_strided_slice %671 {offsets = [0, 64], sizes = [2, 32], strides = [1, 1]} : vector<2x128xf32> to vector<2x32xf32>
    %676 = arith.mulf %673, %659 : vector<2x32xf32>
    %677 = arith.mulf %672, %675 : vector<2x32xf32>
    %678 = arith.addf %676, %677 : vector<2x32xf32>
    %679 = math.tanh %678 : vector<2x32xf32>
    %680 = arith.mulf %674, %679 : vector<2x32xf32>
    %c10_239 = arith.constant 10 : index
    %c0_240 = arith.constant 0 : index
    %681 = vector.load %arg22[%c10_239, %c0_240] : memref<16x32xf32, #tpu.memory_space<vmem>>, vector<2x32xf32>
    tpu.vector_store %arg22[%c10_239, %c0_240], %680 {strides = array<i32>} : memref<16x32xf32, #tpu.memory_space<vmem>>, vector<2x32xf32>,
    %c0_241 = arith.constant 0 : index
    %c0_242 = arith.constant 0 : index
    %682 = vector.load %arg15[%c0_241, %c0_242] : memref<32x128xf32, #tpu.memory_space<vmem>>, vector<32x128xf32>
    %cst_243 = arith.constant dense<0.000000e+00> : vector<2x128xf32>
    %683 = tpu.matmul %680, %682, %cst_243 {dimension_numbers = #tpu.dot_dimension_numbers<[1], [0], [0], [1], [0, 0, 1, 1], [], []>} : vector<2x32xf32>, vector<32x128xf32>, vector<2x128xf32> -> vector<2x128xf32>
    %684 = arith.addf %565, %683 : vector<2x128xf32>
    %685 = arith.negf %684 : vector<2x128xf32>
    %686 = math.exp %685 : vector<2x128xf32>
    %cst_244 = arith.constant 1.000000e+00 : f32
    %687 = vector.broadcast %cst_244 : f32 to vector<2x128xf32>
    %688 = arith.addf %687, %686 : vector<2x128xf32>
    %689 = arith.divf %687, %688 : vector<2x128xf32>
    %690 = math.tanh %684 : vector<2x128xf32>
    %691 = vector.extract_strided_slice %689 {offsets = [0, 0], sizes = [2, 32], strides = [1, 1]} : vector<2x128xf32> to vector<2x32xf32>
    %692 = vector.extract_strided_slice %689 {offsets = [0, 32], sizes = [2, 32], strides = [1, 1]} : vector<2x128xf32> to vector<2x32xf32>
    %693 = vector.extract_strided_slice %689 {offsets = [0, 96], sizes = [2, 32], strides = [1, 1]} : vector<2x128xf32> to vector<2x32xf32>
    %694 = vector.extract_strided_slice %690 {offsets = [0, 64], sizes = [2, 32], strides = [1, 1]} : vector<2x128xf32> to vector<2x32xf32>
    %695 = arith.mulf %692, %678 : vector<2x32xf32>
    %696 = arith.mulf %691, %694 : vector<2x32xf32>
    %697 = arith.addf %695, %696 : vector<2x32xf32>
    %698 = math.tanh %697 : vector<2x32xf32>
    %699 = arith.mulf %693, %698 : vector<2x32xf32>
    %c12_245 = arith.constant 12 : index
    %c0_246 = arith.constant 0 : index
    %700 = vector.load %arg22[%c12_245, %c0_246] : memref<16x32xf32, #tpu.memory_space<vmem>>, vector<2x32xf32>
    tpu.vector_store %arg22[%c12_245, %c0_246], %699 {strides = array<i32>} : memref<16x32xf32, #tpu.memory_space<vmem>>, vector<2x32xf32>,
    %c0_247 = arith.constant 0 : index
    %c0_248 = arith.constant 0 : index
    %701 = vector.load %arg15[%c0_247, %c0_248] : memref<32x128xf32, #tpu.memory_space<vmem>>, vector<32x128xf32>
    %cst_249 = arith.constant dense<0.000000e+00> : vector<2x128xf32>
    %702 = tpu.matmul %699, %701, %cst_249 {dimension_numbers = #tpu.dot_dimension_numbers<[1], [0], [0], [1], [0, 0, 1, 1], [], []>} : vector<2x32xf32>, vector<32x128xf32>, vector<2x128xf32> -> vector<2x128xf32>
    %703 = arith.addf %565, %702 : vector<2x128xf32>
    %704 = arith.negf %703 : vector<2x128xf32>
    %705 = math.exp %704 : vector<2x128xf32>
    %cst_250 = arith.constant 1.000000e+00 : f32
    %706 = vector.broadcast %cst_250 : f32 to vector<2x128xf32>
    %707 = arith.addf %706, %705 : vector<2x128xf32>
    %708 = arith.divf %706, %707 : vector<2x128xf32>
    %709 = math.tanh %703 : vector<2x128xf32>
    %710 = vector.extract_strided_slice %708 {offsets = [0, 0], sizes = [2, 32], strides = [1, 1]} : vector<2x128xf32> to vector<2x32xf32>
    %711 = vector.extract_strided_slice %708 {offsets = [0, 32], sizes = [2, 32], strides = [1, 1]} : vector<2x128xf32> to vector<2x32xf32>
    %712 = vector.extract_strided_slice %708 {offsets = [0, 96], sizes = [2, 32], strides = [1, 1]} : vector<2x128xf32> to vector<2x32xf32>
    %713 = vector.extract_strided_slice %709 {offsets = [0, 64], sizes = [2, 32], strides = [1, 1]} : vector<2x128xf32> to vector<2x32xf32>
    %714 = arith.mulf %711, %697 : vector<2x32xf32>
    %715 = arith.mulf %710, %713 : vector<2x32xf32>
    %716 = arith.addf %714, %715 : vector<2x32xf32>
    %717 = math.tanh %716 : vector<2x32xf32>
    %718 = arith.mulf %712, %717 : vector<2x32xf32>
    %c14_251 = arith.constant 14 : index
    %c0_252 = arith.constant 0 : index
    %719 = vector.load %arg22[%c14_251, %c0_252] : memref<16x32xf32, #tpu.memory_space<vmem>>, vector<2x32xf32>
    tpu.vector_store %arg22[%c14_251, %c0_252], %718 {strides = array<i32>} : memref<16x32xf32, #tpu.memory_space<vmem>>, vector<2x32xf32>,
    %c0_253 = arith.constant 0 : index
    %c0_254 = arith.constant 0 : index
    %720 = vector.load %arg22[%c0_253, %c0_254] : memref<16x32xf32, #tpu.memory_space<vmem>>, vector<16x32xf32>
    %c0_255 = arith.constant 0 : index
    %c0_256 = arith.constant 0 : index
    %721 = vector.load %arg17[%c0_255, %c0_256] : memref<32x4xf32, #tpu.memory_space<vmem>>, vector<32x4xf32>
    %cst_257 = arith.constant dense<0.000000e+00> : vector<16x4xf32>
    %722 = tpu.matmul %720, %721, %cst_257 {dimension_numbers = #tpu.dot_dimension_numbers<[1], [0], [0], [1], [0, 0, 1, 1], [], []>} : vector<16x32xf32>, vector<32x4xf32>, vector<16x4xf32> -> vector<16x4xf32>
    %c0_258 = arith.constant 0 : index
    %c0_259 = arith.constant 0 : index
    %723 = vector.load %arg18[%c0_258, %c0_259] : memref<1x4xf32, #tpu.memory_space<vmem>>, vector<1x4xf32>
    %724 = vector.broadcast %723 : vector<1x4xf32> to vector<16x4xf32>
    %725 = arith.addf %722, %724 : vector<16x4xf32>
    %c0_260 = arith.constant 0 : index
    %c0_261 = arith.constant 0 : index
    %726 = vector.load %arg20[%c0_260, %c0_261] : memref<16x4xf32, #tpu.memory_space<vmem>>, vector<16x4xf32>
    tpu.vector_store %arg20[%c0_260, %c0_261], %725 {strides = array<i32>} : memref<16x4xf32, #tpu.memory_space<vmem>>, vector<16x4xf32>,
    return
  }
}

</mosaic_0001>

<bundles_post_ra>
// kernel: _lambda_.1
= control target key start
LH: loop header
LB: loop body
LE: loop exit
PB: predicated region body
PF: predicated region fallthrough
CT: control target
= control target key end

     0   :  { %s9558_s0 = inlined_call_operand.vmem [shape: f32[8,2,4], index: 0, kind: input, shape index: {}]   ;;  %s9559_s1 = inlined_call_operand.vmem [shape: f32[2,32], index: 1, kind: input, shape index: {}]   ;;  %s9560_s2 = inlined_call_operand.vmem [shape: f32[4,512], index: 2, kind: input, shape index: {}]   ;;  %s9561_s3 = inlined_call_operand.hbm [shape: f32[128,512], index: 3, kind: input, shape index: {}]   ;;  %s9562_s4 = inlined_call_operand.vmem [shape: f32[1,512], index: 4, kind: input, shape index: {}]   ;;  %s9563_s5 = inlined_call_operand.vmem [shape: f32[128,32], index: 5, kind: input, shape index: {}]   ;;  %s9564_s6 = inlined_call_operand.vmem [shape: f32[1,32], index: 6, kind: input, shape index: {}]   ;;  %s9565_s7 = inlined_call_operand.vmem [shape: f32[32,512], index: 7, kind: input, shape index: {}]   ;;  %s9566_s8 = inlined_call_operand.hbm [shape: f32[128,512], index: 8, kind: input, shape index: {}]   ;;  %s9567_s9 = inlined_call_operand.vmem [shape: f32[1,512], index: 9, kind: input, shape index: {}]   ;;  %s9568_s10 = inlined_call_operand.vmem [shape: f32[128,4], index: 10, kind: input, shape index: {}]   ;;  %s9569_s11 = inlined_call_operand.vmem [shape: f32[1,4], index: 11, kind: input, shape index: {}]   ;;  %s9570_s12 = inlined_call_operand.vmem [shape: f32[1,32], index: 12, kind: input, shape index: {}]   ;;  %s9571_s13 = inlined_call_operand.vmem [shape: f32[1,32], index: 13, kind: input, shape index: {}]   ;;  %s9572_s14 = inlined_call_operand.vmem [shape: f32[32,128], index: 14, kind: input, shape index: {}]   ;;  %s9573_s15 = inlined_call_operand.vmem [shape: f32[32,128], index: 15, kind: input, shape index: {}]   ;;  %s9574_s16 = inlined_call_operand.vmem [shape: f32[1,128], index: 16, kind: input, shape index: {}]   ;;  %s9575_s17 = inlined_call_operand.vmem [shape: f32[32,4], index: 17, kind: input, shape index: {}]   ;;  %s9576_s18 = inlined_call_operand.vmem [shape: f32[1,4], index: 18, kind: input, shape index: {}]   ;;  %s9577_s19 = inlined_call_operand.vmem [shape: f32[16,4], index: 19, kind: output, shape index: {0}]   ;;  %s9578_s20 = inlined_call_operand.vmem [shape: f32[16,4], index: 20, kind: output, shape index: {1}]  }
   0x1   :  { %9583 = sst [smem:[#allocation10_spill]] %s9558_s0 }
   0x2   :  { %9584 = sst [smem:[#allocation11_spill]] %s9559_s1 }
   0x3   :  { %9585 = sst [smem:[#allocation12_spill]] %s9560_s2 }
   0x4   :  { %9586 = sst [smem:[#allocation13_spill]] %s9561_s3 }
   0x5   :  { %9587 = sst [smem:[#allocation14_spill]] %s9562_s4 }
   0x6   :  { %9588 = sst [smem:[#allocation15_spill]] %s9578_s20 }
   0x7   :  { %26 = vsyncpa [#allocation5], 0 }
   0x8   :  { %27 = vsyncpa [#allocation7], 0  ;;  %s8028_s1 = smov [#allocation4]   ;;  %s9589_s2 = sld [smem:[#allocation13_spill]] }
   0x9   :  { %s39_s22 = sshll.u32 %s8028_s1, 4  ;;  %s40_s22 = int_to_ptr.vmem [resolvable:$true] %s39_s22 }
   0xe   :  { %s7980_s25 = scalar_lea.hbm %s9589_s2, 8192 }
   0xf   :  { %p7981_p0 = scmp.ne.s32.totalorder %s9589_s2, %s7980_s25  ;;  %p7984_p1 = scmp.lt.u32.totalorder %s7980_s25, %s9589_s2 }
  0x11   :  { %p7986_p2 = pnand %p7984_p1, %p7981_p0 }
  0x13   :  { %7989 = shalt.err (!%p7986_p2)
}
  0x14   :  { %s7990_s4 = scalar_lea.vmem %s40_s22, 8192  ;;  %p7995_p4 = scmp.lt.s32.totalorder %s40_s22, %s40_s22 }
  0x15   :  { %p7991_p3 = scmp.ne.s32.totalorder %s40_s22, %s7990_s4  ;;  %p7996_p5 = scmp.lt.s32.totalorder %s7990_s4, %s7990_s4 }
  0x17   :  { %p7997_p6 = por %p7996_p5, %p7995_p4 }
  0x19   :  { %p7998_p7 = pnand %p7997_p6, %p7991_p3 }
  0x1b   :  { %8001 = shalt.err (!%p7998_p7)
}
  0x1c   :  { %s8029_s29 = smov 512   ;;  %s8030_s30 = smov 32  }
  0x1d   :  { %45 = dma.hbm_to_vmem [thread:$0]  %s9589_s2, 8192, %s40_s22, [#allocation5], %s8029_s29, %s8029_s29, %s8030_s30  }
  0x1e   :  { %s8031_s1 = smov [#allocation6]   ;;  %s8002_s3 = scalar_lea.hbm %s9566_s8, 8192 }
  0x1f   :  { %s59_s23 = sshll.u32 %s8031_s1, 4  ;;  %p8003_p8 = scmp.ne.s32.totalorder %s9566_s8, %s8002_s3  ;;  %s60_s23 = int_to_ptr.vmem [resolvable:$true] %s59_s23 }
  0x20   :  { %p8006_p9 = scmp.lt.u32.totalorder %s8002_s3, %s9566_s8 }
  0x22   :  { %p8008_p10 = pnand %p8006_p9, %p8003_p8 }
  0x24   :  { %8011 = shalt.err (!%p8008_p10)
}
  0x25   :  { %s8012_s20 = scalar_lea.vmem %s60_s23, 8192  ;;  %p8017_p12 = scmp.lt.s32.totalorder %s60_s23, %s60_s23 }
  0x26   :  { %p8013_p11 = scmp.ne.s32.totalorder %s60_s23, %s8012_s20  ;;  %p8018_p13 = scmp.lt.s32.totalorder %s8012_s20, %s8012_s20 }
  0x28   :  { %p8019_p0 = por %p8018_p13, %p8017_p12 }
  0x2a   :  { %p8020_p1 = pnand %p8019_p0, %p8013_p11 }
  0x2c   :  { %8023 = shalt.err (!%p8020_p1)
}
  0x2d   :  { %65 = dma.hbm_to_vmem [thread:$0]  %s9566_s8, 8192, %s60_s23, [#allocation7], %s8029_s29, %s8029_s29, %s8030_s30  }
  0x2e   :  { %8024 = dma.done.wait [#allocation5], 8192  }
  0x2f   :  { %8025 = vsyncadd [#allocation5], 4294959104 }
  0x30   :  { %8026 = dma.done.wait [#allocation7], 8192  }
  0x31   :  { %8027 = vsyncadd [#allocation7], 4294959104  ;;  %v8032_v0 = vmov 0.0   ;;  %v96_v1 = vld [vmem:[#allocation4 + $0x8] sm:$0xff]  ;;  %v95_v3 = vld [vmem:[#allocation4] sm:$0xff]  ;;  %s9590_s29 = sld [smem:[#allocation12_spill]] }
  0x32   :  { %223 = vmatprep.mubr.f32.mxu0 %v8032_v0  ;;  %294 = vmatprep.mubr.f32.mxu1 %v8032_v0  ;;  %v100_v2 = vld [vmem:[#allocation4 + $0x28] sm:$0xff]  ;;  %v99_v5 = vld [vmem:[#allocation4 + $0x20] sm:$0xff]  ;;  %v98_v12 = vld [vmem:[#allocation4 + $0x18] sm:$0xff]  ;;  %vm309_vm0 = vcmask 1043456   ;;  %s9591_s24 = sld [smem:[#allocation10_spill]]  ;;  %vm305_vm1 = vcmask 31744  }
  0x33   :  { %v8169_v4 = vpack.c.bf16 %v100_v2, %v96_v1  ;;  %v104_v6 = vld [vmem:[#allocation4 + $0x48] sm:$0xff]  ;;  %v8171_v8 = vpack.c.bf16 %v99_v5, %v95_v3  ;;  %v103_v10 = vld [vmem:[#allocation4 + $0x40] sm:$0xff]  ;;  %v102_v13 = vld [vmem:[#allocation4 + $0x38] sm:$0xff]  ;;  %s9592_s26 = sld [smem:[#allocation14_spill]]  ;;  %vm8034_vm2 = vmmov 0   ;;  %vm2860_vm3 = vcmask 261120  }
  0x34   :  { %v108_v7 = vld [vmem:[#allocation4 + $0x68] sm:$0xff]  ;;  %v107_v11 = vld [vmem:[#allocation4 + $0x60] sm:$0xff]  ;;  %v8179_v17 = vpack.c.bf16 %v102_v13, %v98_v12  ;;  %v97_v18 = vld [vmem:[#allocation4 + $0x10] sm:$0xff]  ;;  %vm4988_vm4 = vcmask 254976  }
  0x35   :  { %v8173_v9 = vpack.c.bf16 %v108_v7, %v104_v6  ;;  %6457 = vmatprep.subr.bf16.mxu0 %v8169_v4  ;;  %v112_v14 = vld [vmem:[#allocation4 + $0x88] sm:$0xff]  ;;  %v8177_v16 = vpack.c.bf16 %v107_v11, %v103_v10  ;;  %v101_v19 = vld [vmem:[#allocation4 + $0x30] sm:$0xff]  ;;  %v111_v20 = vld [vmem:[#allocation4 + $0x80] sm:$0xff] }
  0x36   :  { %v116_v15 = vld [vmem:[#allocation4 + $0xa8] sm:$0xff]  ;;  %6459 = vmatpush1.bf16.msra.mxu0 %v8171_v8  ;;  %v8184_v22 = vpack.c.bf16 %v101_v19, %v97_v18  ;;  %v115_v23 = vld [vmem:[#allocation4 + $0xa0] sm:$0xff]  ;;  %v106_v24 = vld [vmem:[#allocation4 + $0x58] sm:$0xff]  ;;  %6489 = vmatprep.subr.bf16.mxu1 %v8179_v17 }
  0x37   :  { %6461 = vmatprep.subr.bf16.mxu0 %v8173_v9  ;;  %v8182_v21 = vpack.c.bf16 %v116_v15, %v112_v14  ;;  %v110_v25 = vld [vmem:[#allocation4 + $0x78] sm:$0xff]  ;;  %v120_v27 = vld [vmem:[#allocation4 + $0xc8] sm:$0xff]  ;;  %v105_v29 = vld [vmem:[#allocation4 + $0x50] sm:$0xff]  ;;  %v8191_v31 = vpack.c.bf16 %v115_v23, %v111_v20 }
  0x38   :  { %v8187_v26 = vpack.c.bf16 %v110_v25, %v106_v24  ;;  %v124_v28 = vld [vmem:[#allocation4 + $0xe8] sm:$0xff]  ;;  %6491 = vmatpush1.bf16.msra.mxu1 %v8184_v22  ;;  %v109_v30 = vld [vmem:[#allocation4 + $0x70] sm:$0xff]  ;;  %v119_v33 = vld [vmem:[#allocation4 + $0xc0] sm:$0xff] }
  0x39   :  { %v8194_v32 = vpack.c.bf16 %v109_v30, %v105_v29  ;;  %v114_v34 = vld [vmem:[#allocation4 + $0x98] sm:$0xff]  ;;  %v8197_v36 = vpack.c.bf16 %v124_v28, %v120_v27  ;;  %v123_v37 = vld [vmem:[#allocation4 + $0xe0] sm:$0xff]  ;;  %v113_v39 = vld [vmem:[#allocation4 + $0x90] sm:$0xff] }
  0x3a   :  { %6463 = vmatpush1.bf16.msra.mxu0 %v8177_v16  ;;  %6493 = vmatprep.subr.bf16.mxu1 %v8187_v26  ;;  %v118_v35 = vld [vmem:[#allocation4 + $0xb8] sm:$0xff]  ;;  %v117_v40 = vld [vmem:[#allocation4 + $0xb0] sm:$0xff]  ;;  %v128_v41 = vld [vmem:[#allocation4 + $0x108] sm:$0xff]  ;;  %v8205_v46 = vpack.c.bf16 %v123_v37, %v119_v33 }
  0x3b   :  { %6465 = vmatprep.subr.bf16.mxu0 %v8182_v21  ;;  %v8199_v38 = vpack.c.bf16 %v118_v35, %v114_v34  ;;  %v132_v42 = vld [vmem:[#allocation4 + $0x128] sm:$0xff]  ;;  %v122_v43 = vld [vmem:[#allocation4 + $0xd8] sm:$0xff]  ;;  %v8202_v44 = vpack.c.bf16 %v117_v40, %v113_v39  ;;  %v127_v47 = vld [vmem:[#allocation4 + $0x100] sm:$0xff] }
  0x3c   :  { %6495 = vmatpush1.bf16.msra.mxu1 %v8194_v32  ;;  %v126_v45 = vld [vmem:[#allocation4 + $0xf8] sm:$0xff]  ;;  %v121_v49 = vld [vmem:[#allocation4 + $0xd0] sm:$0xff]  ;;  %v8211_v51 = vpack.c.bf16 %v132_v42, %v128_v41  ;;  %v131_v52 = vld [vmem:[#allocation4 + $0x120] sm:$0xff] }
  0x3d   :  { %6497 = vmatprep.subr.bf16.mxu1 %v8199_v38  ;;  %v8208_v48 = vpack.c.bf16 %v126_v45, %v122_v43  ;;  %v125_v50 = vld [vmem:[#allocation4 + $0xf0] sm:$0xff]  ;;  %v130_v53 = vld [vmem:[#allocation4 + $0x118] sm:$0xff]  ;;  %v136_v55 = vld [vmem:[#allocation4 + $0x148] sm:$0xff]  ;;  %v8217_v58 = vpack.c.bf16 %v131_v52, %v127_v47 }
  0x3e   :  { %6467 = vmatpush1.bf16.msra.mxu0 %v8191_v31  ;;  %v134_v54 = vld [vmem:[#allocation4 + $0x138] sm:$0xff]  ;;  %v140_v56 = vld [vmem:[#allocation4 + $0x168] sm:$0xff]  ;;  %v8214_v57 = vpack.c.bf16 %v125_v50, %v121_v49  ;;  %v135_v59 = vld [vmem:[#allocation4 + $0x140] sm:$0xff] }
  0x3f   :  { %6469 = vmatprep.subr.bf16.mxu0 %v8197_v36  ;;  %v8220_v60 = vpack.c.bf16 %v134_v54, %v130_v53  ;;  %v129_v61 = vld [vmem:[#allocation4 + $0x110] sm:$0xff]  ;;  %v8223_v63 = vpack.c.bf16 %v140_v56, %v136_v55  ;;  %v139_v1 = vld [vmem:[#allocation4 + $0x160] sm:$0xff]  ;;  %v138_v2 = vld [vmem:[#allocation4 + $0x158] sm:$0xff]  ;;  %v462_v55 = vlaneseq }
  0x40   :  { %6499 = vmatpush1.bf16.msra.mxu1 %v8202_v44  ;;  %v133_v62 = vld [vmem:[#allocation4 + $0x130] sm:$0xff]  ;;  %v142_v3 = vld [vmem:[#allocation4 + $0x178] sm:$0xff]  ;;  %v144_v5 = vld [vmem:[#allocation4 + $0x188] sm:$0xff]  ;;  %v8229_v10 = vpack.c.bf16 %v139_v1, %v135_v59 }
  0x41   :  { %6501 = vmatprep.subr.bf16.mxu1 %v8208_v48  ;;  %v148_v6 = vld [vmem:[#allocation4 + $0x1a8] sm:$0xff]  ;;  %v8226_v7 = vpack.c.bf16 %v133_v62, %v129_v61  ;;  %v143_v11 = vld [vmem:[#allocation4 + $0x180] sm:$0xff]  ;;  %v8232_v12 = vpack.c.bf16 %v142_v3, %v138_v2  ;;  %v137_v13 = vld [vmem:[#allocation4 + $0x150] sm:$0xff]  ;;  %v8338_v56 = vshrl.u32 %v462_v55, 7 }
  0x42   :  { %6471 = vmatpush1.bf16.msra.mxu0 %v8205_v46  ;;  %v141_v14 = vld [vmem:[#allocation4 + $0x170] sm:$0xff]  ;;  %v8235_v15 = vpack.c.bf16 %v148_v6, %v144_v5  ;;  %v147_v18 = vld [vmem:[#allocation4 + $0x1a0] sm:$0xff]  ;;  %v146_v19 = vld [vmem:[#allocation4 + $0x198] sm:$0xff] }
  0x43   :  { %6473 = vmatprep.subr.bf16.mxu0 %v8211_v51  ;;  %v150_v20 = vld [vmem:[#allocation4 + $0x1b8] sm:$0xff]  ;;  %v152_v23 = vld [vmem:[#allocation4 + $0x1c8] sm:$0xff]  ;;  %v8238_v25 = vpack.c.bf16 %v141_v14, %v137_v13  ;;  %v8241_v27 = vpack.c.bf16 %v147_v18, %v143_v11  ;;  %v151_v28 = vld [vmem:[#allocation4 + $0x1c0] sm:$0xff]  ;;  %v464_v59 = vsub.s32 0, %v8338_v56  ;;  %v468_v62 = vsub.s32 1, %v8338_v56 }
  0x44   :  { %6503 = vmatpush1.bf16.msra.mxu1 %v8214_v57  ;;  %v156_v24 = vld [vmem:[#allocation4 + $0x1e8] sm:$0xff]  ;;  %v8244_v29 = vpack.c.bf16 %v150_v20, %v146_v19  ;;  %v145_v30 = vld [vmem:[#allocation4 + $0x190] sm:$0xff]  ;;  %v155_v35 = vld [vmem:[#allocation4 + $0x1e0] sm:$0xff]  ;;  %v476_v5 = vsub.s32 3, %v8338_v56 }
  0x45   :  { %6505 = vmatprep.subr.bf16.mxu1 %v8220_v60  ;;  %v149_v33 = vld [vmem:[#allocation4 + $0x1b0] sm:$0xff]  ;;  %v8247_v34 = vpack.c.bf16 %v156_v24, %v152_v23  ;;  %v154_v37 = vld [vmem:[#allocation4 + $0x1d8] sm:$0xff]  ;;  %v8252_v40 = vld [vmem:[%s9590_s29] sm:$0xff]  ;;  %v8258_v42 = vpack.c.bf16 %v155_v35, %v151_v28  ;;  %v472_v24 = vsub.s32 2, %v8338_v56 }
  0x46   :  { %6475 = vmatpush1.bf16.msra.mxu0 %v8217_v58  ;;  %v158_v39 = vld [vmem:[#allocation4 + $0x1f8] sm:$0xff]  ;;  %v8255_v41 = vpack.c.bf16 %v149_v33, %v145_v30  ;;  %v153_v45 = vld [vmem:[#allocation4 + $0x1d0] sm:$0xff]  ;;  %v8266_v49 = vcombine.high %v8252_v40, %v8252_v40  ;;  %v8271_v50 = vld [vmem:[%s9590_s29 + $0x8] sm:$0xff] }
  0x47   :  { %6477 = vmatprep.subr.bf16.mxu0 %v8223_v63  ;;  %v8261_v43 = vpack.c.bf16 %v158_v39, %v154_v37  ;;  %v157_v47 = vld [vmem:[#allocation4 + $0x1f0] sm:$0xff]  ;;  %v8282_v53 = vcombine.high %v8271_v50, %v8271_v50  ;;  %v92_v54 = vld [vmem:[%s9591_s24] sm:$0x3] }
  0x48   :  { %6507 = vmatpush1.bf16.msra.mxu1 %v8226_v7  ;;  %v8274_v52 = vpack.c.bf16 %v157_v47, %v153_v45  ;;  %v460_v61 = vld [vmem:[%s9592_s26] sm:$0xf] }
  0x49   :  { %6509 = vmatprep.subr.bf16.mxu1 %v8232_v12  ;;  %v8347_v1 = vrot.slane %v460_v61, %v464_v59  ;;  %v8351_v2 = vrot.slane %v460_v61, %v468_v62  ;;  %v8358_v23 = vrot.slane %v460_v61, %v476_v5  ;;  %v8364_v30 = vrot.slane %v460_v61, %v472_v24 }
  0x4a   :  { %6479 = vmatpush1.bf16.msra.mxu0 %v8229_v10 }
  0x4b   :  { %6481 = vmatprep.subr.bf16.mxu0 %v8235_v15 }
  0x4c   :  { %6511 = vmatpush1.bf16.msra.mxu1 %v8238_v25 }
  0x4d   :  { %6513 = vmatprep.subr.bf16.mxu1 %v8244_v29 }
  0x4e   :  { %6483 = vmatpush1.bf16.msra.mxu0 %v8241_v27 }
  0x4f   :  { %6485 = vmatprep.subr.bf16.mxu0 %v8247_v34 }
  0x50   :  { %6515 = vmatpush1.bf16.msra.mxu1 %v8255_v41 }
  0x51   :  { %6517 = vmatprep.subr.bf16.mxu1 %v8261_v43 }
  0x52   :  { %6487 = vmatpush1.bf16.msra.mxu0 %v8258_v42 }
  0x53   :  { %6061 = vmatprep.subr.msk.mxu0 %vm309_vm0, %v8266_v49 }
  0x54   :  { %6519 = vmatpush1.bf16.msra.mxu1 %v8274_v52 }
  0x55   :  { %224 = vmatmul.mubr.f32.vlgmr.msra.gmra.mrb[0].mxu0 %v8032_v0  ;;  %6064 = vmatprep.subr.msk.mxu1 %vm309_vm0, %v8282_v53 }
  0x56   :  { %6062 = vmatpush1.msk.msra.mxu0 %vm309_vm0, %v8252_v40  ;;  %382 = vmatprep.mubr.f32.mxu0 %v8032_v0 }
  0x57   :  { %6521 = vmatprep.subr.bf16.mxu0 %v8169_v4  ;;  %295 = vmatmul.mubr.f32.vlgmr.msra.gmra.mrb[0].mxu1 %v8032_v0 }
  0x58   :  { %6065 = vmatpush1.msk.msra.mxu1 %vm309_vm0, %v8271_v50  ;;  %453 = vmatprep.mubr.f32.mxu1 %v8032_v0 }
  0x59   :  { %6553 = vmatprep.subr.bf16.mxu1 %v8179_v17 }
  0x5d   :  { %6063 = vmatmul.mubr.msk.f32.vlgmr.msra.gmra.mrb[0].mxu0 %vm305_vm1, %v92_v54 }
  0x5e   :  { %6523 = vmatpush1.bf16.msra.mxu0 %v8171_v8  ;;  %576 = vmatprep.mubr.f32.mxu0 %v8032_v0 }
  0x5f   :  { %6525 = vmatprep.subr.bf16.mxu0 %v8173_v9  ;;  %6066 = vmatmul.mubr.msk.f32.vlgmr.msra.gmra.mrb[0].mxu1 %vm305_vm1, %v92_v54 }
  0x60   :  { %6555 = vmatpush1.bf16.msra.mxu1 %v8184_v22  ;;  %647 = vmatprep.mubr.f32.mxu1 %v8032_v0 }
  0x61   :  { %6557 = vmatprep.subr.bf16.mxu1 %v8187_v26 }
  0x62   :  { %6527 = vmatpush1.bf16.msra.mxu0 %v8177_v16 }
  0x63   :  { %6529 = vmatprep.subr.bf16.mxu0 %v8182_v21 }
  0x64   :  { %6559 = vmatpush1.bf16.msra.mxu1 %v8194_v32 }
  0x65   :  { %6561 = vmatprep.subr.bf16.mxu1 %v8199_v38 }
  0x66   :  { %6531 = vmatpush1.bf16.msra.mxu0 %v8191_v31 }
  0x67   :  { %6533 = vmatprep.subr.bf16.mxu0 %v8197_v36 }
  0x68   :  { %6563 = vmatpush1.bf16.msra.mxu1 %v8202_v44 }
  0x69   :  { %6565 = vmatprep.subr.bf16.mxu1 %v8208_v48 }
  0x6a   :  { %6535 = vmatpush1.bf16.msra.mxu0 %v8205_v46 }
  0x6b   :  { %6537 = vmatprep.subr.bf16.mxu0 %v8211_v51 }
  0x6c   :  { %6567 = vmatpush1.bf16.msra.mxu1 %v8214_v57 }
  0x6d   :  { %6569 = vmatprep.subr.bf16.mxu1 %v8220_v60 }
  0x6e   :  { %6539 = vmatpush1.bf16.msra.mxu0 %v8217_v58 }
  0x6f   :  { %6541 = vmatprep.subr.bf16.mxu0 %v8223_v63 }
  0x70   :  { %6571 = vmatpush1.bf16.msra.mxu1 %v8226_v7 }
  0x71   :  { %6573 = vmatprep.subr.bf16.mxu1 %v8232_v12 }
  0x72   :  { %6543 = vmatpush1.bf16.msra.mxu0 %v8229_v10 }
  0x73   :  { %6545 = vmatprep.subr.bf16.mxu0 %v8235_v15 }
  0x74   :  { %6575 = vmatpush1.bf16.msra.mxu1 %v8238_v25 }
  0x75   :  { %6577 = vmatprep.subr.bf16.mxu1 %v8244_v29 }
  0x76   :  { %6547 = vmatpush1.bf16.msra.mxu0 %v8241_v27 }
  0x77   :  { %6549 = vmatprep.subr.bf16.mxu0 %v8247_v34 }
  0x78   :  { %6579 = vmatpush1.bf16.msra.mxu1 %v8255_v41 }
  0x79   :  { %6581 = vmatprep.subr.bf16.mxu1 %v8261_v43 }
  0x7a   :  { %6551 = vmatpush1.bf16.msra.mxu0 %v8258_v42 }
  0x7b   :  { %6071 = vmatprep.subr.msk.mxu0 %vm309_vm0, %v8266_v49 }
  0x7c   :  { %6583 = vmatpush1.bf16.msra.mxu1 %v8274_v52 }
  0x7d   :  { %6074 = vmatprep.subr.msk.mxu1 %vm309_vm0, %v8282_v53 }
 0x130   :  { %v384_v3 = vpop.f32.mrb[0].mxu0 }
 0x131   :  { %v482_v6 = vadd.f32 %v8347_v1, %v384_v3  ;;  %v386_v11 = vpop.f32.mrb[1].mxu0 }
 0x132   :  { %v483_v13 = vadd.f32 %v8351_v2, %v386_v11  ;;  %v455_v18 = vpop.f32.mrb[0].mxu1 }
 0x133   :  { %v6067_v14 = vmul.f32 -1.442695, %v482_v6  ;;  %v457_v20 = vpop.f32.mrb[1].mxu1  ;;  %v484_v35 = vadd.f32 %v8364_v30, %v455_v18 }
 0x134   :  { %v6068_v19 = vmul.f32 -1.442695, %v483_v13  ;;  %v485_v28 = vadd.f32 %v8358_v23, %v457_v20 }
 0x135   :  { %7656 = vpow2.f32 %v6067_v14 }
 0x136   :  { %7658 = vpow2.f32 %v6068_v19  ;;  %v6069_v33 = vmul.f32 -1.442695, %v485_v28  ;;  %v6070_v28 = vld [vmem:[%s9591_s24 + $0x2] sm:$0x3] }
 0x138   :  { %7660 = vpow2.f32 %v6069_v33 }
 0x139   :  { %7662 = vtanh.f32 %v484_v35 }
 0x13f   :  { %v7657_v37 = vpop.eup %7656 }
 0x140   :  { %v7659_v39 = vpop.eup %7658  ;;  %v489_v45 = vadd.f32 1.0, %v7657_v37 }
 0x141   :  { %v495_v47 = vadd.f32 1.0, %v7659_v39 }
 0x142   :  { %7664 = vrcp.f32 %v489_v45  ;;  %v7661_v54 = vpop.eup %7660 }
 0x143   :  { %7666 = vrcp.f32 %v495_v47  ;;  %v7663_v55 = vpop.eup %7662  ;;  %v502_v13 = vadd.f32 1.0, %v7661_v54 }
 0x145   :  { %7668 = vrcp.f32 %v502_v13 }
 0x14c   :  { %v7665_v3 = vpop.eup %7664 }
 0x14d   :  { %v7667_v6 = vpop.eup %7666  ;;  %v506_v11 = vmul.f32 %v7665_v3, %v7663_v55 }
 0x14e   :  { %v505_v14 = vmul.f32 0.0, %v7667_v6 }
 0x14f   :  { %v7669_v18 = vpop.eup %7668 }
 0x150   :  { %v8367_v61 = vadd.f32 %v506_v11, %v505_v14 }
 0x152   :  { %7670 = vtanh.f32 %v8367_v61 }
 0x15c   :  { %v7671_v19 = vpop.eup %7670 }
 0x15d   :  { %v509_v20 = vmul.f32 %v7671_v19, %v7669_v18 }
 0x15f   :  { %577 = vmatmul.mubr.f32.vlgmr.msra.gmra.mrb[2].mxu0 %v509_v20  ;;  %648 = vmatmul.mubr.f32.vlgmr.msra.gmra.mrb[2].mxu1 %v509_v20 }
 0x160   :  { %6072 = vmatpush1.msk.msra.mxu0 %vm309_vm0, %v8252_v40  ;;  %721 = vmatprep.mubr.f32.mxu0 %v8032_v0 }
 0x161   :  { %6075 = vmatpush1.msk.msra.mxu1 %vm309_vm0, %v8271_v50  ;;  %792 = vmatprep.mubr.f32.mxu1 %v8032_v0 }
 0x162   :  { %6585 = vmatprep.subr.bf16.mxu0 %v8169_v4  ;;  %6617 = vmatprep.subr.bf16.mxu1 %v8179_v17 }
 0x167   :  { %6073 = vmatmul.mubr.msk.f32.vlgmr.msra.gmra.mrb[2].mxu0 %vm305_vm1, %v6070_v28  ;;  %6076 = vmatmul.mubr.msk.f32.vlgmr.msra.gmra.mrb[2].mxu1 %vm305_vm1, %v6070_v28 }
 0x168   :  { %6587 = vmatpush1.bf16.msra.mxu0 %v8171_v8  ;;  %6619 = vmatpush1.bf16.msra.mxu1 %v8184_v22 }
 0x169   :  { %6589 = vmatprep.subr.bf16.mxu0 %v8173_v9  ;;  %6621 = vmatprep.subr.bf16.mxu1 %v8187_v26 }
 0x16a   :  { %893 = vmatprep.mubr.f32.mxu0 %v8032_v0  ;;  %964 = vmatprep.mubr.f32.mxu1 %v8032_v0 }
 0x16c   :  { %6591 = vmatpush1.bf16.msra.mxu0 %v8177_v16  ;;  %6623 = vmatpush1.bf16.msra.mxu1 %v8194_v32 }
 0x16d   :  { %6593 = vmatprep.subr.bf16.mxu0 %v8182_v21  ;;  %6625 = vmatprep.subr.bf16.mxu1 %v8199_v38 }
 0x170   :  { %6595 = vmatpush1.bf16.msra.mxu0 %v8191_v31  ;;  %6627 = vmatpush1.bf16.msra.mxu1 %v8202_v44 }
 0x171   :  { %6597 = vmatprep.subr.bf16.mxu0 %v8197_v36  ;;  %6629 = vmatprep.subr.bf16.mxu1 %v8208_v48 }
 0x174   :  { %6599 = vmatpush1.bf16.msra.mxu0 %v8205_v46  ;;  %6631 = vmatpush1.bf16.msra.mxu1 %v8214_v57 }
 0x175   :  { %6601 = vmatprep.subr.bf16.mxu0 %v8211_v51  ;;  %6633 = vmatprep.subr.bf16.mxu1 %v8220_v60 }
 0x178   :  { %6603 = vmatpush1.bf16.msra.mxu0 %v8217_v58  ;;  %6635 = vmatpush1.bf16.msra.mxu1 %v8226_v7 }
 0x179   :  { %6605 = vmatprep.subr.bf16.mxu0 %v8223_v63  ;;  %6637 = vmatprep.subr.bf16.mxu1 %v8232_v12 }
 0x17c   :  { %6607 = vmatpush1.bf16.msra.mxu0 %v8229_v10  ;;  %6639 = vmatpush1.bf16.msra.mxu1 %v8238_v25 }
 0x17d   :  { %6609 = vmatprep.subr.bf16.mxu0 %v8235_v15  ;;  %6641 = vmatprep.subr.bf16.mxu1 %v8244_v29 }
 0x180   :  { %6611 = vmatpush1.bf16.msra.mxu0 %v8241_v27  ;;  %6643 = vmatpush1.bf16.msra.mxu1 %v8255_v41 }
 0x181   :  { %6613 = vmatprep.subr.bf16.mxu0 %v8247_v34  ;;  %6645 = vmatprep.subr.bf16.mxu1 %v8261_v43 }
 0x184   :  { %6615 = vmatpush1.bf16.msra.mxu0 %v8258_v42  ;;  %6647 = vmatpush1.bf16.msra.mxu1 %v8274_v52 }
 0x185   :  { %6081 = vmatprep.subr.msk.mxu0 %vm309_vm0, %v8266_v49  ;;  %6084 = vmatprep.subr.msk.mxu1 %vm309_vm0, %v8282_v53 }
 0x23a   :  { %v723_v33 = vpop.f32.mrb[2].mxu0  ;;  %v794_v35 = vpop.f32.mrb[2].mxu1 }
 0x23b   :  { %v799_v37 = vadd.f32 %v723_v33, %v8347_v1  ;;  %v725_v39 = vpop.f32.mrb[3].mxu0  ;;  %v796_v45 = vpop.f32.mrb[3].mxu1  ;;  %v801_v11 = vadd.f32 %v794_v35, %v8364_v30 }
 0x23c   :  { %v800_v47 = vadd.f32 %v725_v39, %v8351_v2  ;;  %v802_v3 = vadd.f32 %v796_v45, %v8358_v23 }
 0x23d   :  { %v6077_v54 = vmul.f32 -1.442695, %v799_v37 }
 0x23e   :  { %v6078_v55 = vmul.f32 -1.442695, %v800_v47  ;;  %v6079_v6 = vmul.f32 -1.442695, %v802_v3 }
 0x23f   :  { %7672 = vpow2.f32 %v6077_v54 }
 0x240   :  { %7674 = vpow2.f32 %v6078_v55 }
 0x241   :  { %7676 = vpow2.f32 %v6079_v6 }
 0x242   :  { %7678 = vtanh.f32 %v801_v11 }
 0x249   :  { %v7673_v13 = vpop.eup %7672 }
 0x24a   :  { %v7675_v14 = vpop.eup %7674  ;;  %v806_v18 = vadd.f32 1.0, %v7673_v13 }
 0x24b   :  { %v812_v19 = vadd.f32 1.0, %v7675_v14  ;;  %v7677_v20 = vpop.eup %7676 }
 0x24c   :  { %7680 = vrcp.f32 %v806_v18  ;;  %v7679_v28 = vpop.eup %7678  ;;  %v819_v47 = vadd.f32 1.0, %v7677_v20 }
 0x24d   :  { %7682 = vrcp.f32 %v812_v19 }
 0x24e   :  { %7684 = vrcp.f32 %v819_v47 }
 0x256   :  { %v7681_v33 = vpop.eup %7680 }
 0x257   :  { %v7683_v37 = vpop.eup %7682  ;;  %v823_v39 = vmul.f32 %v7681_v33, %v7679_v28 }
 0x258   :  { %v822_v54 = vmul.f32 %v7683_v37, %v8367_v61  ;;  %v7685_v35 = vpop.eup %7684  ;;  %v6080_v61 = vld [vmem:[%s9591_s24 + $0x4] sm:$0x3] }
 0x25a   :  { %v8424_v45 = vadd.f32 %v823_v39, %v822_v54 }
 0x25c   :  { %7686 = vtanh.f32 %v8424_v45 }
 0x266   :  { %v7687_v55 = vpop.eup %7686 }
 0x267   :  { %v826_v3 = vmul.f32 %v7687_v55, %v7685_v35 }
 0x269   :  { %894 = vmatmul.mubr.f32.vlgmr.msra.gmra.mrb[4].mxu0 %v826_v3  ;;  %965 = vmatmul.mubr.f32.vlgmr.msra.gmra.mrb[4].mxu1 %v826_v3 }
 0x26a   :  { %6082 = vmatpush1.msk.msra.mxu0 %vm309_vm0, %v8252_v40  ;;  %1038 = vmatprep.mubr.f32.mxu0 %v8032_v0 }
 0x26b   :  { %6085 = vmatpush1.msk.msra.mxu1 %vm309_vm0, %v8271_v50  ;;  %1109 = vmatprep.mubr.f32.mxu1 %v8032_v0 }
 0x26c   :  { %6649 = vmatprep.subr.bf16.mxu0 %v8169_v4  ;;  %6681 = vmatprep.subr.bf16.mxu1 %v8179_v17 }
 0x271   :  { %6083 = vmatmul.mubr.msk.f32.vlgmr.msra.gmra.mrb[4].mxu0 %vm305_vm1, %v6080_v61  ;;  %6086 = vmatmul.mubr.msk.f32.vlgmr.msra.gmra.mrb[4].mxu1 %vm305_vm1, %v6080_v61 }
 0x272   :  { %6651 = vmatpush1.bf16.msra.mxu0 %v8171_v8  ;;  %6683 = vmatpush1.bf16.msra.mxu1 %v8184_v22 }
 0x273   :  { %6653 = vmatprep.subr.bf16.mxu0 %v8173_v9  ;;  %6685 = vmatprep.subr.bf16.mxu1 %v8187_v26 }
 0x274   :  { %1210 = vmatprep.mubr.f32.mxu0 %v8032_v0  ;;  %1281 = vmatprep.mubr.f32.mxu1 %v8032_v0 }
 0x276   :  { %6655 = vmatpush1.bf16.msra.mxu0 %v8177_v16  ;;  %6687 = vmatpush1.bf16.msra.mxu1 %v8194_v32 }
 0x277   :  { %6657 = vmatprep.subr.bf16.mxu0 %v8182_v21  ;;  %6689 = vmatprep.subr.bf16.mxu1 %v8199_v38 }
 0x27a   :  { %6659 = vmatpush1.bf16.msra.mxu0 %v8191_v31  ;;  %6691 = vmatpush1.bf16.msra.mxu1 %v8202_v44 }
 0x27b   :  { %6661 = vmatprep.subr.bf16.mxu0 %v8197_v36  ;;  %6693 = vmatprep.subr.bf16.mxu1 %v8208_v48 }
 0x27e   :  { %6663 = vmatpush1.bf16.msra.mxu0 %v8205_v46  ;;  %6695 = vmatpush1.bf16.msra.mxu1 %v8214_v57 }
 0x27f   :  { %6665 = vmatprep.subr.bf16.mxu0 %v8211_v51  ;;  %6697 = vmatprep.subr.bf16.mxu1 %v8220_v60 }
 0x282   :  { %6667 = vmatpush1.bf16.msra.mxu0 %v8217_v58  ;;  %6699 = vmatpush1.bf16.msra.mxu1 %v8226_v7 }
 0x283   :  { %6669 = vmatprep.subr.bf16.mxu0 %v8223_v63  ;;  %6701 = vmatprep.subr.bf16.mxu1 %v8232_v12 }
 0x286   :  { %6671 = vmatpush1.bf16.msra.mxu0 %v8229_v10  ;;  %6703 = vmatpush1.bf16.msra.mxu1 %v8238_v25 }
 0x287   :  { %6673 = vmatprep.subr.bf16.mxu0 %v8235_v15  ;;  %6705 = vmatprep.subr.bf16.mxu1 %v8244_v29 }
 0x28a   :  { %6675 = vmatpush1.bf16.msra.mxu0 %v8241_v27  ;;  %6707 = vmatpush1.bf16.msra.mxu1 %v8255_v41 }
 0x28b   :  { %6677 = vmatprep.subr.bf16.mxu0 %v8247_v34  ;;  %6709 = vmatprep.subr.bf16.mxu1 %v8261_v43 }
 0x28e   :  { %6679 = vmatpush1.bf16.msra.mxu0 %v8258_v42  ;;  %6711 = vmatpush1.bf16.msra.mxu1 %v8274_v52 }
 0x28f   :  { %6091 = vmatprep.subr.msk.mxu0 %vm309_vm0, %v8266_v49  ;;  %6094 = vmatprep.subr.msk.mxu1 %vm309_vm0, %v8282_v53 }
 0x344   :  { %v1040_v6 = vpop.f32.mrb[4].mxu0  ;;  %v1111_v11 = vpop.f32.mrb[4].mxu1 }
 0x345   :  { %v1116_v13 = vadd.f32 %v1040_v6, %v8347_v1  ;;  %v1042_v14 = vpop.f32.mrb[5].mxu0  ;;  %v1113_v18 = vpop.f32.mrb[5].mxu1  ;;  %v1118_v39 = vadd.f32 %v1111_v11, %v8364_v30 }
 0x346   :  { %v1117_v19 = vadd.f32 %v1042_v14, %v8351_v2  ;;  %v1119_v33 = vadd.f32 %v1113_v18, %v8358_v23 }
 0x347   :  { %v6087_v20 = vmul.f32 -1.442695, %v1116_v13 }
 0x348   :  { %v6088_v28 = vmul.f32 -1.442695, %v1117_v19  ;;  %v6089_v37 = vmul.f32 -1.442695, %v1119_v33 }
 0x349   :  { %7688 = vpow2.f32 %v6087_v20 }
 0x34a   :  { %7690 = vpow2.f32 %v6088_v28 }
 0x34b   :  { %7692 = vpow2.f32 %v6089_v37 }
 0x34c   :  { %7694 = vtanh.f32 %v1118_v39 }
 0x353   :  { %v7689_v47 = vpop.eup %7688 }
 0x354   :  { %v7691_v54 = vpop.eup %7690  ;;  %v1123_v35 = vadd.f32 1.0, %v7689_v47 }
 0x355   :  { %v1129_v55 = vadd.f32 1.0, %v7691_v54  ;;  %v7693_v3 = vpop.eup %7692 }
 0x356   :  { %7696 = vrcp.f32 %v1123_v35  ;;  %v7695_v61 = vpop.eup %7694  ;;  %v1136_v19 = vadd.f32 1.0, %v7693_v3 }
 0x357   :  { %7698 = vrcp.f32 %v1129_v55 }
 0x358   :  { %7700 = vrcp.f32 %v1136_v19 }
 0x360   :  { %v7697_v6 = vpop.eup %7696 }
 0x361   :  { %v7699_v13 = vpop.eup %7698  ;;  %v1140_v14 = vmul.f32 %v7697_v6, %v7695_v61 }
 0x362   :  { %v1139_v20 = vmul.f32 %v7699_v13, %v8424_v45  ;;  %v7701_v11 = vpop.eup %7700  ;;  %v6090_v45 = vld [vmem:[%s9591_s24 + $0x6] sm:$0x3] }
 0x364   :  { %v8481_v18 = vadd.f32 %v1140_v14, %v1139_v20 }
 0x366   :  { %7702 = vtanh.f32 %v8481_v18 }
 0x370   :  { %v7703_v28 = vpop.eup %7702 }
 0x371   :  { %v1143_v33 = vmul.f32 %v7703_v28, %v7701_v11 }
 0x373   :  { %1211 = vmatmul.mubr.f32.vlgmr.msra.gmra.mrb[6].mxu0 %v1143_v33  ;;  %1282 = vmatmul.mubr.f32.vlgmr.msra.gmra.mrb[6].mxu1 %v1143_v33 }
 0x374   :  { %6092 = vmatpush1.msk.msra.mxu0 %vm309_vm0, %v8252_v40  ;;  %1355 = vmatprep.mubr.f32.mxu0 %v8032_v0 }
 0x375   :  { %6095 = vmatpush1.msk.msra.mxu1 %vm309_vm0, %v8271_v50  ;;  %1426 = vmatprep.mubr.f32.mxu1 %v8032_v0 }
 0x376   :  { %6713 = vmatprep.subr.bf16.mxu0 %v8169_v4  ;;  %6745 = vmatprep.subr.bf16.mxu1 %v8179_v17 }
 0x37b   :  { %6093 = vmatmul.mubr.msk.f32.vlgmr.msra.gmra.mrb[6].mxu0 %vm305_vm1, %v6090_v45  ;;  %6096 = vmatmul.mubr.msk.f32.vlgmr.msra.gmra.mrb[6].mxu1 %vm305_vm1, %v6090_v45 }
 0x37c   :  { %6715 = vmatpush1.bf16.msra.mxu0 %v8171_v8  ;;  %6747 = vmatpush1.bf16.msra.mxu1 %v8184_v22 }
 0x37d   :  { %6717 = vmatprep.subr.bf16.mxu0 %v8173_v9  ;;  %6749 = vmatprep.subr.bf16.mxu1 %v8187_v26 }
 0x37e   :  { %1527 = vmatprep.mubr.f32.mxu0 %v8032_v0  ;;  %1598 = vmatprep.mubr.f32.mxu1 %v8032_v0 }
 0x380   :  { %6719 = vmatpush1.bf16.msra.mxu0 %v8177_v16  ;;  %6751 = vmatpush1.bf16.msra.mxu1 %v8194_v32 }
 0x381   :  { %6721 = vmatprep.subr.bf16.mxu0 %v8182_v21  ;;  %6753 = vmatprep.subr.bf16.mxu1 %v8199_v38 }
 0x384   :  { %6723 = vmatpush1.bf16.msra.mxu0 %v8191_v31  ;;  %6755 = vmatpush1.bf16.msra.mxu1 %v8202_v44 }
 0x385   :  { %6725 = vmatprep.subr.bf16.mxu0 %v8197_v36  ;;  %6757 = vmatprep.subr.bf16.mxu1 %v8208_v48 }
 0x388   :  { %6727 = vmatpush1.bf16.msra.mxu0 %v8205_v46  ;;  %6759 = vmatpush1.bf16.msra.mxu1 %v8214_v57 }
 0x389   :  { %6729 = vmatprep.subr.bf16.mxu0 %v8211_v51  ;;  %6761 = vmatprep.subr.bf16.mxu1 %v8220_v60 }
 0x38c   :  { %6731 = vmatpush1.bf16.msra.mxu0 %v8217_v58  ;;  %6763 = vmatpush1.bf16.msra.mxu1 %v8226_v7 }
 0x38d   :  { %6733 = vmatprep.subr.bf16.mxu0 %v8223_v63  ;;  %6765 = vmatprep.subr.bf16.mxu1 %v8232_v12 }
 0x390   :  { %6735 = vmatpush1.bf16.msra.mxu0 %v8229_v10  ;;  %6767 = vmatpush1.bf16.msra.mxu1 %v8238_v25 }
 0x391   :  { %6737 = vmatprep.subr.bf16.mxu0 %v8235_v15  ;;  %6769 = vmatprep.subr.bf16.mxu1 %v8244_v29 }
 0x394   :  { %6739 = vmatpush1.bf16.msra.mxu0 %v8241_v27  ;;  %6771 = vmatpush1.bf16.msra.mxu1 %v8255_v41 }
 0x395   :  { %6741 = vmatprep.subr.bf16.mxu0 %v8247_v34  ;;  %6773 = vmatprep.subr.bf16.mxu1 %v8261_v43 }
 0x398   :  { %6743 = vmatpush1.bf16.msra.mxu0 %v8258_v42  ;;  %6775 = vmatpush1.bf16.msra.mxu1 %v8274_v52 }
 0x399   :  { %6101 = vmatprep.subr.msk.mxu0 %vm309_vm0, %v8266_v49  ;;  %6104 = vmatprep.subr.msk.mxu1 %vm309_vm0, %v8282_v53 }
 0x44e   :  { %v1357_v37 = vpop.f32.mrb[6].mxu0  ;;  %v1428_v39 = vpop.f32.mrb[6].mxu1 }
 0x44f   :  { %v1433_v47 = vadd.f32 %v1357_v37, %v8347_v1  ;;  %v1359_v54 = vpop.f32.mrb[7].mxu0  ;;  %v1430_v35 = vpop.f32.mrb[7].mxu1  ;;  %v1435_v14 = vadd.f32 %v1428_v39, %v8364_v30 }
 0x450   :  { %v1434_v55 = vadd.f32 %v1359_v54, %v8351_v2  ;;  %v1436_v6 = vadd.f32 %v1430_v35, %v8358_v23 }
 0x451   :  { %v6097_v3 = vmul.f32 -1.442695, %v1433_v47 }
 0x452   :  { %v6098_v61 = vmul.f32 -1.442695, %v1434_v55  ;;  %v6099_v13 = vmul.f32 -1.442695, %v1436_v6 }
 0x453   :  { %7704 = vpow2.f32 %v6097_v3 }
 0x454   :  { %7706 = vpow2.f32 %v6098_v61 }
 0x455   :  { %7708 = vpow2.f32 %v6099_v13 }
 0x456   :  { %7710 = vtanh.f32 %v1435_v14 }
 0x45d   :  { %v7705_v19 = vpop.eup %7704 }
 0x45e   :  { %v7707_v20 = vpop.eup %7706  ;;  %v1440_v11 = vadd.f32 1.0, %v7705_v19 }
 0x45f   :  { %v1446_v28 = vadd.f32 1.0, %v7707_v20  ;;  %v7709_v33 = vpop.eup %7708 }
 0x460   :  { %7712 = vrcp.f32 %v1440_v11  ;;  %v7711_v45 = vpop.eup %7710  ;;  %v1453_v55 = vadd.f32 1.0, %v7709_v33 }
 0x461   :  { %7714 = vrcp.f32 %v1446_v28 }
 0x462   :  { %7716 = vrcp.f32 %v1453_v55 }
 0x46a   :  { %v7713_v37 = vpop.eup %7712 }
 0x46b   :  { %v7715_v47 = vpop.eup %7714  ;;  %v1457_v54 = vmul.f32 %v7713_v37, %v7711_v45 }
 0x46c   :  { %v1456_v3 = vmul.f32 %v7715_v47, %v8481_v18  ;;  %v7717_v39 = vpop.eup %7716  ;;  %v6100_v18 = vld [vmem:[%s9591_s24 + $0x8] sm:$0x3] }
 0x46e   :  { %v8538_v35 = vadd.f32 %v1457_v54, %v1456_v3 }
 0x470   :  { %7718 = vtanh.f32 %v8538_v35 }
 0x47a   :  { %v7719_v61 = vpop.eup %7718 }
 0x47b   :  { %v1460_v6 = vmul.f32 %v7719_v61, %v7717_v39 }
 0x47d   :  { %1528 = vmatmul.mubr.f32.vlgmr.msra.gmra.mrb[8].mxu0 %v1460_v6  ;;  %1599 = vmatmul.mubr.f32.vlgmr.msra.gmra.mrb[8].mxu1 %v1460_v6 }
 0x47e   :  { %6102 = vmatpush1.msk.msra.mxu0 %vm309_vm0, %v8252_v40  ;;  %1672 = vmatprep.mubr.f32.mxu0 %v8032_v0 }
 0x47f   :  { %6105 = vmatpush1.msk.msra.mxu1 %vm309_vm0, %v8271_v50  ;;  %1743 = vmatprep.mubr.f32.mxu1 %v8032_v0 }
 0x480   :  { %6777 = vmatprep.subr.bf16.mxu0 %v8169_v4  ;;  %6809 = vmatprep.subr.bf16.mxu1 %v8179_v17 }
 0x485   :  { %6103 = vmatmul.mubr.msk.f32.vlgmr.msra.gmra.mrb[8].mxu0 %vm305_vm1, %v6100_v18  ;;  %6106 = vmatmul.mubr.msk.f32.vlgmr.msra.gmra.mrb[8].mxu1 %vm305_vm1, %v6100_v18 }
 0x486   :  { %6779 = vmatpush1.bf16.msra.mxu0 %v8171_v8  ;;  %6811 = vmatpush1.bf16.msra.mxu1 %v8184_v22 }
 0x487   :  { %6781 = vmatprep.subr.bf16.mxu0 %v8173_v9  ;;  %6813 = vmatprep.subr.bf16.mxu1 %v8187_v26 }
 0x488   :  { %1844 = vmatprep.mubr.f32.mxu0 %v8032_v0  ;;  %1915 = vmatprep.mubr.f32.mxu1 %v8032_v0 }
 0x48a   :  { %6783 = vmatpush1.bf16.msra.mxu0 %v8177_v16  ;;  %6815 = vmatpush1.bf16.msra.mxu1 %v8194_v32 }
 0x48b   :  { %6785 = vmatprep.subr.bf16.mxu0 %v8182_v21  ;;  %6817 = vmatprep.subr.bf16.mxu1 %v8199_v38 }
 0x48e   :  { %6787 = vmatpush1.bf16.msra.mxu0 %v8191_v31  ;;  %6819 = vmatpush1.bf16.msra.mxu1 %v8202_v44 }
 0x48f   :  { %6789 = vmatprep.subr.bf16.mxu0 %v8197_v36  ;;  %6821 = vmatprep.subr.bf16.mxu1 %v8208_v48 }
 0x492   :  { %6791 = vmatpush1.bf16.msra.mxu0 %v8205_v46  ;;  %6823 = vmatpush1.bf16.msra.mxu1 %v8214_v57 }
 0x493   :  { %6793 = vmatprep.subr.bf16.mxu0 %v8211_v51  ;;  %6825 = vmatprep.subr.bf16.mxu1 %v8220_v60 }
 0x496   :  { %6795 = vmatpush1.bf16.msra.mxu0 %v8217_v58  ;;  %6827 = vmatpush1.bf16.msra.mxu1 %v8226_v7 }
 0x497   :  { %6797 = vmatprep.subr.bf16.mxu0 %v8223_v63  ;;  %6829 = vmatprep.subr.bf16.mxu1 %v8232_v12 }
 0x49a   :  { %6799 = vmatpush1.bf16.msra.mxu0 %v8229_v10  ;;  %6831 = vmatpush1.bf16.msra.mxu1 %v8238_v25 }
 0x49b   :  { %6801 = vmatprep.subr.bf16.mxu0 %v8235_v15  ;;  %6833 = vmatprep.subr.bf16.mxu1 %v8244_v29 }
 0x49e   :  { %6803 = vmatpush1.bf16.msra.mxu0 %v8241_v27  ;;  %6835 = vmatpush1.bf16.msra.mxu1 %v8255_v41 }
 0x49f   :  { %6805 = vmatprep.subr.bf16.mxu0 %v8247_v34  ;;  %6837 = vmatprep.subr.bf16.mxu1 %v8261_v43 }
 0x4a2   :  { %6807 = vmatpush1.bf16.msra.mxu0 %v8258_v42  ;;  %6839 = vmatpush1.bf16.msra.mxu1 %v8274_v52 }
 0x4a3   :  { %6111 = vmatprep.subr.msk.mxu0 %vm309_vm0, %v8266_v49  ;;  %6114 = vmatprep.subr.msk.mxu1 %vm309_vm0, %v8282_v53 }
 0x558   :  { %v1674_v13 = vpop.f32.mrb[8].mxu0  ;;  %v1745_v14 = vpop.f32.mrb[8].mxu1 }
 0x559   :  { %v1750_v19 = vadd.f32 %v1674_v13, %v8347_v1  ;;  %v1676_v20 = vpop.f32.mrb[9].mxu0  ;;  %v1747_v11 = vpop.f32.mrb[9].mxu1  ;;  %v1752_v54 = vadd.f32 %v1745_v14, %v8364_v30 }
 0x55a   :  { %v1751_v28 = vadd.f32 %v1676_v20, %v8351_v2  ;;  %v1753_v37 = vadd.f32 %v1747_v11, %v8358_v23 }
 0x55b   :  { %v6107_v33 = vmul.f32 -1.442695, %v1750_v19 }
 0x55c   :  { %v6108_v45 = vmul.f32 -1.442695, %v1751_v28  ;;  %v6109_v47 = vmul.f32 -1.442695, %v1753_v37 }
 0x55d   :  { %7720 = vpow2.f32 %v6107_v33 }
 0x55e   :  { %7722 = vpow2.f32 %v6108_v45 }
 0x55f   :  { %7724 = vpow2.f32 %v6109_v47 }
 0x560   :  { %7726 = vtanh.f32 %v1752_v54 }
 0x567   :  { %v7721_v55 = vpop.eup %7720 }
 0x568   :  { %v7723_v3 = vpop.eup %7722  ;;  %v1757_v39 = vadd.f32 1.0, %v7721_v55 }
 0x569   :  { %v1763_v61 = vadd.f32 1.0, %v7723_v3  ;;  %v7725_v6 = vpop.eup %7724 }
 0x56a   :  { %7728 = vrcp.f32 %v1757_v39  ;;  %v7727_v18 = vpop.eup %7726  ;;  %v1770_v28 = vadd.f32 1.0, %v7725_v6 }
 0x56b   :  { %7730 = vrcp.f32 %v1763_v61 }
 0x56c   :  { %7732 = vrcp.f32 %v1770_v28 }
 0x574   :  { %v7729_v13 = vpop.eup %7728 }
 0x575   :  { %v7731_v19 = vpop.eup %7730  ;;  %v1774_v20 = vmul.f32 %v7729_v13, %v7727_v18 }
 0x576   :  { %v1773_v33 = vmul.f32 %v7731_v19, %v8538_v35  ;;  %v7733_v14 = vpop.eup %7732  ;;  %v6110_v35 = vld [vmem:[%s9591_s24 + $0xa] sm:$0x3] }
 0x578   :  { %v8595_v11 = vadd.f32 %v1774_v20, %v1773_v33 }
 0x57a   :  { %7734 = vtanh.f32 %v8595_v11 }
 0x584   :  { %v7735_v45 = vpop.eup %7734 }
 0x585   :  { %v1777_v37 = vmul.f32 %v7735_v45, %v7733_v14 }
 0x587   :  { %1845 = vmatmul.mubr.f32.vlgmr.msra.gmra.mrb[10].mxu0 %v1777_v37  ;;  %1916 = vmatmul.mubr.f32.vlgmr.msra.gmra.mrb[10].mxu1 %v1777_v37 }
 0x588   :  { %6112 = vmatpush1.msk.msra.mxu0 %vm309_vm0, %v8252_v40  ;;  %1989 = vmatprep.mubr.f32.mxu0 %v8032_v0 }
 0x589   :  { %6115 = vmatpush1.msk.msra.mxu1 %vm309_vm0, %v8271_v50  ;;  %2060 = vmatprep.mubr.f32.mxu1 %v8032_v0 }
 0x58a   :  { %6841 = vmatprep.subr.bf16.mxu0 %v8169_v4  ;;  %6873 = vmatprep.subr.bf16.mxu1 %v8179_v17 }
 0x58f   :  { %6113 = vmatmul.mubr.msk.f32.vlgmr.msra.gmra.mrb[10].mxu0 %vm305_vm1, %v6110_v35  ;;  %6116 = vmatmul.mubr.msk.f32.vlgmr.msra.gmra.mrb[10].mxu1 %vm305_vm1, %v6110_v35 }
 0x590   :  { %6843 = vmatpush1.bf16.msra.mxu0 %v8171_v8  ;;  %6875 = vmatpush1.bf16.msra.mxu1 %v8184_v22 }
 0x591   :  { %6845 = vmatprep.subr.bf16.mxu0 %v8173_v9  ;;  %6877 = vmatprep.subr.bf16.mxu1 %v8187_v26 }
 0x592   :  { %2161 = vmatprep.mubr.f32.mxu0 %v8032_v0  ;;  %2232 = vmatprep.mubr.f32.mxu1 %v8032_v0 }
 0x594   :  { %6847 = vmatpush1.bf16.msra.mxu0 %v8177_v16  ;;  %6879 = vmatpush1.bf16.msra.mxu1 %v8194_v32 }
 0x595   :  { %6849 = vmatprep.subr.bf16.mxu0 %v8182_v21  ;;  %6881 = vmatprep.subr.bf16.mxu1 %v8199_v38 }
 0x598   :  { %6851 = vmatpush1.bf16.msra.mxu0 %v8191_v31  ;;  %6883 = vmatpush1.bf16.msra.mxu1 %v8202_v44 }
 0x599   :  { %6853 = vmatprep.subr.bf16.mxu0 %v8197_v36  ;;  %6885 = vmatprep.subr.bf16.mxu1 %v8208_v48 }
 0x59c   :  { %6855 = vmatpush1.bf16.msra.mxu0 %v8205_v46  ;;  %6887 = vmatpush1.bf16.msra.mxu1 %v8214_v57 }
 0x59d   :  { %6857 = vmatprep.subr.bf16.mxu0 %v8211_v51  ;;  %6889 = vmatprep.subr.bf16.mxu1 %v8220_v60 }
 0x5a0   :  { %6859 = vmatpush1.bf16.msra.mxu0 %v8217_v58  ;;  %6891 = vmatpush1.bf16.msra.mxu1 %v8226_v7 }
 0x5a1   :  { %6861 = vmatprep.subr.bf16.mxu0 %v8223_v63  ;;  %6893 = vmatprep.subr.bf16.mxu1 %v8232_v12 }
 0x5a4   :  { %6863 = vmatpush1.bf16.msra.mxu0 %v8229_v10  ;;  %6895 = vmatpush1.bf16.msra.mxu1 %v8238_v25 }
 0x5a5   :  { %6865 = vmatprep.subr.bf16.mxu0 %v8235_v15  ;;  %6897 = vmatprep.subr.bf16.mxu1 %v8244_v29 }
 0x5a8   :  { %6867 = vmatpush1.bf16.msra.mxu0 %v8241_v27  ;;  %6899 = vmatpush1.bf16.msra.mxu1 %v8255_v41 }
 0x5a9   :  { %6869 = vmatprep.subr.bf16.mxu0 %v8247_v34  ;;  %6901 = vmatprep.subr.bf16.mxu1 %v8261_v43 }
 0x5ac   :  { %6871 = vmatpush1.bf16.msra.mxu0 %v8258_v42  ;;  %6903 = vmatpush1.bf16.msra.mxu1 %v8274_v52 }
 0x5ad   :  { %6121 = vmatprep.subr.msk.mxu0 %vm309_vm0, %v8266_v49  ;;  %6124 = vmatprep.subr.msk.mxu1 %vm309_vm0, %v8282_v53 }
 0x662   :  { %v1991_v47 = vpop.f32.mrb[10].mxu0  ;;  %v2062_v54 = vpop.f32.mrb[10].mxu1 }
 0x663   :  { %v2067_v55 = vadd.f32 %v1991_v47, %v8347_v1  ;;  %v1993_v3 = vpop.f32.mrb[11].mxu0  ;;  %v2064_v39 = vpop.f32.mrb[11].mxu1  ;;  %v2069_v20 = vadd.f32 %v2062_v54, %v8364_v30 }
 0x664   :  { %v2068_v61 = vadd.f32 %v1993_v3, %v8351_v2  ;;  %v2070_v13 = vadd.f32 %v2064_v39, %v8358_v23 }
 0x665   :  { %v6117_v6 = vmul.f32 -1.442695, %v2067_v55 }
 0x666   :  { %v6118_v18 = vmul.f32 -1.442695, %v2068_v61  ;;  %v6119_v19 = vmul.f32 -1.442695, %v2070_v13 }
 0x667   :  { %7736 = vpow2.f32 %v6117_v6 }
 0x668   :  { %7738 = vpow2.f32 %v6118_v18 }
 0x669   :  { %7740 = vpow2.f32 %v6119_v19  ;;  %v2733_v19 = vld [vmem:[%s9563_s5 + $0x20] sm:$0xff] }
 0x66a   :  { %7742 = vtanh.f32 %v2069_v20  ;;  %v2734_v20 = vld [vmem:[%s9563_s5 + $0x28] sm:$0xff] }
 0x671   :  { %v7737_v28 = vpop.eup %7736 }
 0x672   :  { %v7739_v33 = vpop.eup %7738  ;;  %v2074_v14 = vadd.f32 1.0, %v7737_v28  ;;  %v6975_v28 = vpack.c.bf16 %v2734_v20, %v2733_v19  ;;  %v3012_v20 = vld [vmem:[#allocation6 + $0x30] sm:$0xff] }
 0x673   :  { %v2080_v45 = vadd.f32 1.0, %v7739_v33  ;;  %v7741_v37 = vpop.eup %7740  ;;  %v2735_v33 = vld [vmem:[%s9563_s5 + $0x30] sm:$0xff] }
 0x674   :  { %7744 = vrcp.f32 %v2074_v14  ;;  %v7743_v35 = vpop.eup %7742  ;;  %v2087_v61 = vadd.f32 1.0, %v7741_v37  ;;  %v2736_v14 = vld [vmem:[%s9563_s5 + $0x38] sm:$0xff]  ;;  %v2737_v37 = vld [vmem:[%s9563_s5 + $0x40] sm:$0xff] }
 0x675   :  { %7746 = vrcp.f32 %v2080_v45  ;;  %v6978_v45 = vpack.c.bf16 %v2736_v14, %v2735_v33  ;;  %v3021_v33 = vld [vmem:[#allocation6 + $0x78] sm:$0xff] }
 0x676   :  { %7748 = vrcp.f32 %v2087_v61  ;;  %v2741_v61 = vld [vmem:[%s9563_s5 + $0x60] sm:$0xff] }
 0x67e   :  { %v7745_v47 = vpop.eup %7744 }
 0x67f   :  { %v7747_v55 = vpop.eup %7746  ;;  %v2091_v3 = vmul.f32 %v7745_v47, %v7743_v35  ;;  %v2738_v35 = vld [vmem:[%s9563_s5 + $0x48] sm:$0xff] }
 0x680   :  { %v2090_v6 = vmul.f32 %v7747_v55, %v8595_v11  ;;  %v7749_v54 = vpop.eup %7748  ;;  %v6120_v11 = vld [vmem:[%s9591_s24 + $0xc] sm:$0x3]  ;;  %v6981_v47 = vpack.c.bf16 %v2738_v35, %v2737_v37  ;;  %v2739_v55 = vld [vmem:[%s9563_s5 + $0x50] sm:$0xff] }
 0x682   :  { %v8652_v39 = vadd.f32 %v2091_v3, %v2090_v6  ;;  %v2740_v3 = vld [vmem:[%s9563_s5 + $0x58] sm:$0xff] }
 0x683   :  { %v6984_v6 = vpack.c.bf16 %v2740_v3, %v2739_v55  ;;  %v3016_v55 = vld [vmem:[#allocation6 + $0x50] sm:$0xff] }
 0x684   :  { %7750 = vtanh.f32 %v8652_v39  ;;  %v3020_v3 = vld [vmem:[#allocation6 + $0x70] sm:$0xff] }
 0x68e   :  { %v7751_v18 = vpop.eup %7750 }
 0x68f   :  { %v2094_v13 = vmul.f32 %v7751_v18, %v7749_v54  ;;  %v2743_v18 = vld [vmem:[%s9563_s5 + $0x70] sm:$0xff] }
 0x691   :  { %2162 = vmatmul.mubr.f32.vlgmr.msra.gmra.mrb[12].mxu0 %v2094_v13  ;;  %2233 = vmatmul.mubr.f32.vlgmr.msra.gmra.mrb[12].mxu1 %v2094_v13  ;;  %v2744_v13 = vld [vmem:[%s9563_s5 + $0x78] sm:$0xff] }
 0x692   :  { %6122 = vmatpush1.msk.msra.mxu0 %vm309_vm0, %v8252_v40  ;;  %2306 = vmatprep.mubr.f32.mxu0 %v8032_v0  ;;  %v6130_v40 = vld [vmem:[%s9591_s24 + $0xe] sm:$0x3] }
 0x693   :  { %6125 = vmatpush1.msk.msra.mxu1 %vm309_vm0, %v8271_v50  ;;  %2377 = vmatprep.mubr.f32.mxu1 %v8032_v0  ;;  %v2731_v50 = vld [vmem:[%s9563_s5 + $0x10] sm:$0xff] }
 0x694   :  { %6905 = vmatprep.subr.bf16.mxu0 %v8169_v4  ;;  %6937 = vmatprep.subr.bf16.mxu1 %v8179_v17 }
 0x699   :  { %6123 = vmatmul.mubr.msk.f32.vlgmr.msra.gmra.mrb[12].mxu0 %vm305_vm1, %v6120_v11  ;;  %6126 = vmatmul.mubr.msk.f32.vlgmr.msra.gmra.mrb[12].mxu1 %vm305_vm1, %v6120_v11  ;;  %v6990_v11 = vpack.c.bf16 %v2744_v13, %v2743_v18  ;;  %v3028_v18 = vld [vmem:[#allocation6 + $0xb0] sm:$0xff]  ;;  %v3033_v13 = vld [vmem:[#allocation6 + $0xd8] sm:$0xff] }
 0x69a   :  { %6907 = vmatpush1.bf16.msra.mxu0 %v8171_v8  ;;  %6939 = vmatpush1.bf16.msra.mxu1 %v8184_v22 }
 0x69b   :  { %6909 = vmatprep.subr.bf16.mxu0 %v8173_v9  ;;  %6941 = vmatprep.subr.bf16.mxu1 %v8187_v26 }
 0x69c   :  { %2478 = vmatprep.mubr.f32.mxu0 %v8032_v0  ;;  %2549 = vmatprep.mubr.f32.mxu1 %v8032_v0 }
 0x69e   :  { %6911 = vmatpush1.bf16.msra.mxu0 %v8177_v16  ;;  %6943 = vmatpush1.bf16.msra.mxu1 %v8194_v32 }
 0x69f   :  { %6913 = vmatprep.subr.bf16.mxu0 %v8182_v21  ;;  %6945 = vmatprep.subr.bf16.mxu1 %v8199_v38 }
 0x6a2   :  { %6915 = vmatpush1.bf16.msra.mxu0 %v8191_v31  ;;  %6947 = vmatpush1.bf16.msra.mxu1 %v8202_v44 }
 0x6a3   :  { %6917 = vmatprep.subr.bf16.mxu0 %v8197_v36  ;;  %6949 = vmatprep.subr.bf16.mxu1 %v8208_v48 }
 0x6a6   :  { %6919 = vmatpush1.bf16.msra.mxu0 %v8205_v46  ;;  %6951 = vmatpush1.bf16.msra.mxu1 %v8214_v57 }
 0x6a7   :  { %6921 = vmatprep.subr.bf16.mxu0 %v8211_v51  ;;  %6953 = vmatprep.subr.bf16.mxu1 %v8220_v60 }
 0x6aa   :  { %6923 = vmatpush1.bf16.msra.mxu0 %v8217_v58  ;;  %6955 = vmatpush1.bf16.msra.mxu1 %v8226_v7 }
 0x6ab   :  { %6925 = vmatprep.subr.bf16.mxu0 %v8223_v63  ;;  %6957 = vmatprep.subr.bf16.mxu1 %v8232_v12 }
 0x6ae   :  { %6927 = vmatpush1.bf16.msra.mxu0 %v8229_v10  ;;  %6959 = vmatpush1.bf16.msra.mxu1 %v8238_v25 }
 0x6af   :  { %6929 = vmatprep.subr.bf16.mxu0 %v8235_v15  ;;  %6961 = vmatprep.subr.bf16.mxu1 %v8244_v29  ;;  %v7978_v29 = vld [vmem:[%s9590_s29] sm:$0xff] }
 0x6b2   :  { %6931 = vmatpush1.bf16.msra.mxu0 %v8241_v27  ;;  %6963 = vmatpush1.bf16.msra.mxu1 %v8255_v41  ;;  %v2729_v41 = vld [vmem:[%s9563_s5] sm:$0xff] }
 0x6b3   :  { %6933 = vmatprep.subr.bf16.mxu0 %v8247_v34  ;;  %6965 = vmatprep.subr.bf16.mxu1 %v8261_v43  ;;  %v7979_v34 = vld [vmem:[%s9590_s29 + $0x8] sm:$0xff] }
 0x6b6   :  { %6935 = vmatpush1.bf16.msra.mxu0 %v8258_v42  ;;  %6967 = vmatpush1.bf16.msra.mxu1 %v8274_v52  ;;  %v2730_v42 = vld [vmem:[%s9563_s5 + $0x8] sm:$0xff]  ;;  %v2732_v52 = vld [vmem:[%s9563_s5 + $0x18] sm:$0xff] }
 0x6b7   :  { %6131 = vmatprep.subr.msk.mxu0 %vm309_vm0, %v8266_v49  ;;  %6134 = vmatprep.subr.msk.mxu1 %vm309_vm0, %v8282_v53  ;;  %v6969_v43 = vpack.c.bf16 %v2730_v42, %v2729_v41  ;;  %v8033_v49 = vmov 0.0|0.0   ;;  %v6972_v53 = vpack.c.bf16 %v2732_v52, %v2731_v50 }
 0x76c   :  { %v2308_v4 = vpop.f32.mrb[12].mxu0  ;;  %v2379_v8 = vpop.f32.mrb[12].mxu1 }
 0x76d   :  { %v2384_v9 = vadd.f32 %v2308_v4, %v8347_v1  ;;  %v2310_v16 = vpop.f32.mrb[13].mxu0  ;;  %v2381_v17 = vpop.f32.mrb[13].mxu1  ;;  %v2386_v36 = vadd.f32 %v2379_v8, %v8364_v30  ;;  %v3009_v4 = vld [vmem:[#allocation6 + $0x18] sm:$0xff] }
 0x76e   :  { %v2385_v21 = vadd.f32 %v2310_v16, %v8351_v2  ;;  %v2387_v31 = vadd.f32 %v2381_v17, %v8358_v23  ;;  %v3013_v8 = vld [vmem:[#allocation6 + $0x38] sm:$0xff]  ;;  %v2823_v16 = vld [vmem:[%s9565_s7 + $0x8] sm:$0xff] }
 0x76f   :  { %v6127_v22 = vmul.f32 -1.442695, %v2384_v9  ;;  %v8786_v9 = vpack.c.bf16 %v3013_v8, %v3009_v4  ;;  %v2827_v17 = vld [vmem:[%s9565_s7 + $0x28] sm:$0xff] }
 0x770   :  { %v6128_v26 = vmul.f32 -1.442695, %v2385_v21  ;;  %v6129_v32 = vmul.f32 -1.442695, %v2387_v31  ;;  %v2822_v21 = vld [vmem:[%s9565_s7] sm:$0xff] }
 0x771   :  { %7752 = vpow2.f32 %v6127_v22  ;;  %v6992_v22 = vpack.c.bf16 %v2827_v17, %v2823_v16  ;;  %v3032_v16 = vld [vmem:[#allocation6 + $0xd0] sm:$0xff] }
 0x772   :  { %7754 = vpow2.f32 %v6128_v26  ;;  %v2826_v26 = vld [vmem:[%s9565_s7 + $0x20] sm:$0xff]  ;;  %v3036_v17 = vld [vmem:[#allocation6 + $0xf0] sm:$0xff] }
 0x773   :  { %7756 = vpow2.f32 %v6129_v32  ;;  %v6994_v31 = vpack.c.bf16 %v2826_v26, %v2822_v21  ;;  %v2831_v32 = vld [vmem:[%s9565_s7 + $0x48] sm:$0xff]  ;;  %v3041_v21 = vld [vmem:[#allocation6 + $0x118] sm:$0xff]  ;;  %v8836_v26 = vpack.c.bf16 %v3036_v17, %v3032_v16 }
 0x774   :  { %7758 = vtanh.f32 %v2386_v36  ;;  %v2835_v36 = vld [vmem:[%s9565_s7 + $0x68] sm:$0xff] }
 0x77b   :  { %v7753_v38 = vpop.eup %7752 }
 0x77c   :  { %v7755_v44 = vpop.eup %7754  ;;  %v2391_v46 = vadd.f32 1.0, %v7753_v38  ;;  %v2830_v38 = vld [vmem:[%s9565_s7 + $0x40] sm:$0xff] }
 0x77d   :  { %v2397_v48 = vadd.f32 1.0, %v7755_v44  ;;  %v7757_v51 = vpop.eup %7756  ;;  %v6996_v44 = vpack.c.bf16 %v2835_v36, %v2831_v32  ;;  %v3040_v32 = vld [vmem:[#allocation6 + $0x110] sm:$0xff] }
 0x77e   :  { %7760 = vrcp.f32 %v2391_v46  ;;  %v7759_v57 = vpop.eup %7758  ;;  %v2404_v7 = vadd.f32 1.0, %v7757_v51  ;;  %v2834_v46 = vld [vmem:[%s9565_s7 + $0x60] sm:$0xff]  ;;  %v3044_v36 = vld [vmem:[#allocation6 + $0x130] sm:$0xff] }
 0x77f   :  { %7762 = vrcp.f32 %v2397_v48  ;;  %v6998_v48 = vpack.c.bf16 %v2834_v46, %v2830_v38  ;;  %v8842_v38 = vpack.c.bf16 %v3044_v36, %v3040_v32  ;;  %v3053_v46 = vld [vmem:[#allocation6 + $0x178] sm:$0xff]  ;;  %v3023_v32 = vld [vmem:[#allocation6 + $0x88] sm:$0xff] }
 0x780   :  { %7764 = vrcp.f32 %v2404_v7  ;;  %v3027_v36 = vld [vmem:[#allocation6 + $0xa8] sm:$0xff] }
 0x788   :  { %v7761_v58 = vpop.eup %7760 }
 0x789   :  { %v7763_v60 = vpop.eup %7762  ;;  %v2408_v63 = vmul.f32 %v7761_v58, %v7759_v57 }
 0x78a   :  { %v2407_v10 = vmul.f32 %v7763_v60, %v8652_v39  ;;  %v7765_v15 = vpop.eup %7764  ;;  %v2742_v39 = vld [vmem:[%s9563_s5 + $0x68] sm:$0xff] }
 0x78b   :  { %v6987_v54 = vpack.c.bf16 %v2742_v39, %v2741_v61  ;;  %v3025_v61 = vld [vmem:[#allocation6 + $0x98] sm:$0xff] }
 0x78c   :  { %v8709_v12 = vadd.f32 %v2408_v63, %v2407_v10 }
 0x78e   :  { %7766 = vtanh.f32 %v8709_v12 }
 0x798   :  { %v7767_v25 = vpop.eup %7766 }
 0x799   :  { %v2411_v27 = vmul.f32 %v7767_v25, %v7765_v15 }
 0x79b   :  { %2479 = vmatmul.mubr.f32.vlgmr.msra.gmra.mrb[14].mxu0 %v2411_v27  ;;  %2550 = vmatmul.mubr.f32.vlgmr.msra.gmra.mrb[14].mxu1 %v2411_v27 }
 0x79c   :  { %6132 = vmatpush1.msk.msra.mxu0 %vm309_vm0, %v7978_v29  ;;  %2623 = vmatprep.mubr.f32.mxu0 %v8032_v0 }
 0x79d   :  { %6135 = vmatpush1.msk.msra.mxu1 %vm309_vm0, %v7979_v34  ;;  %2694 = vmatprep.mubr.f32.mxu1 %v8032_v0 }
 0x79e   :  { %6968 = vmatprep.subr.bf16.mxu0 %v8033_v49  ;;  %6993 = vmatprep.subr.bf16.mxu1 %v6992_v22  ;;  %v3045_v22 = vld [vmem:[#allocation6 + $0x138] sm:$0xff] }
 0x7a3   :  { %6133 = vmatmul.mubr.msk.f32.vlgmr.msra.gmra.mrb[14].mxu0 %vm305_vm1, %v6130_v40  ;;  %6136 = vmatmul.mubr.msk.f32.vlgmr.msra.gmra.mrb[14].mxu1 %vm305_vm1, %v6130_v40 }
 0x7a4   :  { %2928 = vmatprep.mubr.f32.mxu1 %v8032_v0  ;;  %6970 = vmatpush3.bf16.msra.mxu0 %v6969_v43 }
 0x7a5   :  { %6971 = vmatprep.subr.bf16.mxu0 %v8033_v49  ;;  %6308 = vmatprep.mubr.msk.f32.mxu0 %vm8034_vm2, %v8032_v0 }
 0x7a6   :  { %6995 = vmatpush1.bf16.msra.mxu1 %v6994_v31  ;;  %v8839_v31 = vpack.c.bf16 %v3045_v22, %v3041_v21  ;;  %v3014_v21 = vld [vmem:[#allocation6 + $0x40] sm:$0xff] }
 0x7a7   :  { %6997 = vmatprep.subr.bf16.mxu1 %v6996_v44  ;;  %v3049_v44 = vld [vmem:[#allocation6 + $0x158] sm:$0xff]  ;;  %v3018_v22 = vld [vmem:[#allocation6 + $0x60] sm:$0xff] }
 0x7a8   :  { %6973 = vmatpush3.bf16.msra.mxu0 %v6972_v53 }
 0x7a9   :  { %6974 = vmatprep.subr.bf16.mxu0 %v8033_v49 }
 0x7aa   :  { %6999 = vmatpush1.bf16.msra.mxu1 %v6998_v48  ;;  %v8846_v48 = vpack.c.bf16 %v3053_v46, %v3049_v44  ;;  %v8927_v44 = vpack.c.bf16 %v3018_v22, %v3014_v21  ;;  %v8931_v46 = vpack.c.bf16 %v3027_v36, %v3023_v32 }
 0x7ac   :  { %6976 = vmatpush3.bf16.msra.mxu0 %v6975_v28  ;;  %v3017_v28 = vld [vmem:[#allocation6 + $0x58] sm:$0xff] }
 0x7ad   :  { %6977 = vmatprep.subr.bf16.mxu0 %v8033_v49 }
 0x7b0   :  { %6979 = vmatpush3.bf16.msra.mxu0 %v6978_v45 }
 0x7b1   :  { %6980 = vmatprep.subr.bf16.mxu0 %v8033_v49 }
 0x7b4   :  { %6982 = vmatpush3.bf16.msra.mxu0 %v6981_v47  ;;  %v8820_v47 = vpack.c.bf16 %v3021_v33, %v3017_v28 }
 0x7b5   :  { %6983 = vmatprep.subr.bf16.mxu0 %v8033_v49 }
 0x7b8   :  { %6985 = vmatpush3.bf16.msra.mxu0 %v6984_v6  ;;  %v3029_v6 = vld [vmem:[#allocation6 + $0xb8] sm:$0xff] }
 0x7b9   :  { %6986 = vmatprep.subr.bf16.mxu0 %v8033_v49  ;;  %v8827_v39 = vpack.c.bf16 %v3029_v6, %v3025_v61 }
 0x7bc   :  { %6988 = vmatpush3.bf16.msra.mxu0 %v6987_v54  ;;  %v3024_v54 = vld [vmem:[#allocation6 + $0x90] sm:$0xff] }
 0x7bd   :  { %6989 = vmatprep.subr.bf16.mxu0 %v8033_v49  ;;  %v8830_v4 = vpack.c.bf16 %v3028_v18, %v3024_v54  ;;  %v3006_v54 = vld [vmem:[#allocation6] sm:$0xff] }
 0x7be   :  { %v3010_v18 = vld [vmem:[#allocation6 + $0x20] sm:$0xff] }
 0x7bf   :  { %v8919_v16 = vpack.c.bf16 %v3010_v18, %v3006_v54 }
 0x7c0   :  { %6991 = vmatpush3.bf16.msra.mxu0 %v6990_v11  ;;  %v3037_v11 = vld [vmem:[#allocation6 + $0xf8] sm:$0xff] }
 0x7c1   :  { %7041 = vmatprep.subr.bf16.mxu0 %v8786_v9  ;;  %v8833_v8 = vpack.c.bf16 %v3037_v11, %v3033_v13  ;;  %v3015_v13 = vld [vmem:[#allocation6 + $0x48] sm:$0xff] }
 0x7c2   :  { %v3019_v11 = vld [vmem:[#allocation6 + $0x68] sm:$0xff] }
 0x7c3   :  { %v8922_v17 = vpack.c.bf16 %v3019_v11, %v3015_v13  ;;  %v3062_v13 = vld [vmem:[#allocation6 + $0x1c0] sm:$0xff] }
 0x7c4   :  { %v3066_v11 = vld [vmem:[#allocation6 + $0x1e0] sm:$0xff] }
 0x7c5   :  { %v8964_v21 = vpack.c.bf16 %v3066_v11, %v3062_v13 }
 0x876   :  { %v2625_v51 = vpop.f32.mrb[14].mxu0  ;;  %v2696_v57 = vpop.f32.mrb[14].mxu1 }
 0x877   :  { %v2701_v58 = vadd.f32 %v2625_v51, %v8347_v1  ;;  %v2627_v60 = vpop.f32.mrb[15].mxu0  ;;  %v2698_v63 = vpop.f32.mrb[15].mxu1  ;;  %v2703_v29 = vadd.f32 %v2696_v57, %v8364_v30  ;;  %v3008_v30 = vld [vmem:[#allocation6 + $0x10] sm:$0xff] }
 0x878   :  { %v2702_v7 = vadd.f32 %v2627_v60, %v8351_v2  ;;  %v2704_v25 = vadd.f32 %v2698_v63, %v8358_v23  ;;  %v8818_v37 = vpack.c.bf16 %v3012_v20, %v3008_v30  ;;  %v3048_v51 = vld [vmem:[#allocation6 + $0x150] sm:$0xff]  ;;  %v2825_v60 = vld [vmem:[%s9565_s7 + $0x18] sm:$0xff] }
 0x879   :  { %v6137_v10 = vmul.f32 -1.442695, %v2701_v58  ;;  %v3052_v57 = vld [vmem:[#allocation6 + $0x170] sm:$0xff]  ;;  %v2829_v63 = vld [vmem:[%s9565_s7 + $0x38] sm:$0xff] }
 0x87a   :  { %v6138_v15 = vmul.f32 -1.442695, %v2702_v7  ;;  %v6139_v27 = vmul.f32 -1.442695, %v2704_v25  ;;  %v8848_v58 = vpack.c.bf16 %v3052_v57, %v3048_v51  ;;  %v7000_v7 = vpack.c.bf16 %v2829_v63, %v2825_v60  ;;  %v3022_v51 = vld [vmem:[#allocation6 + $0x80] sm:$0xff]  ;;  %v3031_v60 = vld [vmem:[#allocation6 + $0xc8] sm:$0xff] }
 0x87b   :  { %7768 = vpow2.f32 %v6137_v10  ;;  %v3057_v10 = vld [vmem:[#allocation6 + $0x198] sm:$0xff]  ;;  %v3026_v57 = vld [vmem:[#allocation6 + $0xa0] sm:$0xff]  ;;  %v3035_v63 = vld [vmem:[#allocation6 + $0xe8] sm:$0xff] }
 0x87c   :  { %7770 = vpow2.f32 %v6138_v15  ;;  %v3061_v15 = vld [vmem:[#allocation6 + $0x1b8] sm:$0xff]  ;;  %7001 = vmatprep.subr.bf16.mxu1 %v7000_v7  ;;  %v8934_v7 = vpack.c.bf16 %v3026_v57, %v3022_v51 }
 0x87d   :  { %7772 = vpow2.f32 %v6139_v27  ;;  %v8858_v25 = vpack.c.bf16 %v3061_v15, %v3057_v10  ;;  %v3056_v27 = vld [vmem:[#allocation6 + $0x190] sm:$0xff]  ;;  %v8937_v10 = vpack.c.bf16 %v3035_v63, %v3031_v60  ;;  %v3030_v15 = vld [vmem:[#allocation6 + $0xc0] sm:$0xff] }
 0x87e   :  { %7774 = vtanh.f32 %v2703_v29  ;;  %v3060_v29 = vld [vmem:[#allocation6 + $0x1b0] sm:$0xff] }
 0x885   :  { %v7769_v34 = vpop.eup %7768 }
 0x886   :  { %v7771_v40 = vpop.eup %7770  ;;  %v2708_v41 = vadd.f32 1.0, %v7769_v34  ;;  %v8860_v34 = vpack.c.bf16 %v3060_v29, %v3056_v27  ;;  %v3034_v27 = vld [vmem:[#allocation6 + $0xe0] sm:$0xff]  ;;  %v3039_v29 = vld [vmem:[#allocation6 + $0x108] sm:$0xff] }
 0x887   :  { %v2714_v42 = vadd.f32 1.0, %v7771_v40  ;;  %v7773_v1 = vpop.eup %7772  ;;  %v3065_v40 = vld [vmem:[#allocation6 + $0x1d8] sm:$0xff] }
 0x888   :  { %7776 = vrcp.f32 %v2708_v41  ;;  %v7775_v43 = vpop.eup %7774  ;;  %v2721_v53 = vadd.f32 1.0, %v7773_v1  ;;  %v3069_v41 = vld [vmem:[#allocation6 + $0x1f8] sm:$0xff]  ;;  %v3064_v1 = vld [vmem:[#allocation6 + $0x1d0] sm:$0xff] }
 0x889   :  { %7778 = vrcp.f32 %v2714_v42  ;;  %v8864_v42 = vpack.c.bf16 %v3069_v41, %v3065_v40  ;;  %v3043_v40 = vld [vmem:[#allocation6 + $0x128] sm:$0xff]  ;;  %v8940_v41 = vpack.c.bf16 %v3034_v27, %v3030_v15 }
 0x88a   :  { %7780 = vrcp.f32 %v2721_v53  ;;  %v6140_v53 = vld [vmem:[%s9564_s6] ss:$0 sm:$0xff] }
 0x892   :  { %v7777_v2 = vpop.eup %7776 }
 0x893   :  { %v7779_v50 = vpop.eup %7778  ;;  %v2725_v52 = vmul.f32 %v7777_v2, %v7775_v43  ;;  %v3068_v43 = vld [vmem:[#allocation6 + $0x1f0] sm:$0xff] }
 0x894   :  { %v2724_v19 = vmul.f32 %v7779_v50, %v8709_v12  ;;  %v7781_v14 = vpop.eup %7780  ;;  %v8823_v12 = vpack.c.bf16 %v3020_v3, %v3016_v55  ;;  %v8866_v2 = vpack.c.bf16 %v3068_v43, %v3064_v1  ;;  %v2824_v50 = vld [vmem:[%s9565_s7 + $0x10] sm:$0xff]  ;;  %v3011_v55 = vld [vmem:[#allocation6 + $0x28] sm:$0xff]  ;;  %v8943_v1 = vpack.c.bf16 %v3043_v40, %v3039_v29  ;;  %v3038_v43 = vld [vmem:[#allocation6 + $0x100] sm:$0xff] }
 0x896   :  { %v2726_v23 = vadd.f32 %v2725_v52, %v2724_v19  ;;  %v2828_v52 = vld [vmem:[%s9565_s7 + $0x30] sm:$0xff]  ;;  %v2833_v19 = vld [vmem:[%s9565_s7 + $0x58] sm:$0xff] }
 0x897   :  { %v7002_v30 = vpack.c.bf16 %v2828_v52, %v2824_v50  ;;  %v3042_v50 = vld [vmem:[#allocation6 + $0x120] sm:$0xff]  ;;  %v3047_v52 = vld [vmem:[#allocation6 + $0x148] sm:$0xff] }
 0x898   :  { %7782 = vtanh.f32 %v2726_v23 }
 0x8a2   :  { %v7783_v45 = vpop.eup %7782 }
 0x8a3   :  { %v2728_v35 = vmul.f32 %v7783_v45, %v7781_v14  ;;  %v2832_v14 = vld [vmem:[%s9565_s7 + $0x50] sm:$0xff] }
 0x8a4   :  { %v2836_v45 = vld [vmem:[%s9565_s7 + $0x70] sm:$0xff] }
 0x8a5   :  { %6309 = vmatmul.mubr.f32.vlgmr.msra.gmra.mrb[16].mxu0 %v2728_v35  ;;  %v3007_v35 = vld [vmem:[#allocation6 + $0x8] sm:$0xff]  ;;  %v7006_v61 = vpack.c.bf16 %v2836_v45, %v2832_v14 }
 0x8a6   :  { %7043 = vmatpush1.bf16.msra.mxu0 %v8818_v37  ;;  %3205 = vmatprep.mubr.f32.mxu0 %v8032_v0  ;;  %v8917_v6 = vpack.c.bf16 %v3011_v55, %v3007_v35  ;;  %v3054_v35 = vld [vmem:[#allocation6 + $0x180] sm:$0xff] }
 0x8a7   :  { %7045 = vmatprep.subr.bf16.mxu0 %v8820_v47  ;;  %v3058_v55 = vld [vmem:[#allocation6 + $0x1a0] sm:$0xff] }
 0x8a8   :  { %v8958_v54 = vpack.c.bf16 %v3058_v55, %v3054_v35 }
 0x8aa   :  { %7047 = vmatpush1.bf16.msra.mxu0 %v8823_v12 }
 0x8ab   :  { %7049 = vmatprep.subr.bf16.mxu0 %v8827_v39 }
 0x8ae   :  { %7051 = vmatpush1.bf16.msra.mxu0 %v8830_v4 }
 0x8af   :  { %7053 = vmatprep.subr.bf16.mxu0 %v8833_v8 }
 0x8b2   :  { %7055 = vmatpush1.bf16.msra.mxu0 %v8836_v26 }
 0x8b3   :  { %7057 = vmatprep.subr.bf16.mxu0 %v8839_v31 }
 0x8b6   :  { %7059 = vmatpush1.bf16.msra.mxu0 %v8842_v38 }
 0x8b7   :  { %7061 = vmatprep.subr.bf16.mxu0 %v8846_v48 }
 0x8ba   :  { %7063 = vmatpush1.bf16.msra.mxu0 %v8848_v58 }
 0x8bb   :  { %7065 = vmatprep.subr.bf16.mxu0 %v8858_v25 }
 0x8be   :  { %7067 = vmatpush1.bf16.msra.mxu0 %v8860_v34 }
 0x8bf   :  { %7069 = vmatprep.subr.bf16.mxu0 %v8864_v42 }
 0x8c2   :  { %7071 = vmatpush1.bf16.msra.mxu0 %v8866_v2 }
 0x8c3   :  { %7105 = vmatprep.subr.bf16.mxu0 %v8786_v9 }
 0x8c5   :  { %3206 = vmatmul.mubr.f32.vlgmr.msra.gmra.mrb[18].mxu0 %v8032_v0 }
 0x8c6   :  { %7107 = vmatpush1.bf16.msra.mxu0 %v8818_v37  ;;  %3440 = vmatprep.mubr.f32.mxu0 %v8032_v0 }
 0x8c7   :  { %7109 = vmatprep.subr.bf16.mxu0 %v8820_v47 }
 0x8ca   :  { %7111 = vmatpush1.bf16.msra.mxu0 %v8823_v12 }
 0x8cb   :  { %7113 = vmatprep.subr.bf16.mxu0 %v8827_v39 }
 0x8ce   :  { %7115 = vmatpush1.bf16.msra.mxu0 %v8830_v4 }
 0x8cf   :  { %7117 = vmatprep.subr.bf16.mxu0 %v8833_v8 }
 0x8d2   :  { %7119 = vmatpush1.bf16.msra.mxu0 %v8836_v26 }
 0x8d3   :  { %7121 = vmatprep.subr.bf16.mxu0 %v8839_v31 }
 0x8d6   :  { %7123 = vmatpush1.bf16.msra.mxu0 %v8842_v38 }
 0x8d7   :  { %7125 = vmatprep.subr.bf16.mxu0 %v8846_v48 }
 0x8da   :  { %7127 = vmatpush1.bf16.msra.mxu0 %v8848_v58 }
 0x8db   :  { %7129 = vmatprep.subr.bf16.mxu0 %v8858_v25 }
 0x8de   :  { %7131 = vmatpush1.bf16.msra.mxu0 %v8860_v34 }
 0x8df   :  { %7133 = vmatprep.subr.bf16.mxu0 %v8864_v42 }
 0x8e2   :  { %7135 = vmatpush1.bf16.msra.mxu0 %v8866_v2 }
 0x8e3   :  { %7169 = vmatprep.subr.bf16.mxu0 %v8786_v9  ;;  %v2837_v9 = vld [vmem:[%s9565_s7 + $0x78] sm:$0xff] }
 0x8e4   :  { %v7004_v33 = vpack.c.bf16 %v2837_v9, %v2833_v19  ;;  %v8946_v19 = vpack.c.bf16 %v3042_v50, %v3038_v43  ;;  %v2838_v43 = vld [vmem:[%s9567_s9] sm:$0xf] }
 0x8e5   :  { %v2843_v50 = vrot.slane %v2838_v43, %v464_v59 }
 0x978   :  { %v2818_v23 = vpop.f32.mrb[16].mxu0 }
 0x979   :  { %v8904_v20 = vadd.f32 %v6140_v53, %v2818_v23  ;;  %v6310_v28 = vpop.f32.mrb[17].mxu0  ;;  %v3051_v53 = vld [vmem:[#allocation6 + $0x168] sm:$0xff]  ;;  %v3046_v23 = vld [vmem:[#allocation6 + $0x140] sm:$0xff] }
 0x97a   :  { %v8949_v9 = vpack.c.bf16 %v3051_v53, %v3047_v52  ;;  %v3055_v28 = vld [vmem:[#allocation6 + $0x188] sm:$0xff] }
 0x97b   :  { %6141 = vmatmul.mubr.msk.f32.vlgmr.msra.gmra.mrb[16].mxu1 %vm2860_vm3, %v8904_v20  ;;  %v4989_v3 = vsel %vm4988_vm4, %v8904_v20, 0.0 }
 0x97c   :  { %7003 = vmatpush1.bf16.msra.mxu1 %v7002_v30  ;;  %4990 = vadd.xlane.f32.xlu0 %v4989_v3  ;;  %v3050_v30 = vld [vmem:[#allocation6 + $0x160] sm:$0xff]  ;;  %v3063_v3 = vld [vmem:[#allocation6 + $0x1c8] sm:$0xff] }
 0x97d   :  { %7005 = vmatprep.subr.bf16.mxu1 %v7004_v33  ;;  %2999 = vmatprep.mubr.f32.mxu1 %v8032_v0  ;;  %v3059_v33 = vld [vmem:[#allocation6 + $0x1a8] sm:$0xff]  ;;  %v8952_v14 = vpack.c.bf16 %v3050_v30, %v3046_v23  ;;  %v2855_v23 = vrot.slane %v2838_v43, %v476_v5 }
 0x97e   :  { %v8955_v45 = vpack.c.bf16 %v3059_v33, %v3055_v28 }
 0x980   :  { %7007 = vmatpush1.bf16.msra.mxu1 %v7006_v61  ;;  %v3067_v61 = vld [vmem:[#allocation6 + $0x1e8] sm:$0xff] }
 0x981   :  { %7009 = vmatprep.subr.bf16.mxu1 %v8917_v6  ;;  %v8961_v18 = vpack.c.bf16 %v3067_v61, %v3063_v3 }
 0x983   :  { %6142 = vmatmul.mubr.msk.f32.vlgmr.msra.gmra.mrb[18].mxu1 %vm2860_vm3, %v8904_v20 }
 0x984   :  { %7011 = vmatpush1.bf16.msra.mxu1 %v8919_v16  ;;  %3134 = vmatprep.mubr.f32.mxu1 %v8032_v0 }
 0x985   :  { %7013 = vmatprep.subr.bf16.mxu1 %v8922_v17 }
 0x988   :  { %7015 = vmatpush1.bf16.msra.mxu1 %v8927_v44 }
 0x989   :  { %7017 = vmatprep.subr.bf16.mxu1 %v8931_v46 }
 0x98c   :  { %7019 = vmatpush1.bf16.msra.mxu1 %v8934_v7 }
 0x98d   :  { %7021 = vmatprep.subr.bf16.mxu1 %v8937_v10 }
 0x990   :  { %7023 = vmatpush1.bf16.msra.mxu1 %v8940_v41 }
 0x991   :  { %7025 = vmatprep.subr.bf16.mxu1 %v8943_v1 }
 0x994   :  { %7027 = vmatpush1.bf16.msra.mxu1 %v8946_v19 }
 0x995   :  { %7029 = vmatprep.subr.bf16.mxu1 %v8949_v9 }
 0x998   :  { %7031 = vmatpush1.bf16.msra.mxu1 %v8952_v14  ;;  %v3207_v22 = vpop.f32.mrb[18].mxu0 }
 0x999   :  { %7033 = vmatprep.subr.bf16.mxu1 %v8955_v45  ;;  %v3209_v32 = vpop.f32.mrb[19].mxu0 }
 0x99c   :  { %7035 = vmatpush1.bf16.msra.mxu1 %v8958_v54 }
 0x99d   :  { %7037 = vmatprep.subr.bf16.mxu1 %v8961_v18 }
 0x9a0   :  { %7039 = vmatpush1.bf16.msra.mxu1 %v8964_v21 }
 0x9a1   :  { %7073 = vmatprep.subr.bf16.mxu1 %v8917_v6 }
 0x9a3   :  { %3135 = vmatmul.mubr.f32.vlgmr.msra.gmra.mrb[20].mxu1 %v8032_v0 }
 0x9a4   :  { %7075 = vmatpush1.bf16.msra.mxu1 %v8919_v16  ;;  %3369 = vmatprep.mubr.f32.mxu1 %v8032_v0 }
 0x9a5   :  { %7077 = vmatprep.subr.bf16.mxu1 %v8922_v17 }
 0x9a8   :  { %7079 = vmatpush1.bf16.msra.mxu1 %v8927_v44 }
 0x9a9   :  { %7081 = vmatprep.subr.bf16.mxu1 %v8931_v46 }
 0x9ac   :  { %7083 = vmatpush1.bf16.msra.mxu1 %v8934_v7 }
 0x9ad   :  { %7085 = vmatprep.subr.bf16.mxu1 %v8937_v10 }
 0x9b0   :  { %7087 = vmatpush1.bf16.msra.mxu1 %v8940_v41 }
 0x9b1   :  { %7089 = vmatprep.subr.bf16.mxu1 %v8943_v1 }
 0x9b4   :  { %7091 = vmatpush1.bf16.msra.mxu1 %v8946_v19 }
 0x9b5   :  { %7093 = vmatprep.subr.bf16.mxu1 %v8949_v9 }
 0x9b8   :  { %7095 = vmatpush1.bf16.msra.mxu1 %v8952_v14 }
 0x9b9   :  { %7097 = vmatprep.subr.bf16.mxu1 %v8955_v45 }
 0x9bc   :  { %7099 = vmatpush1.bf16.msra.mxu1 %v8958_v54 }
 0x9bd   :  { %7101 = vmatprep.subr.bf16.mxu1 %v8961_v18 }
 0x9c0   :  { %7103 = vmatpush1.bf16.msra.mxu1 %v8964_v21 }
 0x9c1   :  { %7137 = vmatprep.subr.bf16.mxu1 %v8917_v6 }
 0xa09   :  { %v4991_v36 = vpop.xlane.xlu0 %4990 }
 0xa0a   :  { %v4993_v51 = vmul.f32 0.03125, %v4991_v36 }
 0xa0c   :  { %v8988_v57 = vsub.f32 %v8904_v20, %v4993_v51  ;;  %v2847_v20 = vrot.slane %v2838_v43, %v468_v62  ;;  %v2851_v62 = vrot.slane %v2838_v43, %v472_v24 }
 0xa0e   :  { %v4995_v60 = vmul.f32 %v8988_v57, %v8988_v57 }
 0xa10   :  { %v4996_v63 = vsel %vm4988_vm4, %v4995_v60, 0.0 }
 0xa11   :  { %4997 = vadd.xlane.f32.xlu0 %v4996_v63 }
 0xa4e   :  { %v2930_v15 = vpop.f32.mrb[16].mxu1 }
 0xa4f   :  { %v2932_v27 = vpop.f32.mrb[17].mxu1  ;;  %v9000_v52 = vadd.f32 %v2930_v15, %v2843_v50 }
 0xa50   :  { %v9002_v53 = vadd.f32 %v2932_v27, %v2847_v20 }
 0xa56   :  { %v3001_v29 = vpop.f32.mrb[18].mxu1 }
 0xa57   :  { %v3003_v40 = vpop.f32.mrb[19].mxu1  ;;  %v9013_v13 = vadd.f32 %v3001_v29, %v2851_v62 }
 0xa58   :  { %v9008_v3 = vadd.f32 %v3003_v40, %v2855_v23 }
 0xa59   :  { %v3214_v11 = vadd.f32 %v3207_v22, %v9013_v13 }
 0xa5a   :  { %v3215_v61 = vadd.f32 %v3209_v32, %v9008_v3 }
 0xa5c   :  { %v6145_v5 = vmul.f32 -1.442695, %v3215_v61 }
 0xa76   :  { %v3136_v30 = vpop.f32.mrb[20].mxu1 }
 0xa77   :  { %v3212_v28 = vadd.f32 %v3136_v30, %v9000_v52  ;;  %v3138_v33 = vpop.f32.mrb[21].mxu1 }
 0xa78   :  { %v3213_v35 = vadd.f32 %v3138_v33, %v9002_v53 }
 0xa79   :  { %v6143_v55 = vmul.f32 -1.442695, %v3212_v28 }
 0xa7a   :  { %v6144_v59 = vmul.f32 -1.442695, %v3213_v35 }
 0xa7b   :  { %7784 = vpow2.f32 %v6143_v55 }
 0xa7c   :  { %7786 = vpow2.f32 %v6144_v59 }
 0xa7d   :  { %7788 = vpow2.f32 %v6145_v5 }
 0xa7e   :  { %7790 = vtanh.f32 %v3214_v11  ;;  %v3729_v11 = vld [vmem:[#allocation6 + $0x90] sm:$0xff] }
 0xa85   :  { %v7785_v36 = vpop.eup %7784 }
 0xa86   :  { %v7787_v51 = vpop.eup %7786  ;;  %v3219_v60 = vadd.f32 1.0, %v7785_v36  ;;  %v3733_v36 = vld [vmem:[#allocation6 + $0xb0] sm:$0xff] }
 0xa87   :  { %v3225_v63 = vadd.f32 1.0, %v7787_v51  ;;  %v7789_v15 = vpop.eup %7788  ;;  %v9091_v51 = vpack.c.bf16 %v3733_v36, %v3729_v11 }
 0xa88   :  { %7792 = vrcp.f32 %v3219_v60  ;;  %v7791_v56 = vpop.eup %7790  ;;  %v3232_v40 = vadd.f32 1.0, %v7789_v15  ;;  %v3738_v60 = vld [vmem:[#allocation6 + $0xd8] sm:$0xff] }
 0xa89   :  { %7794 = vrcp.f32 %v3225_v63  ;;  %v3742_v63 = vld [vmem:[#allocation6 + $0xf8] sm:$0xff] }
 0xa8a   :  { %7796 = vrcp.f32 %v3232_v40  ;;  %v9095_v15 = vpack.c.bf16 %v3742_v63, %v3738_v60  ;;  %v3746_v40 = vld [vmem:[#allocation6 + $0x118] sm:$0xff] }
 0xa92   :  { %v7793_v24 = vpop.eup %7792 }
 0xa93   :  { %v7795_v27 = vpop.eup %7794  ;;  %v3236_v43 = vmul.f32 %v7793_v24, %v7791_v56  ;;  %v3737_v56 = vld [vmem:[#allocation6 + $0xd0] sm:$0xff] }
 0xa94   :  { %v3235_v32 = vmul.f32 0.0, %v7795_v27  ;;  %v7797_v22 = vpop.eup %7796  ;;  %v3741_v24 = vld [vmem:[#allocation6 + $0xf0] sm:$0xff] }
 0xa95   :  { %v9097_v27 = vpack.c.bf16 %v3741_v24, %v3737_v56 }
 0xa96   :  { %v9016_v29 = vadd.f32 %v3236_v43, %v3235_v32  ;;  %v3750_v43 = vld [vmem:[#allocation6 + $0x138] sm:$0xff] }
 0xa97   :  { %v9101_v32 = vpack.c.bf16 %v3750_v43, %v3746_v40 }
 0xa98   :  { %7798 = vtanh.f32 %v9016_v29 }
 0xaa2   :  { %v7799_v50 = vpop.eup %7798 }
 0xaa3   :  { %v3239_v20 = vmul.f32 %v7799_v50, %v7797_v22  ;;  %v3749_v22 = vld [vmem:[#allocation6 + $0x130] sm:$0xff] }
 0xaa5   :  { %3240 = vst [vmem:[#allocation2] sm:$0x3] %v3239_v20  ;;  %3370 = vmatmul.mubr.f32.vlgmr.msra.gmra.mrb[22].mxu1 %v3239_v20  ;;  %3441 = vmatmul.mubr.f32.vlgmr.msra.gmra.mrb[20].mxu0 %v3239_v20  ;;  %v3754_v20 = vld [vmem:[#allocation6 + $0x158] sm:$0xff] }
 0xaa6   :  { %7139 = vmatpush1.bf16.msra.mxu1 %v8919_v16  ;;  %7171 = vmatpush1.bf16.msra.mxu0 %v8818_v37 }
 0xaa7   :  { %7141 = vmatprep.subr.bf16.mxu1 %v8922_v17  ;;  %7173 = vmatprep.subr.bf16.mxu0 %v8820_v47 }
 0xaa8   :  { %3604 = vmatprep.mubr.f32.mxu1 %v8032_v0  ;;  %3675 = vmatprep.mubr.f32.mxu0 %v8032_v0 }
 0xaaa   :  { %7143 = vmatpush1.bf16.msra.mxu1 %v8927_v44  ;;  %7175 = vmatpush1.bf16.msra.mxu0 %v8823_v12 }
 0xaab   :  { %7145 = vmatprep.subr.bf16.mxu1 %v8931_v46  ;;  %7177 = vmatprep.subr.bf16.mxu0 %v8827_v39 }
 0xaae   :  { %7147 = vmatpush1.bf16.msra.mxu1 %v8934_v7  ;;  %7179 = vmatpush1.bf16.msra.mxu0 %v8830_v4 }
 0xaaf   :  { %7149 = vmatprep.subr.bf16.mxu1 %v8937_v10  ;;  %7181 = vmatprep.subr.bf16.mxu0 %v8833_v8 }
 0xab2   :  { %7151 = vmatpush1.bf16.msra.mxu1 %v8940_v41  ;;  %7183 = vmatpush1.bf16.msra.mxu0 %v8836_v26 }
 0xab3   :  { %7153 = vmatprep.subr.bf16.mxu1 %v8943_v1  ;;  %7185 = vmatprep.subr.bf16.mxu0 %v8839_v31 }
 0xab6   :  { %7155 = vmatpush1.bf16.msra.mxu1 %v8946_v19  ;;  %7187 = vmatpush1.bf16.msra.mxu0 %v8842_v38 }
 0xab7   :  { %7157 = vmatprep.subr.bf16.mxu1 %v8949_v9  ;;  %7189 = vmatprep.subr.bf16.mxu0 %v8846_v48 }
 0xaba   :  { %7159 = vmatpush1.bf16.msra.mxu1 %v8952_v14  ;;  %7191 = vmatpush1.bf16.msra.mxu0 %v8848_v58 }
 0xabb   :  { %7161 = vmatprep.subr.bf16.mxu1 %v8955_v45  ;;  %7193 = vmatprep.subr.bf16.mxu0 %v8858_v25 }
 0xabe   :  { %7163 = vmatpush1.bf16.msra.mxu1 %v8958_v54  ;;  %7195 = vmatpush1.bf16.msra.mxu0 %v8860_v34 }
 0xabf   :  { %7165 = vmatprep.subr.bf16.mxu1 %v8961_v18  ;;  %7197 = vmatprep.subr.bf16.mxu0 %v8864_v42 }
 0xac2   :  { %7167 = vmatpush1.bf16.msra.mxu1 %v8964_v21  ;;  %7199 = vmatpush1.bf16.msra.mxu0 %v8866_v2 }
 0xac3   :  { %7201 = vmatprep.subr.bf16.mxu1 %v8917_v6 }
 0xb78   :  { %v3371_v37 = vpop.f32.mrb[22].mxu1  ;;  %v3442_v47 = vpop.f32.mrb[20].mxu0 }
 0xb79   :  { %v3447_v12 = vadd.f32 %v3371_v37, %v9000_v52  ;;  %v3373_v39 = vpop.f32.mrb[23].mxu1  ;;  %v3444_v4 = vpop.f32.mrb[21].mxu0  ;;  %v3449_v58 = vadd.f32 %v3442_v47, %v9013_v13  ;;  %v3758_v37 = vld [vmem:[#allocation6 + $0x178] sm:$0xff]  ;;  %v3753_v47 = vld [vmem:[#allocation6 + $0x150] sm:$0xff] }
 0xb7a   :  { %v3448_v8 = vadd.f32 %v3373_v39, %v9002_v53  ;;  %v3450_v38 = vadd.f32 %v3444_v4, %v9008_v3  ;;  %v3757_v39 = vld [vmem:[#allocation6 + $0x170] sm:$0xff]  ;;  %v3762_v4 = vld [vmem:[#allocation6 + $0x198] sm:$0xff] }
 0xb7b   :  { %v6146_v26 = vmul.f32 -1.442695, %v3447_v12  ;;  %v9107_v12 = vpack.c.bf16 %v3758_v37, %v3754_v20  ;;  %v3946_v20 = vld [vmem:[#allocation6] sm:$0xff] }
 0xb7c   :  { %v6147_v31 = vmul.f32 -1.442695, %v3448_v8  ;;  %v6148_v48 = vmul.f32 -1.442695, %v3450_v38  ;;  %v3766_v8 = vld [vmem:[#allocation6 + $0x1b8] sm:$0xff]  ;;  %v3761_v38 = vld [vmem:[#allocation6 + $0x190] sm:$0xff] }
 0xb7d   :  { %7800 = vpow2.f32 %v6146_v26  ;;  %v9109_v26 = vpack.c.bf16 %v3757_v39, %v3753_v47  ;;  %v3950_v37 = vld [vmem:[#allocation6 + $0x20] sm:$0xff]  ;;  %v3955_v39 = vld [vmem:[#allocation6 + $0x48] sm:$0xff] }
 0xb7e   :  { %7802 = vpow2.f32 %v6147_v31  ;;  %v9111_v31 = vpack.c.bf16 %v3766_v8, %v3762_v4  ;;  %v9154_v47 = vpack.c.bf16 %v3950_v37, %v3946_v20  ;;  %v3959_v4 = vld [vmem:[#allocation6 + $0x68] sm:$0xff] }
 0xb7f   :  { %7804 = vpow2.f32 %v6148_v48  ;;  %v3765_v48 = vld [vmem:[#allocation6 + $0x1b0] sm:$0xff]  ;;  %v9158_v8 = vpack.c.bf16 %v3959_v4, %v3955_v39  ;;  %v4007_v20 = vld [vmem:[#allocation6 + $0x1e8] sm:$0xff]  ;;  %v4002_v4 = vld [vmem:[#allocation6 + $0x1c0] sm:$0xff] }
 0xb80   :  { %7806 = vtanh.f32 %v3449_v58  ;;  %v3770_v58 = vld [vmem:[#allocation6 + $0x1d8] sm:$0xff] }
 0xb87   :  { %v7801_v25 = vpop.eup %7800 }
 0xb88   :  { %v7803_v34 = vpop.eup %7802  ;;  %v3454_v42 = vadd.f32 1.0, %v7801_v25  ;;  %v3774_v25 = vld [vmem:[#allocation6 + $0x1f8] sm:$0xff] }
 0xb89   :  { %v3460_v2 = vadd.f32 1.0, %v7803_v34  ;;  %v7805_v6 = vpop.eup %7804  ;;  %v9115_v34 = vpack.c.bf16 %v3765_v48, %v3761_v38  ;;  %v3954_v38 = vld [vmem:[#allocation6 + $0x40] sm:$0xff] }
 0xb8a   :  { %7808 = vrcp.f32 %v3454_v42  ;;  %v7807_v23 = vpop.eup %7806  ;;  %v3467_v35 = vadd.f32 1.0, %v7805_v6  ;;  %v9118_v42 = vpack.c.bf16 %v3774_v25, %v3770_v58  ;;  %v3773_v6 = vld [vmem:[#allocation6 + $0x1f0] sm:$0xff]  ;;  %v3958_v48 = vld [vmem:[#allocation6 + $0x60] sm:$0xff]  ;;  %v3963_v25 = vld [vmem:[#allocation6 + $0x88] sm:$0xff] }
 0xb8b   :  { %7810 = vrcp.f32 %v3460_v2  ;;  %v3769_v2 = vld [vmem:[#allocation6 + $0x1d0] sm:$0xff]  ;;  %v9160_v58 = vpack.c.bf16 %v3958_v48, %v3954_v38  ;;  %v4006_v38 = vld [vmem:[#allocation6 + $0x1e0] sm:$0xff] }
 0xb8c   :  { %7812 = vrcp.f32 %v3467_v35  ;;  %v9196_v48 = vpack.c.bf16 %v4006_v38, %v4002_v4 }
 0xb94   :  { %v7809_v30 = vpop.eup %7808 }
 0xb95   :  { %v7811_v28 = vpop.eup %7810  ;;  %v3471_v33 = vmul.f32 %v7809_v30, %v7807_v23  ;;  %v9121_v23 = vpack.c.bf16 %v3773_v6, %v3769_v2  ;;  %v3967_v2 = vld [vmem:[#allocation6 + $0xa8] sm:$0xff] }
 0xb96   :  { %v3470_v55 = vmul.f32 %v7811_v28, %v9016_v29  ;;  %v7813_v62 = vpop.eup %7812  ;;  %v3745_v29 = vld [vmem:[#allocation6 + $0x110] sm:$0xff]  ;;  %v9164_v6 = vpack.c.bf16 %v3967_v2, %v3963_v25 }
 0xb97   :  { %v9103_v50 = vpack.c.bf16 %v3749_v22, %v3745_v29  ;;  %v3951_v29 = vld [vmem:[#allocation6 + $0x28] sm:$0xff] }
 0xb98   :  { %v9057_v59 = vadd.f32 %v3471_v33, %v3470_v55 }
 0xb9a   :  { %7814 = vtanh.f32 %v9057_v59 }
 0xba4   :  { %v7815_v61 = vpop.eup %7814 }
 0xba5   :  { %v3474_v5 = vmul.f32 %v7815_v61, %v7813_v62 }
 0xba7   :  { %3475 = vst [vmem:[#allocation2 + $0x2] sm:$0x3] %v3474_v5  ;;  %3605 = vmatmul.mubr.f32.vlgmr.msra.gmra.mrb[24].mxu1 %v3474_v5  ;;  %3676 = vmatmul.mubr.f32.vlgmr.msra.gmra.mrb[22].mxu0 %v3474_v5 }
 0xba8   :  { %7203 = vmatpush1.bf16.msra.mxu1 %v8919_v16  ;;  %3839 = vmatprep.mubr.f32.mxu1 %v8032_v0  ;;  %v3714_v16 = vld [vmem:[#allocation6 + $0x18] sm:$0xff] }
 0xba9   :  { %7205 = vmatprep.subr.bf16.mxu1 %v8922_v17  ;;  %3910 = vmatprep.mubr.f32.mxu0 %v8032_v0  ;;  %v3718_v17 = vld [vmem:[#allocation6 + $0x38] sm:$0xff] }
 0xbac   :  { %7207 = vmatpush1.bf16.msra.mxu1 %v8927_v44  ;;  %v9077_v44 = vpack.c.bf16 %v3718_v17, %v3714_v16 }
 0xbad   :  { %7209 = vmatprep.subr.bf16.mxu1 %v8931_v46  ;;  %v3713_v46 = vld [vmem:[#allocation6 + $0x10] sm:$0xff] }
 0xbae   :  { %7233 = vmatprep.subr.bf16.mxu0 %v9077_v44 }
 0xbb0   :  { %7211 = vmatpush1.bf16.msra.mxu1 %v8934_v7  ;;  %v3717_v7 = vld [vmem:[#allocation6 + $0x30] sm:$0xff] }
 0xbb1   :  { %7213 = vmatprep.subr.bf16.mxu1 %v8937_v10  ;;  %v9079_v10 = vpack.c.bf16 %v3717_v7, %v3713_v46 }
 0xbb3   :  { %7235 = vmatpush1.bf16.msra.mxu0 %v9079_v10 }
 0xbb4   :  { %7215 = vmatpush1.bf16.msra.mxu1 %v8940_v41  ;;  %v3722_v41 = vld [vmem:[#allocation6 + $0x58] sm:$0xff] }
 0xbb5   :  { %7217 = vmatprep.subr.bf16.mxu1 %v8943_v1  ;;  %v3726_v1 = vld [vmem:[#allocation6 + $0x78] sm:$0xff] }
 0xbb8   :  { %7219 = vmatpush1.bf16.msra.mxu1 %v8946_v19  ;;  %v9083_v19 = vpack.c.bf16 %v3726_v1, %v3722_v41 }
 0xbb9   :  { %7221 = vmatprep.subr.bf16.mxu1 %v8949_v9  ;;  %v3721_v9 = vld [vmem:[#allocation6 + $0x50] sm:$0xff] }
 0xbba   :  { %7237 = vmatprep.subr.bf16.mxu0 %v9083_v19 }
 0xbbc   :  { %7223 = vmatpush1.bf16.msra.mxu1 %v8952_v14  ;;  %v3725_v14 = vld [vmem:[#allocation6 + $0x70] sm:$0xff] }
 0xbbd   :  { %7225 = vmatprep.subr.bf16.mxu1 %v8955_v45  ;;  %v9085_v45 = vpack.c.bf16 %v3725_v14, %v3721_v9 }
 0xbbf   :  { %7239 = vmatpush1.bf16.msra.mxu0 %v9085_v45 }
 0xbc0   :  { %7227 = vmatpush1.bf16.msra.mxu1 %v8958_v54  ;;  %v3730_v54 = vld [vmem:[#allocation6 + $0x98] sm:$0xff] }
 0xbc1   :  { %7229 = vmatprep.subr.bf16.mxu1 %v8961_v18  ;;  %v3734_v18 = vld [vmem:[#allocation6 + $0xb8] sm:$0xff] }
 0xbc4   :  { %7231 = vmatpush1.bf16.msra.mxu1 %v8964_v21  ;;  %v9089_v21 = vpack.c.bf16 %v3734_v18, %v3730_v54 }
 0xbc6   :  { %7241 = vmatprep.subr.bf16.mxu0 %v9089_v21 }
 0xbc7   :  { %7243 = vmatpush1.bf16.msra.mxu0 %v9091_v51 }
 0xbc8   :  { %7245 = vmatprep.subr.bf16.mxu0 %v9095_v15 }
 0xbcb   :  { %7247 = vmatpush1.bf16.msra.mxu0 %v9097_v27 }
 0xbcc   :  { %7249 = vmatprep.subr.bf16.mxu0 %v9101_v32 }
 0xbcf   :  { %7251 = vmatpush1.bf16.msra.mxu0 %v9103_v50 }
 0xbd0   :  { %7253 = vmatprep.subr.bf16.mxu0 %v9107_v12 }
 0xbd3   :  { %7255 = vmatpush1.bf16.msra.mxu0 %v9109_v26 }
 0xbd4   :  { %7257 = vmatprep.subr.bf16.mxu0 %v9111_v31 }
 0xbd7   :  { %7259 = vmatpush1.bf16.msra.mxu0 %v9115_v34 }
 0xbd8   :  { %7261 = vmatprep.subr.bf16.mxu0 %v9118_v42 }
 0xbdb   :  { %7263 = vmatpush1.bf16.msra.mxu0 %v9121_v23 }
 0xbdc   :  { %7297 = vmatprep.subr.bf16.mxu0 %v9077_v44 }
 0xc7a   :  { %v3606_v30 = vpop.f32.mrb[24].mxu1  ;;  %v3677_v28 = vpop.f32.mrb[22].mxu0 }
 0xc7b   :  { %v3682_v33 = vadd.f32 %v3606_v30, %v9000_v52  ;;  %v3608_v35 = vpop.f32.mrb[25].mxu1  ;;  %v3679_v55 = vpop.f32.mrb[23].mxu0  ;;  %v3684_v46 = vadd.f32 %v3677_v28, %v9013_v13  ;;  %v3962_v30 = vld [vmem:[#allocation6 + $0x80] sm:$0xff] }
 0xc7c   :  { %v3683_v62 = vadd.f32 %v3608_v35, %v9002_v53  ;;  %v3685_v16 = vadd.f32 %v3679_v55, %v9008_v3  ;;  %v3966_v28 = vld [vmem:[#allocation6 + $0xa0] sm:$0xff]  ;;  %v3971_v35 = vld [vmem:[#allocation6 + $0xc8] sm:$0xff] }
 0xc7d   :  { %v6149_v61 = vmul.f32 -1.442695, %v3682_v33  ;;  %v9166_v33 = vpack.c.bf16 %v3966_v28, %v3962_v30  ;;  %v3975_v55 = vld [vmem:[#allocation6 + $0xe8] sm:$0xff] }
 0xc7e   :  { %v6150_v5 = vmul.f32 -1.442695, %v3683_v62  ;;  %v6151_v17 = vmul.f32 -1.442695, %v3685_v16  ;;  %v9170_v62 = vpack.c.bf16 %v3975_v55, %v3971_v35 }
 0xc7f   :  { %7816 = vpow2.f32 %v6149_v61  ;;  %v3970_v61 = vld [vmem:[#allocation6 + $0xc0] sm:$0xff] }
 0xc80   :  { %7818 = vpow2.f32 %v6150_v5  ;;  %v3974_v5 = vld [vmem:[#allocation6 + $0xe0] sm:$0xff] }
 0xc81   :  { %7820 = vpow2.f32 %v6151_v17  ;;  %v9172_v16 = vpack.c.bf16 %v3974_v5, %v3970_v61  ;;  %v3979_v17 = vld [vmem:[#allocation6 + $0x108] sm:$0xff] }
 0xc82   :  { %7822 = vtanh.f32 %v3684_v46  ;;  %v3983_v46 = vld [vmem:[#allocation6 + $0x128] sm:$0xff] }
 0xc89   :  { %v7817_v7 = vpop.eup %7816 }
 0xc8a   :  { %v7819_v41 = vpop.eup %7818  ;;  %v3689_v1 = vadd.f32 1.0, %v7817_v7  ;;  %v9176_v7 = vpack.c.bf16 %v3983_v46, %v3979_v17 }
 0xc8b   :  { %v3695_v9 = vadd.f32 1.0, %v7819_v41  ;;  %v7821_v14 = vpop.eup %7820  ;;  %v3978_v41 = vld [vmem:[#allocation6 + $0x100] sm:$0xff] }
 0xc8c   :  { %7824 = vrcp.f32 %v3689_v1  ;;  %v7823_v54 = vpop.eup %7822  ;;  %v3702_v60 = vadd.f32 1.0, %v7821_v14  ;;  %v3982_v1 = vld [vmem:[#allocation6 + $0x120] sm:$0xff]  ;;  %v3987_v14 = vld [vmem:[#allocation6 + $0x148] sm:$0xff] }
 0xc8d   :  { %7826 = vrcp.f32 %v3695_v9  ;;  %v9178_v9 = vpack.c.bf16 %v3982_v1, %v3978_v41 }
 0xc8e   :  { %7828 = vrcp.f32 %v3702_v60  ;;  %v3995_v60 = vld [vmem:[#allocation6 + $0x188] sm:$0xff] }
 0xc96   :  { %v7825_v18 = vpop.eup %7824 }
 0xc97   :  { %v7827_v11 = vpop.eup %7826  ;;  %v3706_v36 = vmul.f32 %v7825_v18, %v7823_v54  ;;  %v3991_v54 = vld [vmem:[#allocation6 + $0x168] sm:$0xff]  ;;  %v3986_v18 = vld [vmem:[#allocation6 + $0x140] sm:$0xff] }
 0xc98   :  { %v3705_v63 = vmul.f32 %v7827_v11, %v9057_v59  ;;  %v7829_v24 = vpop.eup %7828  ;;  %v3947_v59 = vld [vmem:[#allocation6 + $0x8] sm:$0xff]  ;;  %v9182_v11 = vpack.c.bf16 %v3991_v54, %v3987_v14 }
 0xc99   :  { %v9152_v22 = vpack.c.bf16 %v3951_v29, %v3947_v59  ;;  %v3998_v59 = vld [vmem:[#allocation6 + $0x1a0] sm:$0xff]  ;;  %v4003_v29 = vld [vmem:[#allocation6 + $0x1c8] sm:$0xff] }
 0xc9a   :  { %v9131_v56 = vadd.f32 %v3706_v36, %v3705_v63  ;;  %v3990_v36 = vld [vmem:[#allocation6 + $0x160] sm:$0xff]  ;;  %v3999_v63 = vld [vmem:[#allocation6 + $0x1a8] sm:$0xff]  ;;  %v9193_v39 = vpack.c.bf16 %v4007_v20, %v4003_v29 }
 0xc9b   :  { %7265 = vmatprep.subr.bf16.mxu1 %v9152_v22 }
 0xc9c   :  { %7830 = vtanh.f32 %v9131_v56 }
 0xca6   :  { %v7831_v40 = vpop.eup %7830 }
 0xca7   :  { %v3709_v43 = vmul.f32 %v7831_v40, %v7829_v24  ;;  %v9184_v24 = vpack.c.bf16 %v3990_v36, %v3986_v18  ;;  %v9186_v40 = vpack.c.bf16 %v3999_v63, %v3995_v60 }
 0xca9   :  { %3710 = vst [vmem:[#allocation2 + $0x4] sm:$0x3] %v3709_v43  ;;  %3840 = vmatmul.mubr.f32.vlgmr.msra.gmra.mrb[26].mxu1 %v3709_v43  ;;  %3911 = vmatmul.mubr.f32.vlgmr.msra.gmra.mrb[24].mxu0 %v3709_v43  ;;  %v3994_v43 = vld [vmem:[#allocation6 + $0x180] sm:$0xff] }
 0xcaa   :  { %7299 = vmatpush1.bf16.msra.mxu0 %v9079_v10  ;;  %4074 = vmatprep.mubr.f32.mxu1 %v8032_v0  ;;  %v9190_v37 = vpack.c.bf16 %v3998_v59, %v3994_v43 }
 0xcab   :  { %7301 = vmatprep.subr.bf16.mxu0 %v9083_v19  ;;  %4145 = vmatprep.mubr.f32.mxu0 %v8032_v0 }
 0xcac   :  { %7267 = vmatpush1.bf16.msra.mxu1 %v9154_v47 }
 0xcad   :  { %7269 = vmatprep.subr.bf16.mxu1 %v9158_v8 }
 0xcae   :  { %7303 = vmatpush1.bf16.msra.mxu0 %v9085_v45 }
 0xcaf   :  { %7305 = vmatprep.subr.bf16.mxu0 %v9089_v21 }
 0xcb0   :  { %7271 = vmatpush1.bf16.msra.mxu1 %v9160_v58 }
 0xcb1   :  { %7273 = vmatprep.subr.bf16.mxu1 %v9164_v6 }
 0xcb2   :  { %7307 = vmatpush1.bf16.msra.mxu0 %v9091_v51 }
 0xcb3   :  { %7309 = vmatprep.subr.bf16.mxu0 %v9095_v15 }
 0xcb4   :  { %7275 = vmatpush1.bf16.msra.mxu1 %v9166_v33 }
 0xcb5   :  { %7277 = vmatprep.subr.bf16.mxu1 %v9170_v62 }
 0xcb6   :  { %7311 = vmatpush1.bf16.msra.mxu0 %v9097_v27 }
 0xcb7   :  { %7313 = vmatprep.subr.bf16.mxu0 %v9101_v32 }
 0xcb8   :  { %7279 = vmatpush1.bf16.msra.mxu1 %v9172_v16 }
 0xcb9   :  { %7281 = vmatprep.subr.bf16.mxu1 %v9176_v7 }
 0xcba   :  { %7315 = vmatpush1.bf16.msra.mxu0 %v9103_v50 }
 0xcbb   :  { %7317 = vmatprep.subr.bf16.mxu0 %v9107_v12 }
 0xcbc   :  { %7283 = vmatpush1.bf16.msra.mxu1 %v9178_v9 }
 0xcbd   :  { %7285 = vmatprep.subr.bf16.mxu1 %v9182_v11 }
 0xcbe   :  { %7319 = vmatpush1.bf16.msra.mxu0 %v9109_v26 }
 0xcbf   :  { %7321 = vmatprep.subr.bf16.mxu0 %v9111_v31 }
 0xcc0   :  { %7287 = vmatpush1.bf16.msra.mxu1 %v9184_v24 }
 0xcc1   :  { %7289 = vmatprep.subr.bf16.mxu1 %v9186_v40 }
 0xcc2   :  { %7323 = vmatpush1.bf16.msra.mxu0 %v9115_v34 }
 0xcc3   :  { %7325 = vmatprep.subr.bf16.mxu0 %v9118_v42 }
 0xcc4   :  { %7291 = vmatpush1.bf16.msra.mxu1 %v9190_v37 }
 0xcc5   :  { %7293 = vmatprep.subr.bf16.mxu1 %v9193_v39 }
 0xcc6   :  { %7327 = vmatpush1.bf16.msra.mxu0 %v9121_v23 }
 0xcc7   :  { %7361 = vmatprep.subr.bf16.mxu0 %v9077_v44 }
 0xcc8   :  { %7295 = vmatpush1.bf16.msra.mxu1 %v9196_v48 }
 0xcc9   :  { %7329 = vmatprep.subr.bf16.mxu1 %v9152_v22 }
 0xd7c   :  { %v3841_v25 = vpop.f32.mrb[26].mxu1  ;;  %v3912_v2 = vpop.f32.mrb[24].mxu0 }
 0xd7d   :  { %v3917_v30 = vadd.f32 %v3841_v25, %v9000_v52  ;;  %v3843_v28 = vpop.f32.mrb[27].mxu1  ;;  %v3914_v35 = vpop.f32.mrb[25].mxu0  ;;  %v3919_v41 = vadd.f32 %v3912_v2, %v9013_v13 }
 0xd7e   :  { %v3918_v55 = vadd.f32 %v3843_v28, %v9002_v53  ;;  %v3920_v17 = vadd.f32 %v3914_v35, %v9008_v3 }
 0xd7f   :  { %v6152_v61 = vmul.f32 -1.442695, %v3917_v30 }
 0xd80   :  { %v6153_v5 = vmul.f32 -1.442695, %v3918_v55  ;;  %v6154_v46 = vmul.f32 -1.442695, %v3920_v17 }
 0xd81   :  { %7832 = vpow2.f32 %v6152_v61 }
 0xd82   :  { %7834 = vpow2.f32 %v6153_v5 }
 0xd83   :  { %7836 = vpow2.f32 %v6154_v46 }
 0xd84   :  { %7838 = vtanh.f32 %v3919_v41 }
 0xd8b   :  { %v7833_v1 = vpop.eup %7832 }
 0xd8c   :  { %v7835_v14 = vpop.eup %7834  ;;  %v3924_v54 = vadd.f32 1.0, %v7833_v1 }
 0xd8d   :  { %v3930_v18 = vadd.f32 1.0, %v7835_v14  ;;  %v7837_v36 = vpop.eup %7836 }
 0xd8e   :  { %7840 = vrcp.f32 %v3924_v54  ;;  %v7839_v60 = vpop.eup %7838  ;;  %v3937_v29 = vadd.f32 1.0, %v7837_v36 }
 0xd8f   :  { %7842 = vrcp.f32 %v3930_v18 }
 0xd90   :  { %7844 = vrcp.f32 %v3937_v29 }
 0xd98   :  { %v7841_v63 = vpop.eup %7840 }
 0xd99   :  { %v7843_v43 = vpop.eup %7842  ;;  %v3941_v59 = vmul.f32 %v7841_v63, %v7839_v60 }
 0xd9a   :  { %v3940_v20 = vmul.f32 %v7843_v43, %v9131_v56  ;;  %v7845_v38 = vpop.eup %7844 }
 0xd9c   :  { %v9206_v4 = vadd.f32 %v3941_v59, %v3940_v20 }
 0xd9e   :  { %7846 = vtanh.f32 %v9206_v4 }
 0xda8   :  { %v7847_v25 = vpop.eup %7846 }
 0xda9   :  { %v3944_v2 = vmul.f32 %v7847_v25, %v7845_v38 }
 0xdab   :  { %3945 = vst [vmem:[#allocation2 + $0x6] sm:$0x3] %v3944_v2  ;;  %4075 = vmatmul.mubr.f32.vlgmr.msra.gmra.mrb[28].mxu1 %v3944_v2  ;;  %4146 = vmatmul.mubr.f32.vlgmr.msra.gmra.mrb[26].mxu0 %v3944_v2 }
 0xdac   :  { %7331 = vmatpush1.bf16.msra.mxu1 %v9154_v47  ;;  %7363 = vmatpush1.bf16.msra.mxu0 %v9079_v10 }
 0xdad   :  { %7333 = vmatprep.subr.bf16.mxu1 %v9158_v8  ;;  %7365 = vmatprep.subr.bf16.mxu0 %v9083_v19 }
 0xdae   :  { %4309 = vmatprep.mubr.f32.mxu1 %v8032_v0  ;;  %4380 = vmatprep.mubr.f32.mxu0 %v8032_v0 }
 0xdb0   :  { %7335 = vmatpush1.bf16.msra.mxu1 %v9160_v58  ;;  %7367 = vmatpush1.bf16.msra.mxu0 %v9085_v45 }
 0xdb1   :  { %7337 = vmatprep.subr.bf16.mxu1 %v9164_v6  ;;  %7369 = vmatprep.subr.bf16.mxu0 %v9089_v21 }
 0xdb4   :  { %7339 = vmatpush1.bf16.msra.mxu1 %v9166_v33  ;;  %7371 = vmatpush1.bf16.msra.mxu0 %v9091_v51 }
 0xdb5   :  { %7341 = vmatprep.subr.bf16.mxu1 %v9170_v62  ;;  %7373 = vmatprep.subr.bf16.mxu0 %v9095_v15 }
 0xdb8   :  { %7343 = vmatpush1.bf16.msra.mxu1 %v9172_v16  ;;  %7375 = vmatpush1.bf16.msra.mxu0 %v9097_v27 }
 0xdb9   :  { %7345 = vmatprep.subr.bf16.mxu1 %v9176_v7  ;;  %7377 = vmatprep.subr.bf16.mxu0 %v9101_v32 }
 0xdbc   :  { %7347 = vmatpush1.bf16.msra.mxu1 %v9178_v9  ;;  %7379 = vmatpush1.bf16.msra.mxu0 %v9103_v50 }
 0xdbd   :  { %7349 = vmatprep.subr.bf16.mxu1 %v9182_v11  ;;  %7381 = vmatprep.subr.bf16.mxu0 %v9107_v12 }
 0xdc0   :  { %7351 = vmatpush1.bf16.msra.mxu1 %v9184_v24  ;;  %7383 = vmatpush1.bf16.msra.mxu0 %v9109_v26 }
 0xdc1   :  { %7353 = vmatprep.subr.bf16.mxu1 %v9186_v40  ;;  %7385 = vmatprep.subr.bf16.mxu0 %v9111_v31 }
 0xdc4   :  { %7355 = vmatpush1.bf16.msra.mxu1 %v9190_v37  ;;  %7387 = vmatpush1.bf16.msra.mxu0 %v9115_v34 }
 0xdc5   :  { %7357 = vmatprep.subr.bf16.mxu1 %v9193_v39  ;;  %7389 = vmatprep.subr.bf16.mxu0 %v9118_v42 }
 0xdc8   :  { %7359 = vmatpush1.bf16.msra.mxu1 %v9196_v48  ;;  %7391 = vmatpush1.bf16.msra.mxu0 %v9121_v23 }
 0xdc9   :  { %7393 = vmatprep.subr.bf16.mxu1 %v9152_v22  ;;  %7425 = vmatprep.subr.bf16.mxu0 %v9077_v44 }
 0xe7e   :  { %v4076_v56 = vpop.f32.mrb[28].mxu1  ;;  %v4147_v30 = vpop.f32.mrb[26].mxu0 }
 0xe7f   :  { %v4152_v28 = vadd.f32 %v4076_v56, %v9000_v52  ;;  %v4078_v35 = vpop.f32.mrb[29].mxu1  ;;  %v4149_v55 = vpop.f32.mrb[27].mxu0  ;;  %v4154_v1 = vadd.f32 %v4147_v30, %v9013_v13 }
 0xe80   :  { %v4153_v61 = vadd.f32 %v4078_v35, %v9002_v53  ;;  %v4155_v46 = vadd.f32 %v4149_v55, %v9008_v3 }
 0xe81   :  { %v6155_v5 = vmul.f32 -1.442695, %v4152_v28 }
 0xe82   :  { %v6156_v17 = vmul.f32 -1.442695, %v4153_v61  ;;  %v6157_v41 = vmul.f32 -1.442695, %v4155_v46 }
 0xe83   :  { %7848 = vpow2.f32 %v6155_v5 }
 0xe84   :  { %7850 = vpow2.f32 %v6156_v17 }
 0xe85   :  { %7852 = vpow2.f32 %v6157_v41 }
 0xe86   :  { %7854 = vtanh.f32 %v4154_v1 }
 0xe8d   :  { %v7849_v14 = vpop.eup %7848 }
 0xe8e   :  { %v7851_v54 = vpop.eup %7850  ;;  %v4159_v44 = vadd.f32 1.0, %v7849_v14  ;;  %v4673_v14 = vld [vmem:[#allocation6 + $0xb0] sm:$0xff] }
 0xe8f   :  { %v4165_v18 = vadd.f32 1.0, %v7851_v54  ;;  %v7853_v36 = vpop.eup %7852 }
 0xe90   :  { %7856 = vrcp.f32 %v4159_v44  ;;  %v7855_v60 = vpop.eup %7854  ;;  %v4172_v29 = vadd.f32 1.0, %v7853_v36  ;;  %v4678_v44 = vld [vmem:[#allocation6 + $0xd8] sm:$0xff] }
 0xe91   :  { %7858 = vrcp.f32 %v4165_v18  ;;  %v4682_v18 = vld [vmem:[#allocation6 + $0xf8] sm:$0xff] }
 0xe92   :  { %7860 = vrcp.f32 %v4172_v29  ;;  %v7500_v36 = vpack.c.bf16 %v4682_v18, %v4678_v44  ;;  %v4690_v29 = vld [vmem:[#allocation6 + $0x138] sm:$0xff] }
 0xe9a   :  { %v7857_v63 = vpop.eup %7856 }
 0xe9b   :  { %v7859_v43 = vpop.eup %7858  ;;  %v4176_v59 = vmul.f32 %v7857_v63, %v7855_v60  ;;  %v4677_v60 = vld [vmem:[#allocation6 + $0xd0] sm:$0xff] }
 0xe9c   :  { %v4175_v20 = vmul.f32 %v7859_v43, %v9206_v4  ;;  %v7861_v25 = vpop.eup %7860  ;;  %v4681_v63 = vld [vmem:[#allocation6 + $0xf0] sm:$0xff] }
 0xe9d   :  { %v7502_v43 = vpack.c.bf16 %v4681_v63, %v4677_v60  ;;  %v5023_v60 = vld [vmem:[%s9572_s14 + $0x8] sm:$0xff] }
 0xe9e   :  { %v9248_v38 = vadd.f32 %v4176_v59, %v4175_v20  ;;  %v4686_v59 = vld [vmem:[#allocation6 + $0x118] sm:$0xff] }
 0xe9f   :  { %v7504_v20 = vpack.c.bf16 %v4690_v29, %v4686_v59 }
 0xea0   :  { %7862 = vtanh.f32 %v9248_v38 }
 0xeaa   :  { %v7863_v2 = vpop.eup %7862 }
 0xeab   :  { %v4179_v56 = vmul.f32 %v7863_v2, %v7861_v25  ;;  %v4689_v25 = vld [vmem:[#allocation6 + $0x130] sm:$0xff] }
 0xead   :  { %4180 = vst [vmem:[#allocation2 + $0x8] sm:$0x3] %v4179_v56  ;;  %4310 = vmatmul.mubr.f32.vlgmr.msra.gmra.mrb[30].mxu1 %v4179_v56  ;;  %4381 = vmatmul.mubr.f32.vlgmr.msra.gmra.mrb[28].mxu0 %v4179_v56  ;;  %v4694_v56 = vld [vmem:[#allocation6 + $0x158] sm:$0xff] }
 0xeae   :  { %7395 = vmatpush1.bf16.msra.mxu1 %v9154_v47  ;;  %7427 = vmatpush1.bf16.msra.mxu0 %v9079_v10 }
 0xeaf   :  { %7397 = vmatprep.subr.bf16.mxu1 %v9158_v8  ;;  %7429 = vmatprep.subr.bf16.mxu0 %v9083_v19 }
 0xeb0   :  { %4544 = vmatprep.mubr.f32.mxu1 %v8032_v0  ;;  %4615 = vmatprep.mubr.f32.mxu0 %v8032_v0 }
 0xeb2   :  { %7399 = vmatpush1.bf16.msra.mxu1 %v9160_v58  ;;  %7431 = vmatpush1.bf16.msra.mxu0 %v9085_v45 }
 0xeb3   :  { %7401 = vmatprep.subr.bf16.mxu1 %v9164_v6  ;;  %7433 = vmatprep.subr.bf16.mxu0 %v9089_v21 }
 0xeb6   :  { %7403 = vmatpush1.bf16.msra.mxu1 %v9166_v33  ;;  %7435 = vmatpush1.bf16.msra.mxu0 %v9091_v51 }
 0xeb7   :  { %7405 = vmatprep.subr.bf16.mxu1 %v9170_v62  ;;  %7437 = vmatprep.subr.bf16.mxu0 %v9095_v15 }
 0xeba   :  { %7407 = vmatpush1.bf16.msra.mxu1 %v9172_v16  ;;  %7439 = vmatpush1.bf16.msra.mxu0 %v9097_v27 }
 0xebb   :  { %7409 = vmatprep.subr.bf16.mxu1 %v9176_v7  ;;  %7441 = vmatprep.subr.bf16.mxu0 %v9101_v32 }
 0xebe   :  { %7411 = vmatpush1.bf16.msra.mxu1 %v9178_v9  ;;  %7443 = vmatpush1.bf16.msra.mxu0 %v9103_v50 }
 0xebf   :  { %7413 = vmatprep.subr.bf16.mxu1 %v9182_v11  ;;  %7445 = vmatprep.subr.bf16.mxu0 %v9107_v12 }
 0xec2   :  { %7415 = vmatpush1.bf16.msra.mxu1 %v9184_v24  ;;  %7447 = vmatpush1.bf16.msra.mxu0 %v9109_v26 }
 0xec3   :  { %7417 = vmatprep.subr.bf16.mxu1 %v9186_v40  ;;  %7449 = vmatprep.subr.bf16.mxu0 %v9111_v31 }
 0xec6   :  { %7419 = vmatpush1.bf16.msra.mxu1 %v9190_v37  ;;  %7451 = vmatpush1.bf16.msra.mxu0 %v9115_v34 }
 0xec7   :  { %7421 = vmatprep.subr.bf16.mxu1 %v9193_v39  ;;  %7453 = vmatprep.subr.bf16.mxu0 %v9118_v42 }
 0xeca   :  { %7423 = vmatpush1.bf16.msra.mxu1 %v9196_v48  ;;  %7455 = vmatpush1.bf16.msra.mxu0 %v9121_v23 }
 0xecb   :  { %7457 = vmatprep.subr.bf16.mxu1 %v9152_v22 }
 0xf80   :  { %v4311_v10 = vpop.f32.mrb[30].mxu1  ;;  %v4382_v19 = vpop.f32.mrb[28].mxu0 }
 0xf81   :  { %v4387_v45 = vadd.f32 %v4311_v10, %v9000_v52  ;;  %v4313_v21 = vpop.f32.mrb[31].mxu1  ;;  %v4384_v51 = vpop.f32.mrb[29].mxu0  ;;  %v4389_v26 = vadd.f32 %v4382_v19, %v9013_v13  ;;  %v4698_v10 = vld [vmem:[#allocation6 + $0x178] sm:$0xff]  ;;  %v4693_v19 = vld [vmem:[#allocation6 + $0x150] sm:$0xff] }
 0xf82   :  { %v4388_v15 = vadd.f32 %v4313_v21, %v9002_v53  ;;  %v4390_v50 = vadd.f32 %v4384_v51, %v9008_v3  ;;  %v4697_v21 = vld [vmem:[#allocation6 + $0x170] sm:$0xff]  ;;  %v4702_v51 = vld [vmem:[#allocation6 + $0x198] sm:$0xff] }
 0xf83   :  { %v6158_v27 = vmul.f32 -1.442695, %v4387_v45  ;;  %v7508_v45 = vpack.c.bf16 %v4698_v10, %v4694_v56  ;;  %v4886_v56 = vld [vmem:[#allocation2] sm:$0xff] }
 0xf84   :  { %v6159_v32 = vmul.f32 -1.442695, %v4388_v15  ;;  %v6160_v12 = vmul.f32 -1.442695, %v4390_v50  ;;  %v4706_v15 = vld [vmem:[#allocation6 + $0x1b8] sm:$0xff]  ;;  %v4701_v50 = vld [vmem:[#allocation6 + $0x190] sm:$0xff] }
 0xf85   :  { %7864 = vpow2.f32 %v6158_v27  ;;  %v7510_v27 = vpack.c.bf16 %v4697_v21, %v4693_v19  ;;  %v5106_v21 = vld [vmem:[%s9573_s15] sm:$0xff] }
 0xf86   :  { %7866 = vpow2.f32 %v6159_v32  ;;  %v7512_v32 = vpack.c.bf16 %v4706_v15, %v4702_v51  ;;  %v5107_v51 = vld [vmem:[%s9573_s15 + $0x8] sm:$0xff] }
 0xf87   :  { %7868 = vpow2.f32 %v6160_v12  ;;  %v4705_v12 = vld [vmem:[#allocation6 + $0x1b0] sm:$0xff]  ;;  %v9349_v15 = vpack.c.bf16 %v5107_v51, %v5106_v21 }
 0xf88   :  { %7870 = vtanh.f32 %v4389_v26  ;;  %v4710_v26 = vld [vmem:[#allocation6 + $0x1d8] sm:$0xff] }
 0xf8f   :  { %v7865_v31 = vpop.eup %7864 }
 0xf90   :  { %v7867_v34 = vpop.eup %7866  ;;  %v4394_v42 = vadd.f32 1.0, %v7865_v31  ;;  %v4714_v31 = vld [vmem:[#allocation6 + $0x1f8] sm:$0xff] }
 0xf91   :  { %v4400_v23 = vadd.f32 1.0, %v7867_v34  ;;  %v7869_v22 = vpop.eup %7868  ;;  %v7514_v34 = vpack.c.bf16 %v4705_v12, %v4701_v50  ;;  %v5109_v50 = vld [vmem:[%s9573_s15 + $0x18] sm:$0xff] }
 0xf92   :  { %7872 = vrcp.f32 %v4394_v42  ;;  %v7871_v4 = vpop.eup %7870  ;;  %v4407_v55 = vadd.f32 1.0, %v7869_v22  ;;  %v7516_v42 = vpack.c.bf16 %v4714_v31, %v4710_v26  ;;  %v4713_v22 = vld [vmem:[#allocation6 + $0x1f0] sm:$0xff]  ;;  %v4888_v26 = vld [vmem:[%s9568_s10] sm:$0xff]  ;;  %v4889_v31 = vld [vmem:[%s9568_s10 + $0x8] sm:$0xff] }
 0xf93   :  { %7874 = vrcp.f32 %v4400_v23  ;;  %v4709_v23 = vld [vmem:[#allocation6 + $0x1d0] sm:$0xff] }
 0xf94   :  { %7876 = vrcp.f32 %v4407_v55 }
 0xf9c   :  { %v7873_v30 = vpop.eup %7872 }
 0xf9d   :  { %v7875_v28 = vpop.eup %7874  ;;  %v4411_v35 = vmul.f32 %v7873_v30, %v7871_v4  ;;  %v7518_v4 = vpack.c.bf16 %v4713_v22, %v4709_v23  ;;  %v4891_v23 = vld [vmem:[%s9568_s10 + $0x18] sm:$0xff] }
 0xf9e   :  { %v4410_v61 = vmul.f32 %v7875_v28, %v9248_v38  ;;  %v7877_v17 = vpop.eup %7876  ;;  %v4685_v38 = vld [vmem:[#allocation6 + $0x110] sm:$0xff] }
 0xf9f   :  { %v7506_v2 = vpack.c.bf16 %v4689_v25, %v4685_v38  ;;  %v5025_v38 = vld [vmem:[%s9572_s14 + $0x18] sm:$0xff]  ;;  %v6169_v25 = vld [vmem:[%s9571_s13] ss:$0 sm:$0xff] }
 0xfa0   :  { %v9289_v5 = vadd.f32 %v4411_v35, %v4410_v61 }
 0xfa2   :  { %7878 = vtanh.f32 %v9289_v5 }
 0xfac   :  { %v7879_v46 = vpop.eup %7878 }
 0xfad   :  { %v4414_v41 = vmul.f32 %v7879_v46, %v7877_v17 }
 0xfaf   :  { %4415 = vst [vmem:[#allocation2 + $0xa] sm:$0x3] %v4414_v41  ;;  %4545 = vmatmul.mubr.f32.vlgmr.msra.gmra.mrb[32].mxu1 %v4414_v41  ;;  %4616 = vmatmul.mubr.f32.vlgmr.msra.gmra.mrb[30].mxu0 %v4414_v41 }
 0xfb0   :  { %7459 = vmatpush1.bf16.msra.mxu1 %v9154_v47  ;;  %4779 = vmatprep.mubr.f32.mxu1 %v8032_v0  ;;  %v4654_v47 = vld [vmem:[#allocation6 + $0x18] sm:$0xff] }
 0xfb1   :  { %7461 = vmatprep.subr.bf16.mxu1 %v9158_v8  ;;  %4850 = vmatprep.mubr.f32.mxu0 %v8032_v0  ;;  %v4658_v8 = vld [vmem:[#allocation6 + $0x38] sm:$0xff] }
 0xfb4   :  { %7463 = vmatpush1.bf16.msra.mxu1 %v9160_v58  ;;  %v7488_v58 = vpack.c.bf16 %v4658_v8, %v4654_v47 }
 0xfb5   :  { %7465 = vmatprep.subr.bf16.mxu1 %v9164_v6  ;;  %v4653_v6 = vld [vmem:[#allocation6 + $0x10] sm:$0xff] }
 0xfb6   :  { %7489 = vmatprep.subr.bf16.mxu0 %v7488_v58 }
 0xfb8   :  { %7467 = vmatpush1.bf16.msra.mxu1 %v9166_v33  ;;  %v4657_v33 = vld [vmem:[#allocation6 + $0x30] sm:$0xff] }
 0xfb9   :  { %7469 = vmatprep.subr.bf16.mxu1 %v9170_v62  ;;  %v7490_v62 = vpack.c.bf16 %v4657_v33, %v4653_v6 }
 0xfbb   :  { %7491 = vmatpush1.bf16.msra.mxu0 %v7490_v62 }
 0xfbc   :  { %7471 = vmatpush1.bf16.msra.mxu1 %v9172_v16  ;;  %v4662_v16 = vld [vmem:[#allocation6 + $0x58] sm:$0xff] }
 0xfbd   :  { %7473 = vmatprep.subr.bf16.mxu1 %v9176_v7  ;;  %v4666_v7 = vld [vmem:[#allocation6 + $0x78] sm:$0xff] }
 0xfc0   :  { %7475 = vmatpush1.bf16.msra.mxu1 %v9178_v9  ;;  %v7492_v9 = vpack.c.bf16 %v4666_v7, %v4662_v16  ;;  %v4998_v16 = vpop.xlane.xlu0 %4997 }
 0xfc1   :  { %7477 = vmatprep.subr.bf16.mxu1 %v9182_v11  ;;  %v4661_v11 = vld [vmem:[#allocation6 + $0x50] sm:$0xff] }
 0xfc2   :  { %7493 = vmatprep.subr.bf16.mxu0 %v7492_v9  ;;  %v4999_v9 = vmul.f32 0.03125, %v4998_v16 }
 0xfc4   :  { %7479 = vmatpush1.bf16.msra.mxu1 %v9184_v24  ;;  %v4665_v24 = vld [vmem:[#allocation6 + $0x70] sm:$0xff] }
 0xfc5   :  { %7481 = vmatprep.subr.bf16.mxu1 %v9186_v40  ;;  %v7494_v40 = vpack.c.bf16 %v4665_v24, %v4661_v11  ;;  %v5000_v11 = vadd.f32 1e-05, %v4999_v9 }
 0xfc7   :  { %7495 = vmatpush1.bf16.msra.mxu0 %v7494_v40 }
 0xfc8   :  { %7483 = vmatpush1.bf16.msra.mxu1 %v9190_v37  ;;  %v4670_v37 = vld [vmem:[#allocation6 + $0x98] sm:$0xff] }
 0xfc9   :  { %7485 = vmatprep.subr.bf16.mxu1 %v9193_v39  ;;  %v4674_v39 = vld [vmem:[#allocation6 + $0xb8] sm:$0xff] }
 0xfca   :  { %v7496_v1 = vpack.c.bf16 %v4674_v39, %v4670_v37 }
 0xfcc   :  { %7487 = vmatpush1.bf16.msra.mxu1 %v9196_v48  ;;  %v4669_v48 = vld [vmem:[#allocation6 + $0x90] sm:$0xff]  ;;  %7497 = vmatprep.subr.bf16.mxu0 %v7496_v1 }
 0xfcd   :  { %v7498_v54 = vpack.c.bf16 %v4673_v14, %v4669_v48 }
 0xfcf   :  { %7499 = vmatpush1.bf16.msra.mxu0 %v7498_v54 }
 0xfd0   :  { %7501 = vmatprep.subr.bf16.mxu0 %v7500_v36  ;;  %v5022_v36 = vld [vmem:[%s9572_s14] sm:$0xff] }
 0xfd1   :  { %v7553_v59 = vpack.c.bf16 %v5023_v60, %v5022_v36 }
 0xfd3   :  { %7503 = vmatpush1.bf16.msra.mxu0 %v7502_v43 }
 0xfd4   :  { %7505 = vmatprep.subr.bf16.mxu0 %v7504_v20 }
 0xfd7   :  { %7507 = vmatpush1.bf16.msra.mxu0 %v7506_v2 }
 0xfd8   :  { %7509 = vmatprep.subr.bf16.mxu0 %v7508_v45 }
 0xfdb   :  { %7511 = vmatpush1.bf16.msra.mxu0 %v7510_v27 }
 0xfdc   :  { %7513 = vmatprep.subr.bf16.mxu0 %v7512_v32  ;;  %v5108_v32 = vld [vmem:[%s9573_s15 + $0x10] sm:$0xff]  ;;  %s9594_s15 = sld [smem:[#allocation15_spill]] }
 0xfdd   :  { %v9360_v12 = vpack.c.bf16 %v5109_v50, %v5108_v32 }
 0xfdf   :  { %7515 = vmatpush1.bf16.msra.mxu0 %v7514_v34  ;;  %v7520_v34 = vpack.c.bf16 %v4889_v31, %v4888_v26 }
 0xfe0   :  { %7517 = vmatprep.subr.bf16.mxu0 %v7516_v42  ;;  %v4890_v42 = vld [vmem:[%s9568_s10 + $0x10] sm:$0xff] }
 0xfe1   :  { %7521 = vmatprep.subr.bf16.mxu1 %v7520_v34  ;;  %v7524_v22 = vpack.c.bf16 %v4891_v23, %v4890_v42 }
 0xfe3   :  { %7519 = vmatpush1.bf16.msra.mxu0 %v7518_v4  ;;  %v4892_v4 = vld [vmem:[%s9568_s10 + $0x20] sm:$0xff] }
 0xfe4   :  { %7552 = vmatprep.subr.bf16.mxu0 %v8033_v49 }
0x1082   :  { %v4546_v30 = vpop.f32.mrb[32].mxu1  ;;  %v4617_v28 = vpop.f32.mrb[30].mxu0 }
0x1083   :  { %v4622_v35 = vadd.f32 %v4546_v30, %v9000_v52  ;;  %v4548_v55 = vpop.f32.mrb[33].mxu1  ;;  %v4619_v61 = vpop.f32.mrb[31].mxu0  ;;  %v4624_v58 = vadd.f32 %v4617_v28, %v9013_v13  ;;  %v4893_v30 = vld [vmem:[%s9568_s10 + $0x28] sm:$0xff] }
0x1084   :  { %v4623_v17 = vadd.f32 %v4548_v55, %v9002_v53  ;;  %v4625_v47 = vadd.f32 %v4619_v61, %v9008_v3  ;;  %v7528_v28 = vpack.c.bf16 %v4893_v30, %v4892_v4  ;;  %v4895_v55 = vld [vmem:[%s9568_s10 + $0x38] sm:$0xff]  ;;  %v6167_v30 = vld [vmem:[%s9569_s11] ss:$0 sm:$0xff] }
0x1085   :  { %v6161_v46 = vmul.f32 -1.442695, %v4622_v35  ;;  %v4894_v35 = vld [vmem:[%s9568_s10 + $0x30] sm:$0xff] }
0x1086   :  { %v6162_v41 = vmul.f32 -1.442695, %v4623_v17  ;;  %v6163_v8 = vmul.f32 -1.442695, %v4625_v47  ;;  %v7532_v61 = vpack.c.bf16 %v4895_v55, %v4894_v35  ;;  %v4896_v17 = vld [vmem:[%s9568_s10 + $0x40] sm:$0xff]  ;;  %v4898_v47 = vld [vmem:[%s9568_s10 + $0x50] sm:$0xff] }
0x1087   :  { %7880 = vpow2.f32 %v6161_v46  ;;  %v4897_v46 = vld [vmem:[%s9568_s10 + $0x48] sm:$0xff] }
0x1088   :  { %7882 = vpow2.f32 %v6162_v41  ;;  %v7536_v41 = vpack.c.bf16 %v4897_v46, %v4896_v17 }
0x1089   :  { %7884 = vpow2.f32 %v6163_v8  ;;  %v4899_v8 = vld [vmem:[%s9568_s10 + $0x58] sm:$0xff] }
0x108a   :  { %7886 = vtanh.f32 %v4624_v58  ;;  %v7540_v58 = vpack.c.bf16 %v4899_v8, %v4898_v47 }
0x1091   :  { %v7881_v6 = vpop.eup %7880 }
0x1092   :  { %v7883_v33 = vpop.eup %7882  ;;  %v4629_v62 = vadd.f32 1.0, %v7881_v6  ;;  %v4900_v6 = vld [vmem:[%s9568_s10 + $0x60] sm:$0xff] }
0x1093   :  { %v4635_v7 = vadd.f32 1.0, %v7883_v33  ;;  %v7885_v24 = vpop.eup %7884  ;;  %v4901_v33 = vld [vmem:[%s9568_s10 + $0x68] sm:$0xff] }
0x1094   :  { %7888 = vrcp.f32 %v4629_v62  ;;  %v7887_v40 = vpop.eup %7886  ;;  %v4642_v48 = vadd.f32 1.0, %v7885_v24  ;;  %v4902_v62 = vld [vmem:[%s9568_s10 + $0x70] sm:$0xff]  ;;  %v7544_v16 = vpack.c.bf16 %v4901_v33, %v4900_v6 }
0x1095   :  { %7890 = vrcp.f32 %v4635_v7  ;;  %v4903_v7 = vld [vmem:[%s9568_s10 + $0x78] sm:$0xff] }
0x1096   :  { %7892 = vrsqrt.f32 %v5000_v11  ;;  %v7548_v9 = vpack.c.bf16 %v4903_v7, %v4902_v62 }
0x1097   :  { %7894 = vrcp.f32 %v4642_v48 }
0x109e   :  { %v7889_v37 = vpop.eup %7888 }
0x109f   :  { %v7891_v39 = vpop.eup %7890  ;;  %v4646_v1 = vmul.f32 %v7889_v37, %v7887_v40 }
0x10a0   :  { %v4645_v14 = vmul.f32 %v7891_v39, %v9289_v5  ;;  %v7893_v44 = vpop.eup %7892  ;;  %v6168_v5 = vld [vmem:[%s9570_s12] ss:$0 sm:$0xff]  ;;  %s9593_s12 = sld [smem:[#allocation11_spill]] }
0x10a1   :  { %v5002_v18 = vmul.f32 %v7893_v44, %v8988_v57  ;;  %v7895_v63 = vpop.eup %7894  ;;  %v5024_v57 = vld [vmem:[%s9572_s14 + $0x10] sm:$0xff] }
0x10a2   :  { %v9315_v54 = vadd.f32 %v4646_v1, %v4645_v14  ;;  %v7556_v10 = vpack.c.bf16 %v5025_v38, %v5024_v57 }
0x10a3   :  { %v5010_v29 = vmul.f32 %v6168_v5, %v5002_v18 }
0x10a4   :  { %7896 = vtanh.f32 %v9315_v54 }
0x10a5   :  { %v5018_v19 = vadd.f32 %v6169_v25, %v5010_v29 }
0x10a6   :  { %v5019_v2 = vld [vmem:[%s9593_s12] sm:$0x3] }
0x10a7   :  { %v5020_v45 = vmul.f32 0.2, %v5019_v2 }
0x10a9   :  { %v5021_v27 = vadd.f32 %v5020_v45, %v5018_v19 }
0x10ae   :  { %v7897_v43 = vpop.eup %7896 }
0x10af   :  { %v4649_v20 = vmul.f32 %v7897_v43, %v7895_v63  ;;  %v6170_v63 = vld [vmem:[%s9574_s16] ss:$0 sm:$0xff]  ;;  %s8035_s16 = smov 64  }
0x10b1   :  { %4650 = vst [vmem:[#allocation2 + $0xc] sm:$0x3] %v4649_v20  ;;  %4780 = vmatmul.mubr.f32.vlgmr.msra.gmra.mrb[34].mxu1 %v4649_v20  ;;  %4851 = vmatmul.mubr.f32.vlgmr.msra.gmra.mrb[32].mxu0 %v4649_v20 }
0x10b2   :  { %7554 = vmatpush3.bf16.msra.mxu0 %v7553_v59  ;;  %6343 = vmatprep.mubr.f32.mxu1 %v4886_v56 }
0x10b3   :  { %7555 = vmatprep.subr.bf16.mxu0 %v8033_v49  ;;  %6354 = vmatprep.mubr.msk.f32.mxu0 %vm8034_vm2, %v8032_v0 }
0x10b4   :  { %7523 = vmatpush3.bf16.msra.mxu1 %v7520_v34 }
0x10b5   :  { %7525 = vmatprep.subr.bf16.mxu1 %v7524_v22 }
0x10b6   :  { %7557 = vmatpush3.bf16.msra.mxu0 %v7556_v10 }
0x10b7   :  { %7558 = vmatprep.subr.bf16.mxu0 %v8033_v49 }
0x10b8   :  { %7527 = vmatpush3.bf16.msra.mxu1 %v7524_v22 }
0x10b9   :  { %6355 = vmatmul.mubr.msk.f32.vlgmr.msra.gmra.mrb[34].mxu0 %vm2860_vm3, %v5021_v27  ;;  %7529 = vmatprep.subr.bf16.mxu1 %v7528_v28 }
0x10ba   :  { %7560 = vmatpush3.bf16.msra.mxu0 %v9349_v15  ;;  %6365 = vmatprep.mubr.msk.f32.mxu0 %vm8034_vm2, %v8032_v0 }
0x10bb   :  { %7561 = vmatprep.subr.bf16.mxu0 %v8033_v49 }
0x10bc   :  { %7531 = vmatpush3.bf16.msra.mxu1 %v7528_v28 }
0x10bd   :  { %7533 = vmatprep.subr.bf16.mxu1 %v7532_v61 }
0x10be   :  { %7563 = vmatpush3.bf16.msra.mxu0 %v9360_v12 }
0x10bf   :  { %7564 = vmatprep.subr.bf16.mxu0 %v8033_v49 }
0x10c0   :  { %7535 = vmatpush3.bf16.msra.mxu1 %v7532_v61 }
0x10c1   :  { %6366 = vmatmul.mubr.f32.vlgmr.msra.gmra.mrb[36].mxu0 %v8032_v0  ;;  %7537 = vmatprep.subr.bf16.mxu1 %v7536_v41 }
0x10c2   :  { %7566 = vmatpush3.bf16.msra.mxu0 %v9349_v15  ;;  %6376 = vmatprep.mubr.msk.f32.mxu0 %vm8034_vm2, %v8032_v0 }
0x10c3   :  { %7567 = vmatprep.subr.bf16.mxu0 %v8033_v49 }
0x10c4   :  { %7539 = vmatpush3.bf16.msra.mxu1 %v7536_v41 }
0x10c5   :  { %7541 = vmatprep.subr.bf16.mxu1 %v7540_v58 }
0x10c6   :  { %7569 = vmatpush3.bf16.msra.mxu0 %v9360_v12 }
0x10c7   :  { %7576 = vmatprep.subr.bf16.mxu0 %v8033_v49 }
0x10c8   :  { %7543 = vmatpush3.bf16.msra.mxu1 %v7540_v58 }
0x10c9   :  { %7545 = vmatprep.subr.bf16.mxu1 %v7544_v16 }
0x10cc   :  { %7547 = vmatpush3.bf16.msra.mxu1 %v7544_v16 }
0x10cd   :  { %7549 = vmatprep.subr.bf16.mxu1 %v7548_v9 }
0x10d0   :  { %7551 = vmatpush3.bf16.msra.mxu1 %v7548_v9 }
0x10d1   :  { %7570 = vmatprep.subr.bf16.mxu1 %v8033_v49 }
0x1184   :  { %v4781_v11 = vpop.f32.mrb[34].mxu1  ;;  %v4852_v24 = vpop.f32.mrb[32].mxu0 }
0x1185   :  { %v4857_v40 = vadd.f32 %v4781_v11, %v9000_v52  ;;  %v4783_v37 = vpop.f32.mrb[35].mxu1  ;;  %v4854_v39 = vpop.f32.mrb[33].mxu0  ;;  %v4859_v5 = vadd.f32 %v4852_v24, %v9013_v13 }
0x1186   :  { %v4858_v1 = vadd.f32 %v4783_v37, %v9002_v53  ;;  %v4860_v44 = vadd.f32 %v4854_v39, %v9008_v3 }
0x1187   :  { %v6164_v48 = vmul.f32 -1.442695, %v4857_v40 }
0x1188   :  { %v6165_v14 = vmul.f32 -1.442695, %v4858_v1  ;;  %v6166_v60 = vmul.f32 -1.442695, %v4860_v44 }
0x1189   :  { %7898 = vpow2.f32 %v6164_v48 }
0x118a   :  { %7900 = vpow2.f32 %v6165_v14 }
0x118b   :  { %7902 = vpow2.f32 %v6166_v60 }
0x118c   :  { %v5102_v18 = vpop.f32.mrb[34].mxu0  ;;  %7904 = vtanh.f32 %v4859_v5 }
0x118d   :  { %v6356_v36 = vpop.f32.mrb[35].mxu0  ;;  %v9430_v53 = vadd.f32 %v6170_v63, %v5102_v18 }
0x1193   :  { %v7899_v52 = vpop.eup %7898 }
0x1194   :  { %v7901_v43 = vpop.eup %7900  ;;  %v4864_v59 = vadd.f32 1.0, %v7899_v52  ;;  %v5179_v29 = vpop.f32.mrb[36].mxu0 }
0x1195   :  { %v4870_v20 = vadd.f32 1.0, %v7901_v43  ;;  %v6367_v57 = vpop.f32.mrb[37].mxu0  ;;  %v5183_v3 = vadd.f32 %v5179_v29, %v9430_v53  ;;  %v7903_v13 = vpop.eup %7902 }
0x1196   :  { %7906 = vrcp.f32 %v4864_v59  ;;  %v7905_v38 = vpop.eup %7904  ;;  %v4877_v10 = vadd.f32 1.0, %v7903_v13 }
0x1197   :  { %7908 = vrcp.f32 %v4870_v20 }
0x1198   :  { %7910 = vtanh.f32 %v5183_v3 }
0x1199   :  { %7912 = vrcp.f32 %v4877_v10 }
0x11a0   :  { %v7907_v25 = vpop.eup %7906 }
0x11a1   :  { %v7909_v2 = vpop.eup %7908  ;;  %v4881_v56 = vmul.f32 %v7907_v25, %v7905_v38 }
0x11a2   :  { %v4880_v19 = vmul.f32 %v7909_v2, %v9315_v54  ;;  %v7911_v45 = vpop.eup %7910  ;;  %v6172_v54 = vmul.f32 -1.442695, %v5183_v3 }
0x11a3   :  { %5193 = vrot.lane.b32.xlu1 %v7911_v45, %s8035_s16  ;;  %v7913_v51 = vpop.eup %7912 }
0x11a4   :  { %v4882_v21 = vadd.f32 %v4881_v56, %v4880_v19 }
0x11a6   :  { %7914 = vtanh.f32 %v4882_v21 }
0x11a7   :  { %7916 = vpow2.f32 %v6172_v54 }
0x11b0   :  { %v7915_v27 = vpop.eup %7914 }
0x11b1   :  { %v4884_v32 = vmul.f32 %v7915_v27, %v7913_v51  ;;  %v7917_v26 = vpop.eup %7916 }
0x11b2   :  { %v5187_v31 = vadd.f32 1.0, %v7917_v26 }
0x11b3   :  { %4885 = vst [vmem:[#allocation2 + $0xe] sm:$0x3] %v4884_v32 }
0x11b4   :  { %7918 = vrcp.f32 %v5187_v31 }
0x11ba   :  { %v4887_v50 = vld [vmem:[#allocation2 + $0x8] sm:$0xff] }
0x11bb   :  { %6344 = vmatmul.mubr.f32.vlgmr.msra.gmra.mrb[36].mxu1 %v4887_v50 }
0x11bc   :  { %7572 = vmatpush3.bf16.msra.mxu1 %v9349_v15  ;;  %6387 = vmatprep.mubr.msk.f32.mxu1 %vm8034_vm2, %v8032_v0 }
0x11bd   :  { %7573 = vmatprep.subr.bf16.mxu1 %v8033_v49 }
0x11be   :  { %v7919_v34 = vpop.eup %7918 }
0x11bf   :  { %v5191_v22 = vmul.f32 0.0, %v7919_v34 }
0x11c0   :  { %7575 = vmatpush3.bf16.msra.mxu1 %v9360_v12 }
0x11c1   :  { %7582 = vmatprep.subr.bf16.mxu1 %v8033_v49 }
0x1215   :  { %v5194_v42 = vpop.permute.xlu1 %5193 }
0x1216   :  { %v5196_v23 = vmul.f32 %v7919_v34, %v5194_v42 }
0x1218   :  { %5198 = vrot.lane.b32.xlu1 %v5196_v23, %s8030_s30 }
0x128a   :  { %v5199_v4 = vpop.permute.xlu1 %5198 }
0x128b   :  { %v5201_v28 = vadd.f32 %v5199_v4, %v5191_v22 }
0x128d   :  { %7920 = vtanh.f32 %v5201_v28 }
0x128e   :  { %v6345_v35 = vpop.f32.mrb[36].mxu1 }
0x128f   :  { %v4983_v55 = vadd.f32 %v6345_v35, %v6167_v30  ;;  %v4977_v61 = vpop.f32.mrb[37].mxu1 }
0x1290   :  { %v4978_v17 = vadd.f32 %v6167_v30, %v4977_v61 }
0x1291   :  { %4987 = vst.msk [vmem:[%s9577_s19 + $0x8] sm:$0xff] %vm305_vm1, %v4983_v55 }
0x1292   :  { %4986 = vst.msk [vmem:[%s9577_s19] sm:$0xff] %vm305_vm1, %v4978_v17 }
0x1297   :  { %v7921_v46 = vpop.eup %7920 }
0x1298   :  { %5204 = vrot.lane.b32.xlu0 %v7921_v46, %s8035_s16 }
0x130a   :  { %v5205_v41 = vpop.permute.xlu0 %5204 }
0x130b   :  { %v5207_v47 = vmul.f32 %v7919_v34, %v5205_v41 }
0x130d   :  { %5209 = vrot.lane.b32.xlu1 %v5207_v47, %s8030_s30 }
0x137f   :  { %v5210_v8 = vpop.permute.xlu1 %5209 }
0x1380   :  { %5212 = vst.msk [vmem:[#allocation3] sm:$0x3] %vm4988_vm4, %v5210_v8  ;;  %6377 = vmatmul.mubr.msk.f32.vlgmr.msra.gmra.mrb[38].mxu0 %vm2860_vm3, %v5210_v8 }
0x1381   :  { %7578 = vmatpush3.bf16.msra.mxu0 %v9349_v15  ;;  %6398 = vmatprep.mubr.msk.f32.mxu0 %vm8034_vm2, %v8032_v0 }
0x1382   :  { %7579 = vmatprep.subr.bf16.mxu0 %v8033_v49 }
0x1385   :  { %7581 = vmatpush3.bf16.msra.mxu0 %v9360_v12 }
0x1386   :  { %7588 = vmatprep.subr.bf16.mxu0 %v8033_v49 }
0x1453   :  { %v5285_v58 = vpop.f32.mrb[38].mxu0 }
0x1454   :  { %v5289_v6 = vadd.f32 %v5285_v58, %v9430_v53  ;;  %v6378_v33 = vpop.f32.mrb[39].mxu0 }
0x1456   :  { %7922 = vtanh.f32 %v5289_v6  ;;  %v6174_v16 = vmul.f32 -1.442695, %v5289_v6 }
0x1458   :  { %7924 = vpow2.f32 %v6174_v16 }
0x1460   :  { %v7923_v62 = vpop.eup %7922 }
0x1461   :  { %5299 = vrot.lane.b32.xlu1 %v7923_v62, %s8035_s16 }
0x1462   :  { %v7925_v7 = vpop.eup %7924 }
0x1463   :  { %v5293_v9 = vadd.f32 1.0, %v7925_v7 }
0x1465   :  { %7926 = vrcp.f32 %v5293_v9 }
0x146f   :  { %v7927_v11 = vpop.eup %7926 }
0x1470   :  { %v5297_v37 = vmul.f32 %v7927_v11, %v5201_v28 }
0x14d3   :  { %v5300_v24 = vpop.permute.xlu1 %5299 }
0x14d4   :  { %v5302_v40 = vmul.f32 %v7927_v11, %v5300_v24 }
0x14d6   :  { %5304 = vrot.lane.b32.xlu1 %v5302_v40, %s8030_s30 }
0x1548   :  { %v5305_v39 = vpop.permute.xlu1 %5304 }
0x1549   :  { %v5307_v1 = vadd.f32 %v5305_v39, %v5297_v37 }
0x154b   :  { %7928 = vtanh.f32 %v5307_v1 }
0x1555   :  { %v7929_v48 = vpop.eup %7928 }
0x1556   :  { %5310 = vrot.lane.b32.xlu1 %v7929_v48, %s8035_s16 }
0x15c8   :  { %v5311_v14 = vpop.permute.xlu1 %5310 }
0x15c9   :  { %v5313_v44 = vmul.f32 %v7927_v11, %v5311_v14 }
0x15cb   :  { %5315 = vrot.lane.b32.xlu1 %v5313_v44, %s8030_s30 }
0x163d   :  { %v5316_v18 = vpop.permute.xlu1 %5315 }
0x163e   :  { %5318 = vst.msk [vmem:[#allocation3 + $0x2] sm:$0x3] %vm4988_vm4, %v5316_v18  ;;  %6388 = vmatmul.mubr.msk.f32.vlgmr.msra.gmra.mrb[38].mxu1 %vm2860_vm3, %v5316_v18 }
0x163f   :  { %7584 = vmatpush3.bf16.msra.mxu1 %v9349_v15  ;;  %6409 = vmatprep.mubr.msk.f32.mxu1 %vm8034_vm2, %v8032_v0 }
0x1640   :  { %7585 = vmatprep.subr.bf16.mxu1 %v8033_v49 }
0x1643   :  { %7587 = vmatpush3.bf16.msra.mxu1 %v9360_v12 }
0x1644   :  { %7594 = vmatprep.subr.bf16.mxu1 %v8033_v49 }
0x1711   :  { %v5391_v36 = vpop.f32.mrb[38].mxu1 }
0x1712   :  { %v5395_v60 = vadd.f32 %v5391_v36, %v9430_v53  ;;  %v6389_v5 = vpop.f32.mrb[39].mxu1 }
0x1714   :  { %7930 = vtanh.f32 %v5395_v60  ;;  %v6176_v52 = vmul.f32 -1.442695, %v5395_v60 }
0x1716   :  { %7932 = vpow2.f32 %v6176_v52 }
0x171e   :  { %v7931_v63 = vpop.eup %7930 }
0x171f   :  { %5405 = vrot.lane.b32.xlu1 %v7931_v63, %s8035_s16 }
0x1720   :  { %v7933_v43 = vpop.eup %7932 }
0x1721   :  { %v5399_v59 = vadd.f32 1.0, %v7933_v43 }
0x1723   :  { %7934 = vrcp.f32 %v5399_v59 }
0x172d   :  { %v7935_v29 = vpop.eup %7934 }
0x172e   :  { %v5403_v3 = vmul.f32 %v7935_v29, %v5307_v1 }
0x1791   :  { %v5406_v20 = vpop.permute.xlu1 %5405 }
0x1792   :  { %v5408_v57 = vmul.f32 %v7935_v29, %v5406_v20 }
0x1794   :  { %5410 = vrot.lane.b32.xlu0 %v5408_v57, %s8030_s30 }
0x1806   :  { %v5411_v13 = vpop.permute.xlu0 %5410 }
0x1807   :  { %v5413_v38 = vadd.f32 %v5411_v13, %v5403_v3 }
0x1809   :  { %7936 = vtanh.f32 %v5413_v38 }
0x1813   :  { %v7937_v25 = vpop.eup %7936 }
0x1814   :  { %5416 = vrot.lane.b32.xlu1 %v7937_v25, %s8035_s16 }
0x1886   :  { %v5417_v2 = vpop.permute.xlu1 %5416 }
0x1887   :  { %v5419_v56 = vmul.f32 %v7935_v29, %v5417_v2 }
0x1889   :  { %5421 = vrot.lane.b32.xlu0 %v5419_v56, %s8030_s30 }
0x18fb   :  { %v5422_v10 = vpop.permute.xlu0 %5421 }
0x18fc   :  { %5424 = vst.msk [vmem:[#allocation3 + $0x4] sm:$0x3] %vm4988_vm4, %v5422_v10  ;;  %6399 = vmatmul.mubr.msk.f32.vlgmr.msra.gmra.mrb[40].mxu0 %vm2860_vm3, %v5422_v10 }
0x18fd   :  { %7590 = vmatpush3.bf16.msra.mxu0 %v9349_v15  ;;  %6420 = vmatprep.mubr.msk.f32.mxu0 %vm8034_vm2, %v8032_v0 }
0x18fe   :  { %7591 = vmatprep.subr.bf16.mxu0 %v8033_v49 }
0x1901   :  { %7593 = vmatpush3.bf16.msra.mxu0 %v9360_v12 }
0x1902   :  { %7600 = vmatprep.subr.bf16.mxu0 %v8033_v49 }
0x19cf   :  { %v5497_v19 = vpop.f32.mrb[40].mxu0 }
0x19d0   :  { %v5501_v45 = vadd.f32 %v5497_v19, %v9430_v53  ;;  %v6400_v21 = vpop.f32.mrb[41].mxu0 }
0x19d2   :  { %7938 = vtanh.f32 %v5501_v45  ;;  %v6178_v27 = vmul.f32 -1.442695, %v5501_v45 }
0x19d4   :  { %7940 = vpow2.f32 %v6178_v27 }
0x19dc   :  { %v7939_v51 = vpop.eup %7938 }
0x19dd   :  { %5511 = vrot.lane.b32.xlu1 %v7939_v51, %s8035_s16 }
0x19de   :  { %v7941_v32 = vpop.eup %7940 }
0x19df   :  { %v5505_v50 = vadd.f32 1.0, %v7941_v32 }
0x19e1   :  { %7942 = vrcp.f32 %v5505_v50 }
0x19eb   :  { %v7943_v54 = vpop.eup %7942 }
0x19ec   :  { %v5509_v34 = vmul.f32 %v7943_v54, %v5413_v38 }
0x1a4f   :  { %v5512_v26 = vpop.permute.xlu1 %5511 }
0x1a50   :  { %v5514_v31 = vmul.f32 %v7943_v54, %v5512_v26 }
0x1a52   :  { %5516 = vrot.lane.b32.xlu0 %v5514_v31, %s8030_s30 }
0x1ac4   :  { %v5517_v42 = vpop.permute.xlu0 %5516 }
0x1ac5   :  { %v5519_v23 = vadd.f32 %v5517_v42, %v5509_v34 }
0x1ac7   :  { %7944 = vtanh.f32 %v5519_v23 }
0x1ad1   :  { %v7945_v22 = vpop.eup %7944 }
0x1ad2   :  { %5522 = vrot.lane.b32.xlu1 %v7945_v22, %s8035_s16 }
0x1b44   :  { %v5523_v4 = vpop.permute.xlu1 %5522 }
0x1b45   :  { %v5525_v30 = vmul.f32 %v7943_v54, %v5523_v4 }
0x1b47   :  { %5527 = vrot.lane.b32.xlu0 %v5525_v30, %s8030_s30 }
0x1bb9   :  { %v5528_v28 = vpop.permute.xlu0 %5527 }
0x1bba   :  { %5530 = vst.msk [vmem:[#allocation3 + $0x6] sm:$0x3] %vm4988_vm4, %v5528_v28  ;;  %6410 = vmatmul.mubr.msk.f32.vlgmr.msra.gmra.mrb[40].mxu1 %vm2860_vm3, %v5528_v28 }
0x1bbb   :  { %7596 = vmatpush3.bf16.msra.mxu1 %v9349_v15  ;;  %6431 = vmatprep.mubr.msk.f32.mxu1 %vm8034_vm2, %v8032_v0 }
0x1bbc   :  { %7597 = vmatprep.subr.bf16.mxu1 %v8033_v49 }
0x1bbf   :  { %7599 = vmatpush3.bf16.msra.mxu1 %v9360_v12 }
0x1bc1   :  { %v5955_v43 = vld [vmem:[#allocation3] sm:$0xff] }
0x1c8d   :  { %v5603_v35 = vpop.f32.mrb[40].mxu1 }
0x1c8e   :  { %v5607_v55 = vadd.f32 %v5603_v35, %v9430_v53  ;;  %v6411_v61 = vpop.f32.mrb[41].mxu1 }
0x1c8f   :  { %v5957_v61 = vld [vmem:[%s9575_s17] sm:$0xff] }
0x1c90   :  { %7946 = vtanh.f32 %v5607_v55  ;;  %v6180_v46 = vmul.f32 -1.442695, %v5607_v55 }
0x1c92   :  { %7948 = vpow2.f32 %v6180_v46 }
0x1c9a   :  { %v7947_v17 = vpop.eup %7946 }
0x1c9b   :  { %5617 = vrot.lane.b32.xlu1 %v7947_v17, %s8035_s16  ;;  %v5958_v17 = vld [vmem:[%s9575_s17 + $0x8] sm:$0xff] }
0x1c9c   :  { %v7949_v41 = vpop.eup %7948  ;;  %v7606_v46 = vpack.c.bf16 %v5958_v17, %v5957_v61 }
0x1c9d   :  { %v5611_v47 = vadd.f32 1.0, %v7949_v41  ;;  %v5959_v41 = vld [vmem:[%s9575_s17 + $0x10] sm:$0xff] }
0x1c9e   :  { %7607 = vmatprep.subr.bf16.mxu1 %v7606_v46 }
0x1c9f   :  { %7950 = vrcp.f32 %v5611_v47  ;;  %v5960_v47 = vld [vmem:[%s9575_s17 + $0x18] sm:$0xff] }
0x1ca9   :  { %v7951_v8 = vpop.eup %7950 }
0x1caa   :  { %v5615_v33 = vmul.f32 %v7951_v8, %v5519_v23 }
0x1d0d   :  { %v5618_v58 = vpop.permute.xlu1 %5617 }
0x1d0e   :  { %v5620_v6 = vmul.f32 %v7951_v8, %v5618_v58 }
0x1d10   :  { %5622 = vrot.lane.b32.xlu0 %v5620_v6, %s8030_s30 }
0x1d82   :  { %v5623_v62 = vpop.permute.xlu0 %5622 }
0x1d83   :  { %v5625_v16 = vadd.f32 %v5623_v62, %v5615_v33 }
0x1d85   :  { %7952 = vtanh.f32 %v5625_v16 }
0x1d8f   :  { %v7953_v7 = vpop.eup %7952 }
0x1d90   :  { %5628 = vrot.lane.b32.xlu1 %v7953_v7, %s8035_s16 }
0x1e02   :  { %v5629_v9 = vpop.permute.xlu1 %5628 }
0x1e03   :  { %v5631_v11 = vmul.f32 %v7951_v8, %v5629_v9  ;;  %v7610_v8 = vpack.c.bf16 %v5960_v47, %v5959_v41 }
0x1e05   :  { %5633 = vrot.lane.b32.xlu0 %v5631_v11, %s8030_s30 }
0x1e77   :  { %v5634_v24 = vpop.permute.xlu0 %5633 }
0x1e78   :  { %5636 = vst.msk [vmem:[#allocation3 + $0x8] sm:$0x3] %vm4988_vm4, %v5634_v24  ;;  %6421 = vmatmul.mubr.msk.f32.vlgmr.msra.gmra.mrb[42].mxu0 %vm2860_vm3, %v5634_v24 }
0x1e79   :  { %7602 = vmatpush3.bf16.msra.mxu0 %v9349_v15  ;;  %6442 = vmatprep.mubr.msk.f32.mxu0 %vm8034_vm2, %v8032_v0 }
0x1e7a   :  { %7603 = vmatprep.subr.bf16.mxu0 %v8033_v49 }
0x1e7d   :  { %7605 = vmatpush3.bf16.msra.mxu0 %v9360_v12 }
0x1f4b   :  { %v5709_v40 = vpop.f32.mrb[42].mxu0 }
0x1f4c   :  { %v5713_v37 = vadd.f32 %v5709_v40, %v9430_v53  ;;  %v6422_v39 = vpop.f32.mrb[43].mxu0 }
0x1f4e   :  { %7954 = vtanh.f32 %v5713_v37  ;;  %v6182_v48 = vmul.f32 -1.442695, %v5713_v37 }
0x1f50   :  { %7956 = vpow2.f32 %v6182_v48 }
0x1f58   :  { %v7955_v1 = vpop.eup %7954 }
0x1f59   :  { %5723 = vrot.lane.b32.xlu1 %v7955_v1, %s8035_s16 }
0x1f5a   :  { %v7957_v14 = vpop.eup %7956 }
0x1f5b   :  { %v5717_v44 = vadd.f32 1.0, %v7957_v14 }
0x1f5d   :  { %7958 = vrcp.f32 %v5717_v44 }
0x1f67   :  { %v7959_v15 = vpop.eup %7958 }
0x1f68   :  { %v5721_v49 = vmul.f32 %v7959_v15, %v5625_v16  ;;  %v6187_v16 = vld [vmem:[%s9576_s18] ss:$0 sm:$0xff] }
0x1fcb   :  { %v5724_v18 = vpop.permute.xlu1 %5723 }
0x1fcc   :  { %v5726_v0 = vmul.f32 %v7959_v15, %v5724_v18 }
0x1fce   :  { %5728 = vrot.lane.b32.xlu0 %v5726_v0, %s8030_s30 }
0x2040   :  { %v5729_v12 = vpop.permute.xlu0 %5728 }
0x2041   :  { %v5731_v36 = vadd.f32 %v5729_v12, %v5721_v49 }
0x2043   :  { %7960 = vtanh.f32 %v5731_v36 }
0x204d   :  { %v7961_v60 = vpop.eup %7960 }
0x204e   :  { %5734 = vrot.lane.b32.xlu1 %v7961_v60, %s8035_s16 }
0x20c0   :  { %v5735_v5 = vpop.permute.xlu1 %5734 }
0x20c1   :  { %v5737_v63 = vmul.f32 %v7959_v15, %v5735_v5 }
0x20c3   :  { %5739 = vrot.lane.b32.xlu0 %v5737_v63, %s8030_s30 }
0x2135   :  { %v5740_v52 = vpop.permute.xlu0 %5739 }
0x2136   :  { %5742 = vst.msk [vmem:[#allocation3 + $0xa] sm:$0x3] %vm4988_vm4, %v5740_v52  ;;  %6432 = vmatmul.mubr.msk.f32.vlgmr.msra.gmra.mrb[42].mxu1 %vm2860_vm3, %v5740_v52 }
0x2137   :  { %6453 = vmatprep.mubr.msk.f32.mxu1 %vm2860_vm3, %v5955_v43  ;;  %7609 = vmatpush3.bf16.msra.mxu1 %v7606_v46 }
0x2138   :  { %7611 = vmatprep.subr.bf16.mxu1 %v7610_v8 }
0x213b   :  { %7613 = vmatpush3.bf16.msra.mxu1 %v7610_v8 }
0x2209   :  { %v5815_v59 = vpop.f32.mrb[42].mxu1 }
0x220a   :  { %v5819_v29 = vadd.f32 %v5815_v59, %v9430_v53  ;;  %v6433_v20 = vpop.f32.mrb[43].mxu1 }
0x220c   :  { %7962 = vtanh.f32 %v5819_v29  ;;  %v6184_v3 = vmul.f32 -1.442695, %v5819_v29 }
0x220e   :  { %7964 = vpow2.f32 %v6184_v3 }
0x2216   :  { %v7963_v57 = vpop.eup %7962 }
0x2217   :  { %5829 = vrot.lane.b32.xlu1 %v7963_v57, %s8035_s16 }
0x2218   :  { %v7965_v13 = vpop.eup %7964 }
0x2219   :  { %v5823_v38 = vadd.f32 1.0, %v7965_v13 }
0x221b   :  { %7966 = vrcp.f32 %v5823_v38 }
0x2225   :  { %v7967_v25 = vpop.eup %7966 }
0x2226   :  { %v5827_v10 = vmul.f32 %v7967_v25, %v5731_v36 }
0x2289   :  { %v5830_v2 = vpop.permute.xlu1 %5829 }
0x228a   :  { %v5832_v56 = vmul.f32 %v7967_v25, %v5830_v2 }
0x228c   :  { %5834 = vrot.lane.b32.xlu0 %v5832_v56, %s8030_s30 }
0x22fe   :  { %v5835_v19 = vpop.permute.xlu0 %5834 }
0x22ff   :  { %v5837_v45 = vadd.f32 %v5835_v19, %v5827_v10 }
0x2301   :  { %7968 = vtanh.f32 %v5837_v45 }
0x230b   :  { %v7969_v21 = vpop.eup %7968 }
0x230c   :  { %5840 = vrot.lane.b32.xlu1 %v7969_v21, %s8035_s16 }
0x237e   :  { %v5841_v51 = vpop.permute.xlu1 %5840 }
0x237f   :  { %v5843_v27 = vmul.f32 %v7967_v25, %v5841_v51 }
0x2381   :  { %5845 = vrot.lane.b32.xlu0 %v5843_v27, %s8030_s30 }
0x23f3   :  { %v5846_v32 = vpop.permute.xlu0 %5845 }
0x23f4   :  { %5848 = vst.msk [vmem:[#allocation3 + $0xc] sm:$0x3] %vm4988_vm4, %v5846_v32  ;;  %6443 = vmatmul.mubr.msk.f32.vlgmr.msra.gmra.mrb[44].mxu0 %vm2860_vm3, %v5846_v32 }
0x24c7   :  { %v5921_v50 = vpop.f32.mrb[44].mxu0 }
0x24c8   :  { %v5925_v54 = vadd.f32 %v5921_v50, %v9430_v53  ;;  %v6444_v26 = vpop.f32.mrb[45].mxu0 }
0x24ca   :  { %7970 = vtanh.f32 %v5925_v54  ;;  %v6186_v34 = vmul.f32 -1.442695, %v5925_v54 }
0x24cc   :  { %7972 = vpow2.f32 %v6186_v34 }
0x24d4   :  { %v7971_v31 = vpop.eup %7970 }
0x24d5   :  { %5935 = vrot.lane.b32.xlu1 %v7971_v31, %s8035_s16 }
0x24d6   :  { %v7973_v42 = vpop.eup %7972 }
0x24d7   :  { %v5929_v23 = vadd.f32 1.0, %v7973_v42 }
0x24d9   :  { %7974 = vrcp.f32 %v5929_v23 }
0x24e3   :  { %v7975_v22 = vpop.eup %7974 }
0x24e4   :  { %v5933_v28 = vmul.f32 %v7975_v22, %v5837_v45 }
0x2547   :  { %v5936_v4 = vpop.permute.xlu1 %5935 }
0x2548   :  { %v5938_v30 = vmul.f32 %v7975_v22, %v5936_v4 }
0x254a   :  { %5940 = vrot.lane.b32.xlu0 %v5938_v30, %s8030_s30 }
0x25bc   :  { %v5941_v35 = vpop.permute.xlu0 %5940 }
0x25bd   :  { %v5943_v55 = vadd.f32 %v5941_v35, %v5933_v28 }
0x25bf   :  { %7976 = vtanh.f32 %v5943_v55 }
0x25c9   :  { %v7977_v53 = vpop.eup %7976 }
0x25ca   :  { %5946 = vrot.lane.b32.xlu1 %v7977_v53, %s8035_s16 }
0x263c   :  { %v5947_v58 = vpop.permute.xlu1 %5946 }
0x263d   :  { %v5949_v6 = vmul.f32 %v7975_v22, %v5947_v58 }
0x263f   :  { %5951 = vrot.lane.b32.xlu0 %v5949_v6, %s8030_s30 }
0x26b1   :  { %v5952_v33 = vpop.permute.xlu0 %5951 }
0x26b2   :  { %5954 = vst.msk [vmem:[#allocation3 + $0xe] sm:$0x3] %vm4988_vm4, %v5952_v33 }
0x26b9   :  { %v5956_v62 = vld [vmem:[#allocation3 + $0x8] sm:$0xff] }
0x26ba   :  { %6454 = vmatmul.mubr.msk.f32.vlgmr.msra.gmra.mrb[44].mxu1 %vm2860_vm3, %v5956_v62 }
0x278d   :  { %v6455_v7 = vpop.f32.mrb[44].mxu1 }
0x278e   :  { %v6046_v9 = vadd.f32 %v6455_v7, %v6187_v16  ;;  %v6040_v11 = vpop.f32.mrb[45].mxu1 }
0x278f   :  { %v6041_v24 = vadd.f32 %v6187_v16, %v6040_v11 }
0x2790   :  { %6050 = vst.msk [vmem:[%s9594_s15 + $0x8] sm:$0xff] %vm305_vm1, %v6046_v9 }
0x2791   :  { %6049 = vst.msk [vmem:[%s9594_s15] sm:$0xff] %vm305_vm1, %v6041_v24 }
0x2792   :  { %6059 = vsyncpa [#allocation5], 1 }
0x2793   :  { %6060 = vsyncpa [#allocation7], 1 }

</bundles_post_ra>
